<compile_context>
chip_gen: v5e
topology: v5e:2x2
jax: 0.10.0
libtpu: 0.0.40
codegen_flags: <defaults>
</compile_context>

<pallas_src>
import functools

import jax
import jax.numpy as jnp
from jax import lax
from jax.experimental import pallas as pl
from jax.experimental.pallas import tpu as pltpu


def lstm_fc_kernel(x_ref, wih0_ref, b0_ref, whh0_ref, wcat1_ref, b1_ref,
                   wfc_ref, bfc_ref, out_ref, hcat_sc, h1_hist_sc,
                   *, seq_len, batch, hidden_dim):
    """Fused 2-layer LSTM recurrence + linear head.

    x_ref:      (T*B, D_in)  time-major, flattened input
    wih0_ref:   (D_in, 4H)   layer-0 input->gates weights (transposed)
    b0_ref:     (1, 4H)      layer-0 combined bias (b_ih + b_hh)
    whh0_ref:   (H, 4H)      layer-0 hidden->gates weights (transposed)
    wcat1_ref:  (2H, 4H)     layer-1 fused [input; hidden]->gates weights
    b1_ref:     (1, 4H)      layer-1 combined bias
    wfc_ref:    (H, O), bfc_ref: (1, O)
    out_ref:    (T*B, O)
    hcat_sc:    (B, 2H)      staging buffer holding [h0_t | h1_{t-1}]
    h1_hist_sc: (T*B, H)     layer-1 hidden-state history for the batched FC
    """
    T, B, H = seq_len, batch, hidden_dim
    d_in = x_ref.shape[1]
    f32 = jnp.float32

    # ---- layer-0 input projection, hoisted off the serial time chain ----
    b0 = b0_ref[...]
    if d_in == 1:
        # D_in == 1: outer product via VPU broadcast (avoids a degenerate
        # K=1 MXU matmul entirely).
        x_proj = x_ref[...] * wih0_ref[...] + b0              # (T*B, 4H)
    else:
        x_proj = jnp.dot(x_ref[...], wih0_ref[...],
                         preferred_element_type=f32) + b0     # (T*B, 4H)

    def lstm_act(gates, c_prev):
        # Full-width transcendentals (EUP slot has slack), then slice the
        # activated tensor; gate order matches PyTorch: [i, f, g, o].
        sg = jax.nn.sigmoid(gates)                            # (B, 4H)
        tg = jnp.tanh(gates)                                  # (B, 4H)
        i_g = sg[:, 0 * H:1 * H]
        f_g = sg[:, 1 * H:2 * H]
        g_g = tg[:, 2 * H:3 * H]
        o_g = sg[:, 3 * H:4 * H]
        c_new = f_g * c_prev + i_g * g_g
        h_new = o_g * jnp.tanh(c_new)
        return h_new, c_new

    zeros = jnp.zeros((B, H), f32)
    h0, c0, c1 = zeros, zeros, zeros
    hcat_sc[...] = jnp.zeros_like(hcat_sc)     # h0 = h1 = 0 (PyTorch default)

    # Fully unrolled time loop: every index below is static, so the scheduler
    # sees one straight-line region and can overlap across steps/layers.
    for t in range(T):
        # ---- layer 0: only the recurrent matmul sits on the serial chain ---
        gates0 = x_proj[t * B:(t + 1) * B, :] + jnp.dot(
            h0, whh0_ref[...], preferred_element_type=f32)    # (B, 4H)
        h0, c0 = lstm_act(gates0, c0)
        hcat_sc[:, 0:H] = h0                   # stage [h0_t | h1_{t-1}]

        # ---- layer 1: single fused (B,2H)x(2H,4H) gate matmul --------------
        gates1 = jnp.dot(hcat_sc[...], wcat1_ref[...],
                         preferred_element_type=f32) + b1_ref[...]
        h1, c1 = lstm_act(gates1, c1)
        hcat_sc[:, H:2 * H] = h1

        # Stash layer-1 hidden state; the FC head is batched after the loop.
        h1_hist_sc[t * B:(t + 1) * B, :] = h1

    # ---- batched FC head: one (T*B,H)x(H,O) matmul + one store -------------
    out_ref[...] = jnp.dot(h1_hist_sc[...], wfc_ref[...],
                           preferred_element_type=f32) + bfc_ref[...]


def lstm_model_forward(x, params):
    """Forward pass matching LSTMModel: out, _ = lstm(x); out = fc(out)."""
    B, T, D_in = x.shape
    H = params["hidden_dim"]
    O = params["w_fc"].shape[0]

    # Time-major, then flatten (T, B) -> rows so the kernel never reshapes.
    x_flat = (jnp.transpose(x, (1, 0, 2))
              .astype(jnp.float32)
              .reshape(T * B, D_in))                          # (T*B, D_in)

    wih0 = params["w_ih_l0"].T                                # (D_in, 4H)
    b0 = (params["b_ih_l0"] + params["b_hh_l0"]).reshape(1, 4 * H)
    whh0 = params["w_hh_l0"].T                                # (H, 4H)
    # Layer-1 fused gate weights: [h0_t | h1_{t-1}] @ [[Wih1^T], [Whh1^T]].
    wcat1 = jnp.concatenate(
        [params["w_ih_l1"].T, params["w_hh_l1"].T], axis=0)   # (2H, 4H)
    b1 = (params["b_ih_l1"] + params["b_hh_l1"]).reshape(1, 4 * H)
    wfc = params["w_fc"].T                                    # (H, O)
    bfc = params["b_fc"].reshape(1, O)

    kernel = functools.partial(lstm_fc_kernel, seq_len=T, batch=B,
                               hidden_dim=H)
    vmem = pl.BlockSpec(memory_space=pltpu.MemorySpace.VMEM)

    out_flat = pl.pallas_call(
        kernel,
        out_shape=jax.ShapeDtypeStruct((T * B, O), jnp.float32),
        in_specs=[vmem] * 8,
        out_specs=vmem,
        scratch_shapes=[
            pltpu.VMEM((B, 2 * H), jnp.float32),   # [h0_t | h1_{t-1}] staging
            pltpu.VMEM((T * B, H), jnp.float32),   # layer-1 hidden history
        ],
    )(x_flat, wih0, b0, whh0, wcat1, b1, wfc, bfc)

    # (T*B, O) -> (T, B, O) -> (B, T, O)
    return jnp.transpose(out_flat.reshape(T, B, O), (1, 0, 2))


def lstm_model_reference(x, params):
    """Pure-JAX reference (lax.scan) for correctness checking."""
    H = params["hidden_dim"]

    def layer(xs, wih, whh, b_ih, b_hh):
        def cell(carry, x_t):
            h, c = carry
            gates = x_t @ wih.T + b_ih + h @ whh.T + b_hh
            i_g = jax.nn.sigmoid(gates[:, 0 * H:1 * H])
            f_g = jax.nn.sigmoid(gates[:, 1 * H:2 * H])
            g_g = jnp.tanh(gates[:, 2 * H:3 * H])
            o_g = jax.nn.sigmoid(gates[:, 3 * H:4 * H])
            c_new = f_g * c + i_g * g_g
            h_new = o_g * jnp.tanh(c_new)
            return (h_new, c_new), h_new

        B = xs.shape[1]
        init = (jnp.zeros((B, H), jnp.float32), jnp.zeros((B, H), jnp.float32))
        _, hs = lax.scan(cell, init, xs)
        return hs

    xs = jnp.transpose(x, (1, 0, 2)).astype(jnp.float32)       # (T, B, D_in)
    h0 = layer(xs, params["w_ih_l0"], params["w_hh_l0"],
               params["b_ih_l0"], params["b_hh_l0"])
    h1 = layer(h0, params["w_ih_l1"], params["w_hh_l1"],
               params["b_ih_l1"], params["b_hh_l1"])
    out = h1 @ params["w_fc"].T + params["b_fc"]               # (T, B, O)
    return jnp.transpose(out, (1, 0, 2))


def init_params(key, input_dim=1, hidden_dim=64, output_dim=1):
    """Deterministic init mirroring PyTorch's U(-1/sqrt(H), 1/sqrt(H))."""
    bound = 1.0 / jnp.sqrt(jnp.float32(hidden_dim))
    keys = jax.random.split(key, 10)

    def u(k, shape):
        return jax.random.uniform(k, shape, jnp.float32, -bound, bound)

    return {
        "hidden_dim": hidden_dim,
        "w_ih_l0": u(keys[0], (4 * hidden_dim, input_dim)),
        "w_hh_l0": u(keys[1], (4 * hidden_dim, hidden_dim)),
        "b_ih_l0": u(keys[2], (4 * hidden_dim,)),
        "b_hh_l0": u(keys[3], (4 * hidden_dim,)),
        "w_ih_l1": u(keys[4], (4 * hidden_dim, hidden_dim)),
        "w_hh_l1": u(keys[5], (4 * hidden_dim, hidden_dim)),
        "b_ih_l1": u(keys[6], (4 * hidden_dim,)),
        "b_hh_l1": u(keys[7], (4 * hidden_dim,)),
        "w_fc": u(keys[8], (output_dim, hidden_dim)),
        "b_fc": u(keys[9], (output_dim,)),
    }


if __name__ == "__main__":
    key = jax.random.PRNGKey(0)
    k_param, k_x = jax.random.split(key)

    B, T, D_in, H, O = 2, 8, 1, 64, 1
    params = init_params(k_param, input_dim=D_in, hidden_dim=H, output_dim=O)
    x = jax.random.normal(k_x, (B, T, D_in), jnp.float32)

    out = lstm_model_forward(x, params)
    out = jax.block_until_ready(out)

    ref = jax.block_until_ready(lstm_model_reference(x, params))
    assert out.shape == (B, T, O), out.shape
    assert jnp.allclose(out, ref, atol=3e-5, rtol=3e-5), \
        float(jnp.max(jnp.abs(out - ref)))

    print("KERNEL_OK")
</pallas_src>

<mosaic_0001>
module attributes {stable_mosaic.version = 11 : i64} {
  func.func @lstm_fc_kernel(%arg0: memref<16x1xf32, #tpu.memory_space<vmem>>, %arg1: memref<1x256xf32, #tpu.memory_space<vmem>>, %arg2: memref<1x256xf32, #tpu.memory_space<vmem>>, %arg3: memref<64x256xf32, #tpu.memory_space<vmem>>, %arg4: memref<128x256xf32, #tpu.memory_space<vmem>>, %arg5: memref<1x256xf32, #tpu.memory_space<vmem>>, %arg6: memref<64x1xf32, #tpu.memory_space<vmem>>, %arg7: memref<1x1xf32, #tpu.memory_space<vmem>>, %arg8: memref<16x1xf32, #tpu.memory_space<vmem>>, %arg9: memref<2x128xf32, #tpu.memory_space<vmem>>, %arg10: memref<16x64xf32, #tpu.memory_space<vmem>>) attributes {dimension_semantics = [], scalar_prefetch = 0 : i64, scratch_operands = 2 : i64, tpu.core_type = #tpu.core_type<tc>} {
    %c0 = arith.constant 0 : index
    %c0_0 = arith.constant 0 : index
    %0 = vector.load %arg2[%c0, %c0_0] : memref<1x256xf32, #tpu.memory_space<vmem>>, vector<1x256xf32>
    %c0_1 = arith.constant 0 : index
    %c0_2 = arith.constant 0 : index
    %1 = vector.load %arg0[%c0_1, %c0_2] : memref<16x1xf32, #tpu.memory_space<vmem>>, vector<16x1xf32>
    %c0_3 = arith.constant 0 : index
    %c0_4 = arith.constant 0 : index
    %2 = vector.load %arg1[%c0_3, %c0_4] : memref<1x256xf32, #tpu.memory_space<vmem>>, vector<1x256xf32>
    %3 = vector.broadcast %1 : vector<16x1xf32> to vector<16x256xf32>
    %4 = vector.broadcast %2 : vector<1x256xf32> to vector<16x256xf32>
    %5 = arith.mulf %3, %4 : vector<16x256xf32>
    %6 = vector.broadcast %0 : vector<1x256xf32> to vector<16x256xf32>
    %7 = arith.addf %5, %6 : vector<16x256xf32>
    %cst = arith.constant 0.000000e+00 : f32
    %8 = vector.broadcast %cst : f32 to vector<2x64xf32>
    %cst_5 = arith.constant 0.000000e+00 : f32
    %9 = vector.broadcast %cst_5 : f32 to vector<2x128xf32>
    %c0_6 = arith.constant 0 : index
    %c0_7 = arith.constant 0 : index
    %10 = vector.load %arg9[%c0_6, %c0_7] : memref<2x128xf32, #tpu.memory_space<vmem>>, vector<2x128xf32>
    tpu.vector_store %arg9[%c0_6, %c0_7], %9 {strides = array<i32>} : memref<2x128xf32, #tpu.memory_space<vmem>>, vector<2x128xf32>,
    %11 = vector.extract_strided_slice %7 {offsets = [0, 0], sizes = [2, 256], strides = [1, 1]} : vector<16x256xf32> to vector<2x256xf32>
    %c0_8 = arith.constant 0 : index
    %c0_9 = arith.constant 0 : index
    %12 = vector.load %arg3[%c0_8, %c0_9] : memref<64x256xf32, #tpu.memory_space<vmem>>, vector<64x256xf32>
    %cst_10 = arith.constant dense<0.000000e+00> : vector<2x256xf32>
    %13 = tpu.matmul %8, %12, %cst_10 {dimension_numbers = #tpu.dot_dimension_numbers<[1], [0], [0], [1], [0, 0, 1, 1], [], []>} : vector<2x64xf32>, vector<64x256xf32>, vector<2x256xf32> -> vector<2x256xf32>
    %14 = arith.addf %11, %13 : vector<2x256xf32>
    %15 = arith.negf %14 : vector<2x256xf32>
    %16 = math.exp %15 : vector<2x256xf32>
    %cst_11 = arith.constant 1.000000e+00 : f32
    %17 = vector.broadcast %cst_11 : f32 to vector<2x256xf32>
    %18 = arith.addf %17, %16 : vector<2x256xf32>
    %19 = arith.divf %17, %18 : vector<2x256xf32>
    %20 = math.tanh %14 : vector<2x256xf32>
    %21 = vector.extract_strided_slice %19 {offsets = [0, 0], sizes = [2, 64], strides = [1, 1]} : vector<2x256xf32> to vector<2x64xf32>
    %22 = vector.extract_strided_slice %19 {offsets = [0, 64], sizes = [2, 64], strides = [1, 1]} : vector<2x256xf32> to vector<2x64xf32>
    %23 = vector.extract_strided_slice %20 {offsets = [0, 128], sizes = [2, 64], strides = [1, 1]} : vector<2x256xf32> to vector<2x64xf32>
    %24 = vector.extract_strided_slice %19 {offsets = [0, 192], sizes = [2, 64], strides = [1, 1]} : vector<2x256xf32> to vector<2x64xf32>
    %25 = arith.mulf %22, %8 : vector<2x64xf32>
    %26 = arith.mulf %21, %23 : vector<2x64xf32>
    %27 = arith.addf %25, %26 : vector<2x64xf32>
    %28 = math.tanh %27 : vector<2x64xf32>
    %29 = arith.mulf %24, %28 : vector<2x64xf32>
    %c0_12 = arith.constant 0 : index
    %c0_13 = arith.constant 0 : index
    %30 = vector.load %arg9[%c0_12, %c0_13] : memref<2x128xf32, #tpu.memory_space<vmem>>, vector<2x64xf32>
    tpu.vector_store %arg9[%c0_12, %c0_13], %29 {strides = array<i32>} : memref<2x128xf32, #tpu.memory_space<vmem>>, vector<2x64xf32>,
    %c0_14 = arith.constant 0 : index
    %c0_15 = arith.constant 0 : index
    %31 = vector.load %arg9[%c0_14, %c0_15] : memref<2x128xf32, #tpu.memory_space<vmem>>, vector<2x128xf32>
    %c0_16 = arith.constant 0 : index
    %c0_17 = arith.constant 0 : index
    %32 = vector.load %arg4[%c0_16, %c0_17] : memref<128x256xf32, #tpu.memory_space<vmem>>, vector<128x256xf32>
    %cst_18 = arith.constant dense<0.000000e+00> : vector<2x256xf32>
    %33 = tpu.matmul %31, %32, %cst_18 {dimension_numbers = #tpu.dot_dimension_numbers<[1], [0], [0], [1], [0, 0, 1, 1], [], []>} : vector<2x128xf32>, vector<128x256xf32>, vector<2x256xf32> -> vector<2x256xf32>
    %c0_19 = arith.constant 0 : index
    %c0_20 = arith.constant 0 : index
    %34 = vector.load %arg5[%c0_19, %c0_20] : memref<1x256xf32, #tpu.memory_space<vmem>>, vector<1x256xf32>
    %35 = vector.broadcast %34 : vector<1x256xf32> to vector<2x256xf32>
    %36 = arith.addf %33, %35 : vector<2x256xf32>
    %37 = arith.negf %36 : vector<2x256xf32>
    %38 = math.exp %37 : vector<2x256xf32>
    %cst_21 = arith.constant 1.000000e+00 : f32
    %39 = vector.broadcast %cst_21 : f32 to vector<2x256xf32>
    %40 = arith.addf %39, %38 : vector<2x256xf32>
    %41 = arith.divf %39, %40 : vector<2x256xf32>
    %42 = math.tanh %36 : vector<2x256xf32>
    %43 = vector.extract_strided_slice %41 {offsets = [0, 0], sizes = [2, 64], strides = [1, 1]} : vector<2x256xf32> to vector<2x64xf32>
    %44 = vector.extract_strided_slice %41 {offsets = [0, 64], sizes = [2, 64], strides = [1, 1]} : vector<2x256xf32> to vector<2x64xf32>
    %45 = vector.extract_strided_slice %42 {offsets = [0, 128], sizes = [2, 64], strides = [1, 1]} : vector<2x256xf32> to vector<2x64xf32>
    %46 = vector.extract_strided_slice %41 {offsets = [0, 192], sizes = [2, 64], strides = [1, 1]} : vector<2x256xf32> to vector<2x64xf32>
    %47 = arith.mulf %44, %8 : vector<2x64xf32>
    %48 = arith.mulf %43, %45 : vector<2x64xf32>
    %49 = arith.addf %47, %48 : vector<2x64xf32>
    %50 = math.tanh %49 : vector<2x64xf32>
    %51 = arith.mulf %46, %50 : vector<2x64xf32>
    %c0_22 = arith.constant 0 : index
    %c64 = arith.constant 64 : index
    %52 = vector.load %arg9[%c0_22, %c64] : memref<2x128xf32, #tpu.memory_space<vmem>>, vector<2x64xf32>
    tpu.vector_store %arg9[%c0_22, %c64], %51 {strides = array<i32>} : memref<2x128xf32, #tpu.memory_space<vmem>>, vector<2x64xf32>,
    %c0_23 = arith.constant 0 : index
    %c0_24 = arith.constant 0 : index
    %53 = vector.load %arg10[%c0_23, %c0_24] : memref<16x64xf32, #tpu.memory_space<vmem>>, vector<2x64xf32>
    tpu.vector_store %arg10[%c0_23, %c0_24], %51 {strides = array<i32>} : memref<16x64xf32, #tpu.memory_space<vmem>>, vector<2x64xf32>,
    %54 = vector.extract_strided_slice %7 {offsets = [2, 0], sizes = [2, 256], strides = [1, 1]} : vector<16x256xf32> to vector<2x256xf32>
    %c0_25 = arith.constant 0 : index
    %c0_26 = arith.constant 0 : index
    %55 = vector.load %arg3[%c0_25, %c0_26] : memref<64x256xf32, #tpu.memory_space<vmem>>, vector<64x256xf32>
    %cst_27 = arith.constant dense<0.000000e+00> : vector<2x256xf32>
    %56 = tpu.matmul %29, %55, %cst_27 {dimension_numbers = #tpu.dot_dimension_numbers<[1], [0], [0], [1], [0, 0, 1, 1], [], []>} : vector<2x64xf32>, vector<64x256xf32>, vector<2x256xf32> -> vector<2x256xf32>
    %57 = arith.addf %54, %56 : vector<2x256xf32>
    %58 = arith.negf %57 : vector<2x256xf32>
    %59 = math.exp %58 : vector<2x256xf32>
    %cst_28 = arith.constant 1.000000e+00 : f32
    %60 = vector.broadcast %cst_28 : f32 to vector<2x256xf32>
    %61 = arith.addf %60, %59 : vector<2x256xf32>
    %62 = arith.divf %60, %61 : vector<2x256xf32>
    %63 = math.tanh %57 : vector<2x256xf32>
    %64 = vector.extract_strided_slice %62 {offsets = [0, 0], sizes = [2, 64], strides = [1, 1]} : vector<2x256xf32> to vector<2x64xf32>
    %65 = vector.extract_strided_slice %62 {offsets = [0, 64], sizes = [2, 64], strides = [1, 1]} : vector<2x256xf32> to vector<2x64xf32>
    %66 = vector.extract_strided_slice %63 {offsets = [0, 128], sizes = [2, 64], strides = [1, 1]} : vector<2x256xf32> to vector<2x64xf32>
    %67 = vector.extract_strided_slice %62 {offsets = [0, 192], sizes = [2, 64], strides = [1, 1]} : vector<2x256xf32> to vector<2x64xf32>
    %68 = arith.mulf %65, %27 : vector<2x64xf32>
    %69 = arith.mulf %64, %66 : vector<2x64xf32>
    %70 = arith.addf %68, %69 : vector<2x64xf32>
    %71 = math.tanh %70 : vector<2x64xf32>
    %72 = arith.mulf %67, %71 : vector<2x64xf32>
    %c0_29 = arith.constant 0 : index
    %c0_30 = arith.constant 0 : index
    %73 = vector.load %arg9[%c0_29, %c0_30] : memref<2x128xf32, #tpu.memory_space<vmem>>, vector<2x64xf32>
    tpu.vector_store %arg9[%c0_29, %c0_30], %72 {strides = array<i32>} : memref<2x128xf32, #tpu.memory_space<vmem>>, vector<2x64xf32>,
    %c0_31 = arith.constant 0 : index
    %c0_32 = arith.constant 0 : index
    %74 = vector.load %arg9[%c0_31, %c0_32] : memref<2x128xf32, #tpu.memory_space<vmem>>, vector<2x128xf32>
    %c0_33 = arith.constant 0 : index
    %c0_34 = arith.constant 0 : index
    %75 = vector.load %arg4[%c0_33, %c0_34] : memref<128x256xf32, #tpu.memory_space<vmem>>, vector<128x256xf32>
    %cst_35 = arith.constant dense<0.000000e+00> : vector<2x256xf32>
    %76 = tpu.matmul %74, %75, %cst_35 {dimension_numbers = #tpu.dot_dimension_numbers<[1], [0], [0], [1], [0, 0, 1, 1], [], []>} : vector<2x128xf32>, vector<128x256xf32>, vector<2x256xf32> -> vector<2x256xf32>
    %c0_36 = arith.constant 0 : index
    %c0_37 = arith.constant 0 : index
    %77 = vector.load %arg5[%c0_36, %c0_37] : memref<1x256xf32, #tpu.memory_space<vmem>>, vector<1x256xf32>
    %78 = vector.broadcast %77 : vector<1x256xf32> to vector<2x256xf32>
    %79 = arith.addf %76, %78 : vector<2x256xf32>
    %80 = arith.negf %79 : vector<2x256xf32>
    %81 = math.exp %80 : vector<2x256xf32>
    %cst_38 = arith.constant 1.000000e+00 : f32
    %82 = vector.broadcast %cst_38 : f32 to vector<2x256xf32>
    %83 = arith.addf %82, %81 : vector<2x256xf32>
    %84 = arith.divf %82, %83 : vector<2x256xf32>
    %85 = math.tanh %79 : vector<2x256xf32>
    %86 = vector.extract_strided_slice %84 {offsets = [0, 0], sizes = [2, 64], strides = [1, 1]} : vector<2x256xf32> to vector<2x64xf32>
    %87 = vector.extract_strided_slice %84 {offsets = [0, 64], sizes = [2, 64], strides = [1, 1]} : vector<2x256xf32> to vector<2x64xf32>
    %88 = vector.extract_strided_slice %85 {offsets = [0, 128], sizes = [2, 64], strides = [1, 1]} : vector<2x256xf32> to vector<2x64xf32>
    %89 = vector.extract_strided_slice %84 {offsets = [0, 192], sizes = [2, 64], strides = [1, 1]} : vector<2x256xf32> to vector<2x64xf32>
    %90 = arith.mulf %87, %49 : vector<2x64xf32>
    %91 = arith.mulf %86, %88 : vector<2x64xf32>
    %92 = arith.addf %90, %91 : vector<2x64xf32>
    %93 = math.tanh %92 : vector<2x64xf32>
    %94 = arith.mulf %89, %93 : vector<2x64xf32>
    %c0_39 = arith.constant 0 : index
    %c64_40 = arith.constant 64 : index
    %95 = vector.load %arg9[%c0_39, %c64_40] : memref<2x128xf32, #tpu.memory_space<vmem>>, vector<2x64xf32>
    tpu.vector_store %arg9[%c0_39, %c64_40], %94 {strides = array<i32>} : memref<2x128xf32, #tpu.memory_space<vmem>>, vector<2x64xf32>,
    %c2 = arith.constant 2 : index
    %c0_41 = arith.constant 0 : index
    %96 = vector.load %arg10[%c2, %c0_41] : memref<16x64xf32, #tpu.memory_space<vmem>>, vector<2x64xf32>
    tpu.vector_store %arg10[%c2, %c0_41], %94 {strides = array<i32>} : memref<16x64xf32, #tpu.memory_space<vmem>>, vector<2x64xf32>,
    %97 = vector.extract_strided_slice %7 {offsets = [4, 0], sizes = [2, 256], strides = [1, 1]} : vector<16x256xf32> to vector<2x256xf32>
    %c0_42 = arith.constant 0 : index
    %c0_43 = arith.constant 0 : index
    %98 = vector.load %arg3[%c0_42, %c0_43] : memref<64x256xf32, #tpu.memory_space<vmem>>, vector<64x256xf32>
    %cst_44 = arith.constant dense<0.000000e+00> : vector<2x256xf32>
    %99 = tpu.matmul %72, %98, %cst_44 {dimension_numbers = #tpu.dot_dimension_numbers<[1], [0], [0], [1], [0, 0, 1, 1], [], []>} : vector<2x64xf32>, vector<64x256xf32>, vector<2x256xf32> -> vector<2x256xf32>
    %100 = arith.addf %97, %99 : vector<2x256xf32>
    %101 = arith.negf %100 : vector<2x256xf32>
    %102 = math.exp %101 : vector<2x256xf32>
    %cst_45 = arith.constant 1.000000e+00 : f32
    %103 = vector.broadcast %cst_45 : f32 to vector<2x256xf32>
    %104 = arith.addf %103, %102 : vector<2x256xf32>
    %105 = arith.divf %103, %104 : vector<2x256xf32>
    %106 = math.tanh %100 : vector<2x256xf32>
    %107 = vector.extract_strided_slice %105 {offsets = [0, 0], sizes = [2, 64], strides = [1, 1]} : vector<2x256xf32> to vector<2x64xf32>
    %108 = vector.extract_strided_slice %105 {offsets = [0, 64], sizes = [2, 64], strides = [1, 1]} : vector<2x256xf32> to vector<2x64xf32>
    %109 = vector.extract_strided_slice %106 {offsets = [0, 128], sizes = [2, 64], strides = [1, 1]} : vector<2x256xf32> to vector<2x64xf32>
    %110 = vector.extract_strided_slice %105 {offsets = [0, 192], sizes = [2, 64], strides = [1, 1]} : vector<2x256xf32> to vector<2x64xf32>
    %111 = arith.mulf %108, %70 : vector<2x64xf32>
    %112 = arith.mulf %107, %109 : vector<2x64xf32>
    %113 = arith.addf %111, %112 : vector<2x64xf32>
    %114 = math.tanh %113 : vector<2x64xf32>
    %115 = arith.mulf %110, %114 : vector<2x64xf32>
    %c0_46 = arith.constant 0 : index
    %c0_47 = arith.constant 0 : index
    %116 = vector.load %arg9[%c0_46, %c0_47] : memref<2x128xf32, #tpu.memory_space<vmem>>, vector<2x64xf32>
    tpu.vector_store %arg9[%c0_46, %c0_47], %115 {strides = array<i32>} : memref<2x128xf32, #tpu.memory_space<vmem>>, vector<2x64xf32>,
    %c0_48 = arith.constant 0 : index
    %c0_49 = arith.constant 0 : index
    %117 = vector.load %arg9[%c0_48, %c0_49] : memref<2x128xf32, #tpu.memory_space<vmem>>, vector<2x128xf32>
    %c0_50 = arith.constant 0 : index
    %c0_51 = arith.constant 0 : index
    %118 = vector.load %arg4[%c0_50, %c0_51] : memref<128x256xf32, #tpu.memory_space<vmem>>, vector<128x256xf32>
    %cst_52 = arith.constant dense<0.000000e+00> : vector<2x256xf32>
    %119 = tpu.matmul %117, %118, %cst_52 {dimension_numbers = #tpu.dot_dimension_numbers<[1], [0], [0], [1], [0, 0, 1, 1], [], []>} : vector<2x128xf32>, vector<128x256xf32>, vector<2x256xf32> -> vector<2x256xf32>
    %c0_53 = arith.constant 0 : index
    %c0_54 = arith.constant 0 : index
    %120 = vector.load %arg5[%c0_53, %c0_54] : memref<1x256xf32, #tpu.memory_space<vmem>>, vector<1x256xf32>
    %121 = vector.broadcast %120 : vector<1x256xf32> to vector<2x256xf32>
    %122 = arith.addf %119, %121 : vector<2x256xf32>
    %123 = arith.negf %122 : vector<2x256xf32>
    %124 = math.exp %123 : vector<2x256xf32>
    %cst_55 = arith.constant 1.000000e+00 : f32
    %125 = vector.broadcast %cst_55 : f32 to vector<2x256xf32>
    %126 = arith.addf %125, %124 : vector<2x256xf32>
    %127 = arith.divf %125, %126 : vector<2x256xf32>
    %128 = math.tanh %122 : vector<2x256xf32>
    %129 = vector.extract_strided_slice %127 {offsets = [0, 0], sizes = [2, 64], strides = [1, 1]} : vector<2x256xf32> to vector<2x64xf32>
    %130 = vector.extract_strided_slice %127 {offsets = [0, 64], sizes = [2, 64], strides = [1, 1]} : vector<2x256xf32> to vector<2x64xf32>
    %131 = vector.extract_strided_slice %128 {offsets = [0, 128], sizes = [2, 64], strides = [1, 1]} : vector<2x256xf32> to vector<2x64xf32>
    %132 = vector.extract_strided_slice %127 {offsets = [0, 192], sizes = [2, 64], strides = [1, 1]} : vector<2x256xf32> to vector<2x64xf32>
    %133 = arith.mulf %130, %92 : vector<2x64xf32>
    %134 = arith.mulf %129, %131 : vector<2x64xf32>
    %135 = arith.addf %133, %134 : vector<2x64xf32>
    %136 = math.tanh %135 : vector<2x64xf32>
    %137 = arith.mulf %132, %136 : vector<2x64xf32>
    %c0_56 = arith.constant 0 : index
    %c64_57 = arith.constant 64 : index
    %138 = vector.load %arg9[%c0_56, %c64_57] : memref<2x128xf32, #tpu.memory_space<vmem>>, vector<2x64xf32>
    tpu.vector_store %arg9[%c0_56, %c64_57], %137 {strides = array<i32>} : memref<2x128xf32, #tpu.memory_space<vmem>>, vector<2x64xf32>,
    %c4 = arith.constant 4 : index
    %c0_58 = arith.constant 0 : index
    %139 = vector.load %arg10[%c4, %c0_58] : memref<16x64xf32, #tpu.memory_space<vmem>>, vector<2x64xf32>
    tpu.vector_store %arg10[%c4, %c0_58], %137 {strides = array<i32>} : memref<16x64xf32, #tpu.memory_space<vmem>>, vector<2x64xf32>,
    %140 = vector.extract_strided_slice %7 {offsets = [6, 0], sizes = [2, 256], strides = [1, 1]} : vector<16x256xf32> to vector<2x256xf32>
    %c0_59 = arith.constant 0 : index
    %c0_60 = arith.constant 0 : index
    %141 = vector.load %arg3[%c0_59, %c0_60] : memref<64x256xf32, #tpu.memory_space<vmem>>, vector<64x256xf32>
    %cst_61 = arith.constant dense<0.000000e+00> : vector<2x256xf32>
    %142 = tpu.matmul %115, %141, %cst_61 {dimension_numbers = #tpu.dot_dimension_numbers<[1], [0], [0], [1], [0, 0, 1, 1], [], []>} : vector<2x64xf32>, vector<64x256xf32>, vector<2x256xf32> -> vector<2x256xf32>
    %143 = arith.addf %140, %142 : vector<2x256xf32>
    %144 = arith.negf %143 : vector<2x256xf32>
    %145 = math.exp %144 : vector<2x256xf32>
    %cst_62 = arith.constant 1.000000e+00 : f32
    %146 = vector.broadcast %cst_62 : f32 to vector<2x256xf32>
    %147 = arith.addf %146, %145 : vector<2x256xf32>
    %148 = arith.divf %146, %147 : vector<2x256xf32>
    %149 = math.tanh %143 : vector<2x256xf32>
    %150 = vector.extract_strided_slice %148 {offsets = [0, 0], sizes = [2, 64], strides = [1, 1]} : vector<2x256xf32> to vector<2x64xf32>
    %151 = vector.extract_strided_slice %148 {offsets = [0, 64], sizes = [2, 64], strides = [1, 1]} : vector<2x256xf32> to vector<2x64xf32>
    %152 = vector.extract_strided_slice %149 {offsets = [0, 128], sizes = [2, 64], strides = [1, 1]} : vector<2x256xf32> to vector<2x64xf32>
    %153 = vector.extract_strided_slice %148 {offsets = [0, 192], sizes = [2, 64], strides = [1, 1]} : vector<2x256xf32> to vector<2x64xf32>
    %154 = arith.mulf %151, %113 : vector<2x64xf32>
    %155 = arith.mulf %150, %152 : vector<2x64xf32>
    %156 = arith.addf %154, %155 : vector<2x64xf32>
    %157 = math.tanh %156 : vector<2x64xf32>
    %158 = arith.mulf %153, %157 : vector<2x64xf32>
    %c0_63 = arith.constant 0 : index
    %c0_64 = arith.constant 0 : index
    %159 = vector.load %arg9[%c0_63, %c0_64] : memref<2x128xf32, #tpu.memory_space<vmem>>, vector<2x64xf32>
    tpu.vector_store %arg9[%c0_63, %c0_64], %158 {strides = array<i32>} : memref<2x128xf32, #tpu.memory_space<vmem>>, vector<2x64xf32>,
    %c0_65 = arith.constant 0 : index
    %c0_66 = arith.constant 0 : index
    %160 = vector.load %arg9[%c0_65, %c0_66] : memref<2x128xf32, #tpu.memory_space<vmem>>, vector<2x128xf32>
    %c0_67 = arith.constant 0 : index
    %c0_68 = arith.constant 0 : index
    %161 = vector.load %arg4[%c0_67, %c0_68] : memref<128x256xf32, #tpu.memory_space<vmem>>, vector<128x256xf32>
    %cst_69 = arith.constant dense<0.000000e+00> : vector<2x256xf32>
    %162 = tpu.matmul %160, %161, %cst_69 {dimension_numbers = #tpu.dot_dimension_numbers<[1], [0], [0], [1], [0, 0, 1, 1], [], []>} : vector<2x128xf32>, vector<128x256xf32>, vector<2x256xf32> -> vector<2x256xf32>
    %c0_70 = arith.constant 0 : index
    %c0_71 = arith.constant 0 : index
    %163 = vector.load %arg5[%c0_70, %c0_71] : memref<1x256xf32, #tpu.memory_space<vmem>>, vector<1x256xf32>
    %164 = vector.broadcast %163 : vector<1x256xf32> to vector<2x256xf32>
    %165 = arith.addf %162, %164 : vector<2x256xf32>
    %166 = arith.negf %165 : vector<2x256xf32>
    %167 = math.exp %166 : vector<2x256xf32>
    %cst_72 = arith.constant 1.000000e+00 : f32
    %168 = vector.broadcast %cst_72 : f32 to vector<2x256xf32>
    %169 = arith.addf %168, %167 : vector<2x256xf32>
    %170 = arith.divf %168, %169 : vector<2x256xf32>
    %171 = math.tanh %165 : vector<2x256xf32>
    %172 = vector.extract_strided_slice %170 {offsets = [0, 0], sizes = [2, 64], strides = [1, 1]} : vector<2x256xf32> to vector<2x64xf32>
    %173 = vector.extract_strided_slice %170 {offsets = [0, 64], sizes = [2, 64], strides = [1, 1]} : vector<2x256xf32> to vector<2x64xf32>
    %174 = vector.extract_strided_slice %171 {offsets = [0, 128], sizes = [2, 64], strides = [1, 1]} : vector<2x256xf32> to vector<2x64xf32>
    %175 = vector.extract_strided_slice %170 {offsets = [0, 192], sizes = [2, 64], strides = [1, 1]} : vector<2x256xf32> to vector<2x64xf32>
    %176 = arith.mulf %173, %135 : vector<2x64xf32>
    %177 = arith.mulf %172, %174 : vector<2x64xf32>
    %178 = arith.addf %176, %177 : vector<2x64xf32>
    %179 = math.tanh %178 : vector<2x64xf32>
    %180 = arith.mulf %175, %179 : vector<2x64xf32>
    %c0_73 = arith.constant 0 : index
    %c64_74 = arith.constant 64 : index
    %181 = vector.load %arg9[%c0_73, %c64_74] : memref<2x128xf32, #tpu.memory_space<vmem>>, vector<2x64xf32>
    tpu.vector_store %arg9[%c0_73, %c64_74], %180 {strides = array<i32>} : memref<2x128xf32, #tpu.memory_space<vmem>>, vector<2x64xf32>,
    %c6 = arith.constant 6 : index
    %c0_75 = arith.constant 0 : index
    %182 = vector.load %arg10[%c6, %c0_75] : memref<16x64xf32, #tpu.memory_space<vmem>>, vector<2x64xf32>
    tpu.vector_store %arg10[%c6, %c0_75], %180 {strides = array<i32>} : memref<16x64xf32, #tpu.memory_space<vmem>>, vector<2x64xf32>,
    %183 = vector.extract_strided_slice %7 {offsets = [8, 0], sizes = [2, 256], strides = [1, 1]} : vector<16x256xf32> to vector<2x256xf32>
    %c0_76 = arith.constant 0 : index
    %c0_77 = arith.constant 0 : index
    %184 = vector.load %arg3[%c0_76, %c0_77] : memref<64x256xf32, #tpu.memory_space<vmem>>, vector<64x256xf32>
    %cst_78 = arith.constant dense<0.000000e+00> : vector<2x256xf32>
    %185 = tpu.matmul %158, %184, %cst_78 {dimension_numbers = #tpu.dot_dimension_numbers<[1], [0], [0], [1], [0, 0, 1, 1], [], []>} : vector<2x64xf32>, vector<64x256xf32>, vector<2x256xf32> -> vector<2x256xf32>
    %186 = arith.addf %183, %185 : vector<2x256xf32>
    %187 = arith.negf %186 : vector<2x256xf32>
    %188 = math.exp %187 : vector<2x256xf32>
    %cst_79 = arith.constant 1.000000e+00 : f32
    %189 = vector.broadcast %cst_79 : f32 to vector<2x256xf32>
    %190 = arith.addf %189, %188 : vector<2x256xf32>
    %191 = arith.divf %189, %190 : vector<2x256xf32>
    %192 = math.tanh %186 : vector<2x256xf32>
    %193 = vector.extract_strided_slice %191 {offsets = [0, 0], sizes = [2, 64], strides = [1, 1]} : vector<2x256xf32> to vector<2x64xf32>
    %194 = vector.extract_strided_slice %191 {offsets = [0, 64], sizes = [2, 64], strides = [1, 1]} : vector<2x256xf32> to vector<2x64xf32>
    %195 = vector.extract_strided_slice %192 {offsets = [0, 128], sizes = [2, 64], strides = [1, 1]} : vector<2x256xf32> to vector<2x64xf32>
    %196 = vector.extract_strided_slice %191 {offsets = [0, 192], sizes = [2, 64], strides = [1, 1]} : vector<2x256xf32> to vector<2x64xf32>
    %197 = arith.mulf %194, %156 : vector<2x64xf32>
    %198 = arith.mulf %193, %195 : vector<2x64xf32>
    %199 = arith.addf %197, %198 : vector<2x64xf32>
    %200 = math.tanh %199 : vector<2x64xf32>
    %201 = arith.mulf %196, %200 : vector<2x64xf32>
    %c0_80 = arith.constant 0 : index
    %c0_81 = arith.constant 0 : index
    %202 = vector.load %arg9[%c0_80, %c0_81] : memref<2x128xf32, #tpu.memory_space<vmem>>, vector<2x64xf32>
    tpu.vector_store %arg9[%c0_80, %c0_81], %201 {strides = array<i32>} : memref<2x128xf32, #tpu.memory_space<vmem>>, vector<2x64xf32>,
    %c0_82 = arith.constant 0 : index
    %c0_83 = arith.constant 0 : index
    %203 = vector.load %arg9[%c0_82, %c0_83] : memref<2x128xf32, #tpu.memory_space<vmem>>, vector<2x128xf32>
    %c0_84 = arith.constant 0 : index
    %c0_85 = arith.constant 0 : index
    %204 = vector.load %arg4[%c0_84, %c0_85] : memref<128x256xf32, #tpu.memory_space<vmem>>, vector<128x256xf32>
    %cst_86 = arith.constant dense<0.000000e+00> : vector<2x256xf32>
    %205 = tpu.matmul %203, %204, %cst_86 {dimension_numbers = #tpu.dot_dimension_numbers<[1], [0], [0], [1], [0, 0, 1, 1], [], []>} : vector<2x128xf32>, vector<128x256xf32>, vector<2x256xf32> -> vector<2x256xf32>
    %c0_87 = arith.constant 0 : index
    %c0_88 = arith.constant 0 : index
    %206 = vector.load %arg5[%c0_87, %c0_88] : memref<1x256xf32, #tpu.memory_space<vmem>>, vector<1x256xf32>
    %207 = vector.broadcast %206 : vector<1x256xf32> to vector<2x256xf32>
    %208 = arith.addf %205, %207 : vector<2x256xf32>
    %209 = arith.negf %208 : vector<2x256xf32>
    %210 = math.exp %209 : vector<2x256xf32>
    %cst_89 = arith.constant 1.000000e+00 : f32
    %211 = vector.broadcast %cst_89 : f32 to vector<2x256xf32>
    %212 = arith.addf %211, %210 : vector<2x256xf32>
    %213 = arith.divf %211, %212 : vector<2x256xf32>
    %214 = math.tanh %208 : vector<2x256xf32>
    %215 = vector.extract_strided_slice %213 {offsets = [0, 0], sizes = [2, 64], strides = [1, 1]} : vector<2x256xf32> to vector<2x64xf32>
    %216 = vector.extract_strided_slice %213 {offsets = [0, 64], sizes = [2, 64], strides = [1, 1]} : vector<2x256xf32> to vector<2x64xf32>
    %217 = vector.extract_strided_slice %214 {offsets = [0, 128], sizes = [2, 64], strides = [1, 1]} : vector<2x256xf32> to vector<2x64xf32>
    %218 = vector.extract_strided_slice %213 {offsets = [0, 192], sizes = [2, 64], strides = [1, 1]} : vector<2x256xf32> to vector<2x64xf32>
    %219 = arith.mulf %216, %178 : vector<2x64xf32>
    %220 = arith.mulf %215, %217 : vector<2x64xf32>
    %221 = arith.addf %219, %220 : vector<2x64xf32>
    %222 = math.tanh %221 : vector<2x64xf32>
    %223 = arith.mulf %218, %222 : vector<2x64xf32>
    %c0_90 = arith.constant 0 : index
    %c64_91 = arith.constant 64 : index
    %224 = vector.load %arg9[%c0_90, %c64_91] : memref<2x128xf32, #tpu.memory_space<vmem>>, vector<2x64xf32>
    tpu.vector_store %arg9[%c0_90, %c64_91], %223 {strides = array<i32>} : memref<2x128xf32, #tpu.memory_space<vmem>>, vector<2x64xf32>,
    %c8 = arith.constant 8 : index
    %c0_92 = arith.constant 0 : index
    %225 = vector.load %arg10[%c8, %c0_92] : memref<16x64xf32, #tpu.memory_space<vmem>>, vector<2x64xf32>
    tpu.vector_store %arg10[%c8, %c0_92], %223 {strides = array<i32>} : memref<16x64xf32, #tpu.memory_space<vmem>>, vector<2x64xf32>,
    %226 = vector.extract_strided_slice %7 {offsets = [10, 0], sizes = [2, 256], strides = [1, 1]} : vector<16x256xf32> to vector<2x256xf32>
    %c0_93 = arith.constant 0 : index
    %c0_94 = arith.constant 0 : index
    %227 = vector.load %arg3[%c0_93, %c0_94] : memref<64x256xf32, #tpu.memory_space<vmem>>, vector<64x256xf32>
    %cst_95 = arith.constant dense<0.000000e+00> : vector<2x256xf32>
    %228 = tpu.matmul %201, %227, %cst_95 {dimension_numbers = #tpu.dot_dimension_numbers<[1], [0], [0], [1], [0, 0, 1, 1], [], []>} : vector<2x64xf32>, vector<64x256xf32>, vector<2x256xf32> -> vector<2x256xf32>
    %229 = arith.addf %226, %228 : vector<2x256xf32>
    %230 = arith.negf %229 : vector<2x256xf32>
    %231 = math.exp %230 : vector<2x256xf32>
    %cst_96 = arith.constant 1.000000e+00 : f32
    %232 = vector.broadcast %cst_96 : f32 to vector<2x256xf32>
    %233 = arith.addf %232, %231 : vector<2x256xf32>
    %234 = arith.divf %232, %233 : vector<2x256xf32>
    %235 = math.tanh %229 : vector<2x256xf32>
    %236 = vector.extract_strided_slice %234 {offsets = [0, 0], sizes = [2, 64], strides = [1, 1]} : vector<2x256xf32> to vector<2x64xf32>
    %237 = vector.extract_strided_slice %234 {offsets = [0, 64], sizes = [2, 64], strides = [1, 1]} : vector<2x256xf32> to vector<2x64xf32>
    %238 = vector.extract_strided_slice %235 {offsets = [0, 128], sizes = [2, 64], strides = [1, 1]} : vector<2x256xf32> to vector<2x64xf32>
    %239 = vector.extract_strided_slice %234 {offsets = [0, 192], sizes = [2, 64], strides = [1, 1]} : vector<2x256xf32> to vector<2x64xf32>
    %240 = arith.mulf %237, %199 : vector<2x64xf32>
    %241 = arith.mulf %236, %238 : vector<2x64xf32>
    %242 = arith.addf %240, %241 : vector<2x64xf32>
    %243 = math.tanh %242 : vector<2x64xf32>
    %244 = arith.mulf %239, %243 : vector<2x64xf32>
    %c0_97 = arith.constant 0 : index
    %c0_98 = arith.constant 0 : index
    %245 = vector.load %arg9[%c0_97, %c0_98] : memref<2x128xf32, #tpu.memory_space<vmem>>, vector<2x64xf32>
    tpu.vector_store %arg9[%c0_97, %c0_98], %244 {strides = array<i32>} : memref<2x128xf32, #tpu.memory_space<vmem>>, vector<2x64xf32>,
    %c0_99 = arith.constant 0 : index
    %c0_100 = arith.constant 0 : index
    %246 = vector.load %arg9[%c0_99, %c0_100] : memref<2x128xf32, #tpu.memory_space<vmem>>, vector<2x128xf32>
    %c0_101 = arith.constant 0 : index
    %c0_102 = arith.constant 0 : index
    %247 = vector.load %arg4[%c0_101, %c0_102] : memref<128x256xf32, #tpu.memory_space<vmem>>, vector<128x256xf32>
    %cst_103 = arith.constant dense<0.000000e+00> : vector<2x256xf32>
    %248 = tpu.matmul %246, %247, %cst_103 {dimension_numbers = #tpu.dot_dimension_numbers<[1], [0], [0], [1], [0, 0, 1, 1], [], []>} : vector<2x128xf32>, vector<128x256xf32>, vector<2x256xf32> -> vector<2x256xf32>
    %c0_104 = arith.constant 0 : index
    %c0_105 = arith.constant 0 : index
    %249 = vector.load %arg5[%c0_104, %c0_105] : memref<1x256xf32, #tpu.memory_space<vmem>>, vector<1x256xf32>
    %250 = vector.broadcast %249 : vector<1x256xf32> to vector<2x256xf32>
    %251 = arith.addf %248, %250 : vector<2x256xf32>
    %252 = arith.negf %251 : vector<2x256xf32>
    %253 = math.exp %252 : vector<2x256xf32>
    %cst_106 = arith.constant 1.000000e+00 : f32
    %254 = vector.broadcast %cst_106 : f32 to vector<2x256xf32>
    %255 = arith.addf %254, %253 : vector<2x256xf32>
    %256 = arith.divf %254, %255 : vector<2x256xf32>
    %257 = math.tanh %251 : vector<2x256xf32>
    %258 = vector.extract_strided_slice %256 {offsets = [0, 0], sizes = [2, 64], strides = [1, 1]} : vector<2x256xf32> to vector<2x64xf32>
    %259 = vector.extract_strided_slice %256 {offsets = [0, 64], sizes = [2, 64], strides = [1, 1]} : vector<2x256xf32> to vector<2x64xf32>
    %260 = vector.extract_strided_slice %257 {offsets = [0, 128], sizes = [2, 64], strides = [1, 1]} : vector<2x256xf32> to vector<2x64xf32>
    %261 = vector.extract_strided_slice %256 {offsets = [0, 192], sizes = [2, 64], strides = [1, 1]} : vector<2x256xf32> to vector<2x64xf32>
    %262 = arith.mulf %259, %221 : vector<2x64xf32>
    %263 = arith.mulf %258, %260 : vector<2x64xf32>
    %264 = arith.addf %262, %263 : vector<2x64xf32>
    %265 = math.tanh %264 : vector<2x64xf32>
    %266 = arith.mulf %261, %265 : vector<2x64xf32>
    %c0_107 = arith.constant 0 : index
    %c64_108 = arith.constant 64 : index
    %267 = vector.load %arg9[%c0_107, %c64_108] : memref<2x128xf32, #tpu.memory_space<vmem>>, vector<2x64xf32>
    tpu.vector_store %arg9[%c0_107, %c64_108], %266 {strides = array<i32>} : memref<2x128xf32, #tpu.memory_space<vmem>>, vector<2x64xf32>,
    %c10 = arith.constant 10 : index
    %c0_109 = arith.constant 0 : index
    %268 = vector.load %arg10[%c10, %c0_109] : memref<16x64xf32, #tpu.memory_space<vmem>>, vector<2x64xf32>
    tpu.vector_store %arg10[%c10, %c0_109], %266 {strides = array<i32>} : memref<16x64xf32, #tpu.memory_space<vmem>>, vector<2x64xf32>,
    %269 = vector.extract_strided_slice %7 {offsets = [12, 0], sizes = [2, 256], strides = [1, 1]} : vector<16x256xf32> to vector<2x256xf32>
    %c0_110 = arith.constant 0 : index
    %c0_111 = arith.constant 0 : index
    %270 = vector.load %arg3[%c0_110, %c0_111] : memref<64x256xf32, #tpu.memory_space<vmem>>, vector<64x256xf32>
    %cst_112 = arith.constant dense<0.000000e+00> : vector<2x256xf32>
    %271 = tpu.matmul %244, %270, %cst_112 {dimension_numbers = #tpu.dot_dimension_numbers<[1], [0], [0], [1], [0, 0, 1, 1], [], []>} : vector<2x64xf32>, vector<64x256xf32>, vector<2x256xf32> -> vector<2x256xf32>
    %272 = arith.addf %269, %271 : vector<2x256xf32>
    %273 = arith.negf %272 : vector<2x256xf32>
    %274 = math.exp %273 : vector<2x256xf32>
    %cst_113 = arith.constant 1.000000e+00 : f32
    %275 = vector.broadcast %cst_113 : f32 to vector<2x256xf32>
    %276 = arith.addf %275, %274 : vector<2x256xf32>
    %277 = arith.divf %275, %276 : vector<2x256xf32>
    %278 = math.tanh %272 : vector<2x256xf32>
    %279 = vector.extract_strided_slice %277 {offsets = [0, 0], sizes = [2, 64], strides = [1, 1]} : vector<2x256xf32> to vector<2x64xf32>
    %280 = vector.extract_strided_slice %277 {offsets = [0, 64], sizes = [2, 64], strides = [1, 1]} : vector<2x256xf32> to vector<2x64xf32>
    %281 = vector.extract_strided_slice %278 {offsets = [0, 128], sizes = [2, 64], strides = [1, 1]} : vector<2x256xf32> to vector<2x64xf32>
    %282 = vector.extract_strided_slice %277 {offsets = [0, 192], sizes = [2, 64], strides = [1, 1]} : vector<2x256xf32> to vector<2x64xf32>
    %283 = arith.mulf %280, %242 : vector<2x64xf32>
    %284 = arith.mulf %279, %281 : vector<2x64xf32>
    %285 = arith.addf %283, %284 : vector<2x64xf32>
    %286 = math.tanh %285 : vector<2x64xf32>
    %287 = arith.mulf %282, %286 : vector<2x64xf32>
    %c0_114 = arith.constant 0 : index
    %c0_115 = arith.constant 0 : index
    %288 = vector.load %arg9[%c0_114, %c0_115] : memref<2x128xf32, #tpu.memory_space<vmem>>, vector<2x64xf32>
    tpu.vector_store %arg9[%c0_114, %c0_115], %287 {strides = array<i32>} : memref<2x128xf32, #tpu.memory_space<vmem>>, vector<2x64xf32>,
    %c0_116 = arith.constant 0 : index
    %c0_117 = arith.constant 0 : index
    %289 = vector.load %arg9[%c0_116, %c0_117] : memref<2x128xf32, #tpu.memory_space<vmem>>, vector<2x128xf32>
    %c0_118 = arith.constant 0 : index
    %c0_119 = arith.constant 0 : index
    %290 = vector.load %arg4[%c0_118, %c0_119] : memref<128x256xf32, #tpu.memory_space<vmem>>, vector<128x256xf32>
    %cst_120 = arith.constant dense<0.000000e+00> : vector<2x256xf32>
    %291 = tpu.matmul %289, %290, %cst_120 {dimension_numbers = #tpu.dot_dimension_numbers<[1], [0], [0], [1], [0, 0, 1, 1], [], []>} : vector<2x128xf32>, vector<128x256xf32>, vector<2x256xf32> -> vector<2x256xf32>
    %c0_121 = arith.constant 0 : index
    %c0_122 = arith.constant 0 : index
    %292 = vector.load %arg5[%c0_121, %c0_122] : memref<1x256xf32, #tpu.memory_space<vmem>>, vector<1x256xf32>
    %293 = vector.broadcast %292 : vector<1x256xf32> to vector<2x256xf32>
    %294 = arith.addf %291, %293 : vector<2x256xf32>
    %295 = arith.negf %294 : vector<2x256xf32>
    %296 = math.exp %295 : vector<2x256xf32>
    %cst_123 = arith.constant 1.000000e+00 : f32
    %297 = vector.broadcast %cst_123 : f32 to vector<2x256xf32>
    %298 = arith.addf %297, %296 : vector<2x256xf32>
    %299 = arith.divf %297, %298 : vector<2x256xf32>
    %300 = math.tanh %294 : vector<2x256xf32>
    %301 = vector.extract_strided_slice %299 {offsets = [0, 0], sizes = [2, 64], strides = [1, 1]} : vector<2x256xf32> to vector<2x64xf32>
    %302 = vector.extract_strided_slice %299 {offsets = [0, 64], sizes = [2, 64], strides = [1, 1]} : vector<2x256xf32> to vector<2x64xf32>
    %303 = vector.extract_strided_slice %300 {offsets = [0, 128], sizes = [2, 64], strides = [1, 1]} : vector<2x256xf32> to vector<2x64xf32>
    %304 = vector.extract_strided_slice %299 {offsets = [0, 192], sizes = [2, 64], strides = [1, 1]} : vector<2x256xf32> to vector<2x64xf32>
    %305 = arith.mulf %302, %264 : vector<2x64xf32>
    %306 = arith.mulf %301, %303 : vector<2x64xf32>
    %307 = arith.addf %305, %306 : vector<2x64xf32>
    %308 = math.tanh %307 : vector<2x64xf32>
    %309 = arith.mulf %304, %308 : vector<2x64xf32>
    %c0_124 = arith.constant 0 : index
    %c64_125 = arith.constant 64 : index
    %310 = vector.load %arg9[%c0_124, %c64_125] : memref<2x128xf32, #tpu.memory_space<vmem>>, vector<2x64xf32>
    tpu.vector_store %arg9[%c0_124, %c64_125], %309 {strides = array<i32>} : memref<2x128xf32, #tpu.memory_space<vmem>>, vector<2x64xf32>,
    %c12 = arith.constant 12 : index
    %c0_126 = arith.constant 0 : index
    %311 = vector.load %arg10[%c12, %c0_126] : memref<16x64xf32, #tpu.memory_space<vmem>>, vector<2x64xf32>
    tpu.vector_store %arg10[%c12, %c0_126], %309 {strides = array<i32>} : memref<16x64xf32, #tpu.memory_space<vmem>>, vector<2x64xf32>,
    %312 = vector.extract_strided_slice %7 {offsets = [14, 0], sizes = [2, 256], strides = [1, 1]} : vector<16x256xf32> to vector<2x256xf32>
    %c0_127 = arith.constant 0 : index
    %c0_128 = arith.constant 0 : index
    %313 = vector.load %arg3[%c0_127, %c0_128] : memref<64x256xf32, #tpu.memory_space<vmem>>, vector<64x256xf32>
    %cst_129 = arith.constant dense<0.000000e+00> : vector<2x256xf32>
    %314 = tpu.matmul %287, %313, %cst_129 {dimension_numbers = #tpu.dot_dimension_numbers<[1], [0], [0], [1], [0, 0, 1, 1], [], []>} : vector<2x64xf32>, vector<64x256xf32>, vector<2x256xf32> -> vector<2x256xf32>
    %315 = arith.addf %312, %314 : vector<2x256xf32>
    %316 = arith.negf %315 : vector<2x256xf32>
    %317 = math.exp %316 : vector<2x256xf32>
    %cst_130 = arith.constant 1.000000e+00 : f32
    %318 = vector.broadcast %cst_130 : f32 to vector<2x256xf32>
    %319 = arith.addf %318, %317 : vector<2x256xf32>
    %320 = arith.divf %318, %319 : vector<2x256xf32>
    %321 = math.tanh %315 : vector<2x256xf32>
    %322 = vector.extract_strided_slice %320 {offsets = [0, 0], sizes = [2, 64], strides = [1, 1]} : vector<2x256xf32> to vector<2x64xf32>
    %323 = vector.extract_strided_slice %320 {offsets = [0, 64], sizes = [2, 64], strides = [1, 1]} : vector<2x256xf32> to vector<2x64xf32>
    %324 = vector.extract_strided_slice %321 {offsets = [0, 128], sizes = [2, 64], strides = [1, 1]} : vector<2x256xf32> to vector<2x64xf32>
    %325 = vector.extract_strided_slice %320 {offsets = [0, 192], sizes = [2, 64], strides = [1, 1]} : vector<2x256xf32> to vector<2x64xf32>
    %326 = arith.mulf %323, %285 : vector<2x64xf32>
    %327 = arith.mulf %322, %324 : vector<2x64xf32>
    %328 = arith.addf %326, %327 : vector<2x64xf32>
    %329 = math.tanh %328 : vector<2x64xf32>
    %330 = arith.mulf %325, %329 : vector<2x64xf32>
    %c0_131 = arith.constant 0 : index
    %c0_132 = arith.constant 0 : index
    %331 = vector.load %arg9[%c0_131, %c0_132] : memref<2x128xf32, #tpu.memory_space<vmem>>, vector<2x64xf32>
    tpu.vector_store %arg9[%c0_131, %c0_132], %330 {strides = array<i32>} : memref<2x128xf32, #tpu.memory_space<vmem>>, vector<2x64xf32>,
    %c0_133 = arith.constant 0 : index
    %c0_134 = arith.constant 0 : index
    %332 = vector.load %arg9[%c0_133, %c0_134] : memref<2x128xf32, #tpu.memory_space<vmem>>, vector<2x128xf32>
    %c0_135 = arith.constant 0 : index
    %c0_136 = arith.constant 0 : index
    %333 = vector.load %arg4[%c0_135, %c0_136] : memref<128x256xf32, #tpu.memory_space<vmem>>, vector<128x256xf32>
    %cst_137 = arith.constant dense<0.000000e+00> : vector<2x256xf32>
    %334 = tpu.matmul %332, %333, %cst_137 {dimension_numbers = #tpu.dot_dimension_numbers<[1], [0], [0], [1], [0, 0, 1, 1], [], []>} : vector<2x128xf32>, vector<128x256xf32>, vector<2x256xf32> -> vector<2x256xf32>
    %c0_138 = arith.constant 0 : index
    %c0_139 = arith.constant 0 : index
    %335 = vector.load %arg5[%c0_138, %c0_139] : memref<1x256xf32, #tpu.memory_space<vmem>>, vector<1x256xf32>
    %336 = vector.broadcast %335 : vector<1x256xf32> to vector<2x256xf32>
    %337 = arith.addf %334, %336 : vector<2x256xf32>
    %338 = arith.negf %337 : vector<2x256xf32>
    %339 = math.exp %338 : vector<2x256xf32>
    %cst_140 = arith.constant 1.000000e+00 : f32
    %340 = vector.broadcast %cst_140 : f32 to vector<2x256xf32>
    %341 = arith.addf %340, %339 : vector<2x256xf32>
    %342 = arith.divf %340, %341 : vector<2x256xf32>
    %343 = math.tanh %337 : vector<2x256xf32>
    %344 = vector.extract_strided_slice %342 {offsets = [0, 0], sizes = [2, 64], strides = [1, 1]} : vector<2x256xf32> to vector<2x64xf32>
    %345 = vector.extract_strided_slice %342 {offsets = [0, 64], sizes = [2, 64], strides = [1, 1]} : vector<2x256xf32> to vector<2x64xf32>
    %346 = vector.extract_strided_slice %343 {offsets = [0, 128], sizes = [2, 64], strides = [1, 1]} : vector<2x256xf32> to vector<2x64xf32>
    %347 = vector.extract_strided_slice %342 {offsets = [0, 192], sizes = [2, 64], strides = [1, 1]} : vector<2x256xf32> to vector<2x64xf32>
    %348 = arith.mulf %345, %307 : vector<2x64xf32>
    %349 = arith.mulf %344, %346 : vector<2x64xf32>
    %350 = arith.addf %348, %349 : vector<2x64xf32>
    %351 = math.tanh %350 : vector<2x64xf32>
    %352 = arith.mulf %347, %351 : vector<2x64xf32>
    %c0_141 = arith.constant 0 : index
    %c64_142 = arith.constant 64 : index
    %353 = vector.load %arg9[%c0_141, %c64_142] : memref<2x128xf32, #tpu.memory_space<vmem>>, vector<2x64xf32>
    tpu.vector_store %arg9[%c0_141, %c64_142], %352 {strides = array<i32>} : memref<2x128xf32, #tpu.memory_space<vmem>>, vector<2x64xf32>,
    %c14 = arith.constant 14 : index
    %c0_143 = arith.constant 0 : index
    %354 = vector.load %arg10[%c14, %c0_143] : memref<16x64xf32, #tpu.memory_space<vmem>>, vector<2x64xf32>
    tpu.vector_store %arg10[%c14, %c0_143], %352 {strides = array<i32>} : memref<16x64xf32, #tpu.memory_space<vmem>>, vector<2x64xf32>,
    %c0_144 = arith.constant 0 : index
    %c0_145 = arith.constant 0 : index
    %355 = vector.load %arg10[%c0_144, %c0_145] : memref<16x64xf32, #tpu.memory_space<vmem>>, vector<16x64xf32>
    %c0_146 = arith.constant 0 : index
    %c0_147 = arith.constant 0 : index
    %356 = vector.load %arg6[%c0_146, %c0_147] : memref<64x1xf32, #tpu.memory_space<vmem>>, vector<64x1xf32>
    %cst_148 = arith.constant dense<0.000000e+00> : vector<16x1xf32>
    %357 = tpu.matmul %355, %356, %cst_148 {dimension_numbers = #tpu.dot_dimension_numbers<[1], [0], [0], [1], [0, 0, 1, 1], [], []>} : vector<16x64xf32>, vector<64x1xf32>, vector<16x1xf32> -> vector<16x1xf32>
    %c0_149 = arith.constant 0 : index
    %c0_150 = arith.constant 0 : index
    %358 = vector.load %arg7[%c0_149, %c0_150] : memref<1x1xf32, #tpu.memory_space<vmem>>, vector<1x1xf32>
    %359 = vector.broadcast %358 : vector<1x1xf32> to vector<16x1xf32>
    %360 = arith.addf %357, %359 : vector<16x1xf32>
    %c0_151 = arith.constant 0 : index
    %c0_152 = arith.constant 0 : index
    %361 = vector.load %arg8[%c0_151, %c0_152] : memref<16x1xf32, #tpu.memory_space<vmem>>, vector<16x1xf32>
    tpu.vector_store %arg8[%c0_151, %c0_152], %360 {strides = array<i32>} : memref<16x1xf32, #tpu.memory_space<vmem>>, vector<16x1xf32>,
    return
  }
}

</mosaic_0001>

<bundles_post_ra>
// kernel: tpu_custom_call.1
= control target key start
LH: loop header
LB: loop body
LE: loop exit
PB: predicated region body
PF: predicated region fallthrough
CT: control target
= control target key end

     0   :  { %s3401_s0 = inlined_call_operand.vmem [shape: f32[16,1], index: 0, kind: input, shape index: {}]   ;;  %s3402_s1 = inlined_call_operand.vmem [shape: f32[1,256], index: 1, kind: input, shape index: {}]   ;;  %s3403_s2 = inlined_call_operand.vmem [shape: f32[1,256], index: 2, kind: input, shape index: {}]   ;;  %s3404_s3 = inlined_call_operand.hbm [shape: f32[64,256], index: 3, kind: input, shape index: {}]   ;;  %s3405_s4 = inlined_call_operand.hbm [shape: f32[128,256], index: 4, kind: input, shape index: {}]   ;;  %s3406_s5 = inlined_call_operand.vmem [shape: f32[1,256], index: 5, kind: input, shape index: {}]   ;;  %s3407_s6 = inlined_call_operand.vmem [shape: f32[64,1], index: 6, kind: input, shape index: {}]   ;;  %s3408_s7 = inlined_call_operand.<no memory space> [shape: f32[1,1], index: 7, kind: input, shape index: {}]   ;;  %s3409_s8 = inlined_call_operand.vmem [shape: f32[16,1], index: 8, kind: output, shape index: {}]  }
   0x1   :  { %v13_v0 = vstv %s3408_s7 }
   0x2   :  { %14 = vst [vmem:[#allocation4] sm:$0x1] %v13_v0 }
   0x3   :  { %15 = vsyncpa [#allocation6], 0  ;;  %s27_s9 = sshll.u32 %s3404_s3, 4  ;;  %s28_s9 = int_to_ptr.hbm [resolvable:$true] %s27_s9 }
   0x4   :  { %16 = vsyncpa [#allocation8], 0  ;;  %s2497_s10 = smov [#allocation5]   ;;  %s40_s14 = sshll.u32 %s3405_s4, 4  ;;  %s41_s14 = int_to_ptr.hbm [resolvable:$true] %s40_s14 }
   0x5   :  { %s29_s11 = sshll.u32 %s2497_s10, 4  ;;  %s2498_s15 = smov 256   ;;  %s30_s11 = int_to_ptr.vmem [resolvable:$true] %s29_s11 }
   0x6   :  { %s2499_s16 = smov 16   ;;  %s2500_s7 = smov [#allocation7]  }
   0x7   :  { %35 = dma.hbm_to_vmem [thread:$0]  %s28_s9, 2048, %s30_s11, [#allocation6], %s2498_s15, %s2498_s15, %s2499_s16  }
   0x8   :  { %s42_s17 = sshll.u32 %s2500_s7, 4  ;;  %s43_s17 = int_to_ptr.vmem [resolvable:$true] %s42_s17 }
   0x9   :  { %48 = dma.hbm_to_vmem [thread:$0]  %s41_s14, 4096, %s43_s17, [#allocation8], %s2498_s15, %s2498_s15, %s2499_s16  }
   0xa   :  { %2493 = dma.done.wait [#allocation6], 2048  }
   0xb   :  { %2494 = vsyncadd [#allocation6], 4294965248 }
   0xc   :  { %2495 = dma.done.wait [#allocation8], 4096  }
   0xd   :  { %2496 = vsyncadd [#allocation8], 4294963200  ;;  %v2501_v1 = vmov 0.0   ;;  %v2502_v2 = vmov 0   ;;  %v2558_v3 = vld [vmem:[#allocation5 + $0x70] sm:$0xff]  ;;  %v2560_v4 = vld [vmem:[#allocation5 + $0x78] sm:$0xff] }
   0xe   :  { %95 = vst [vmem:[#allocation2] sm:$0x3] %v2501_v1  ;;  %2250 = vset.pattern.permute.xlu0 %v2502_v2  ;;  %2251 = vset.pattern.permute.xlu2 %v2502_v2  ;;  %v2562_v5 = vld [vmem:[#allocation5 + $0x60] sm:$0xff]  ;;  %v2566_v6 = vld [vmem:[#allocation5 + $0x68] sm:$0xff]  ;;  %v2568_v7 = vld [vmem:[#allocation5 + $0x50] sm:$0xff]  ;;  %vm210_vm8 = vcmask 517120  }
   0xf   :  { %124 = vmatpush.msra.mxu3 %v2558_v3  ;;  %144 = vmatpush.msra.mxu1 %v2560_v4  ;;  %v2570_v8 = vld [vmem:[#allocation5 + $0x58] sm:$0xff]  ;;  %v2575_v9 = vld [vmem:[#allocation5 + $0x40] sm:$0xff]  ;;  %v2577_v10 = vld [vmem:[#allocation5 + $0x48] sm:$0xff]  ;;  %vm112_vm9 = vcmask 523264  }
  0x10   :  { %372 = vmatpush.msra.mxu0 %v2558_v3  ;;  %v64_v11 = vld [vmem:[%s3401_s0] sm:$0xff]  ;;  %v2587_v13 = vld [vmem:[#allocation5 + $0x38] sm:$0xff]  ;;  %v2592_v14 = vld [vmem:[#allocation5 + $0x20] sm:$0xff] }
  0x11   :  { %125 = vmatpush.msra.mxu3 %v2562_v5  ;;  %145 = vmatpush.msra.mxu1 %v2566_v6  ;;  %v2585_v12 = vld [vmem:[#allocation5 + $0x30] sm:$0xff]  ;;  %v2594_v15 = vld [vmem:[#allocation5 + $0x28] sm:$0xff]  ;;  %v2601_v17 = vld [vmem:[#allocation5 + $0x18] sm:$0xff] }
  0x12   :  { %373 = vmatpush.msra.mxu0 %v2562_v5  ;;  %69 = vperm.xlu0 %2250, %v64_v11   ;;  %v2599_v16 = vld [vmem:[#allocation5 + $0x10] sm:$0xff]  ;;  %v2606_v18 = vld [vmem:[#allocation5] sm:$0xff]  ;;  %v2608_v19 = vld [vmem:[#allocation5 + $0x8] sm:$0xff] }
  0x13   :  { %126 = vmatpush.msra.mxu3 %v2568_v7  ;;  %146 = vmatpush.msra.mxu1 %v2570_v8  ;;  %v2628_v20 = vld [vmem:[%s3402_s1] sm:$0x3]  ;;  %s2503_s1 = smov 64   ;;  %v2659_v53 = vld [vmem:[#allocation7 + $0xf0] sm:$0xff]  ;;  %v2661_v54 = vld [vmem:[#allocation7 + $0xf8] sm:$0xff] }
  0x14   :  { %374 = vmatpush.msra.mxu0 %v2568_v7  ;;  %v78_v21 = vperm.slane %v2628_v20, 0  ;;  %v2634_v23 = vld [vmem:[%s3403_s2] sm:$0x3]  ;;  %v79_v30 = vperm.slane %v2628_v20, 1  ;;  %v2663_v55 = vld [vmem:[#allocation7 + $0xe0] sm:$0xff]  ;;  %251 = vmatpush.msra.mxu2 %v2659_v53  ;;  %v2670_v57 = vld [vmem:[#allocation7 + $0xd0] sm:$0xff] }
  0x15   :  { %127 = vmatpush.msra.mxu3 %v2575_v9  ;;  %147 = vmatpush.msra.mxu1 %v2577_v10  ;;  %v87_v25 = vperm.slane %v2634_v23, 0  ;;  %v88_v34 = vperm.slane %v2634_v23, 1  ;;  %v2668_v56 = vld [vmem:[#allocation7 + $0xe8] sm:$0xff]  ;;  %v2672_v58 = vld [vmem:[#allocation7 + $0xd8] sm:$0xff]  ;;  %v2678_v59 = vld [vmem:[#allocation7 + $0xc0] sm:$0xff] }
  0x16   :  { %375 = vmatpush.msra.mxu0 %v2575_v9  ;;  %252 = vmatpush.msra.mxu2 %v2663_v55  ;;  %v2680_v60 = vld [vmem:[#allocation7 + $0xc8] sm:$0xff]  ;;  %v2686_v61 = vld [vmem:[#allocation7 + $0xb0] sm:$0xff]  ;;  %v2688_v62 = vld [vmem:[#allocation7 + $0xb8] sm:$0xff] }
  0x17   :  { %128 = vmatpush.msra.mxu3 %v2585_v12  ;;  %148 = vmatpush.msra.mxu1 %v2587_v13  ;;  %v2696_v0 = vld [vmem:[#allocation7 + $0xa0] sm:$0xff]  ;;  %v2706_v11 = vld [vmem:[#allocation7 + $0x90] sm:$0xff] }
  0x18   :  { %376 = vmatpush.msra.mxu0 %v2585_v12  ;;  %253 = vmatpush.msra.mxu2 %v2670_v57 }
  0x19   :  { %129 = vmatpush.msra.mxu3 %v2592_v14  ;;  %149 = vmatpush.msra.mxu1 %v2594_v15 }
  0x1a   :  { %377 = vmatpush.msra.mxu0 %v2592_v14  ;;  %254 = vmatpush.msra.mxu2 %v2678_v59 }
  0x1b   :  { %130 = vmatpush.msra.mxu3 %v2599_v16  ;;  %150 = vmatpush.msra.mxu1 %v2601_v17 }
  0x1c   :  { %378 = vmatpush.msra.mxu0 %v2599_v16  ;;  %255 = vmatpush.msra.mxu2 %v2686_v61 }
  0x1d   :  { %131 = vmatpush.msra.mxu3 %v2606_v18  ;;  %151 = vmatpush.msra.mxu1 %v2608_v19 }
  0x1e   :  { %132 = vmatmul.f32.vlgmr.msra.gmra.mxu3 %v2501_v1  ;;  %152 = vmatmul.f32.vlgmr.msra.gmra.mxu1 %v2501_v1  ;;  %v2698_v1 = vld [vmem:[#allocation7 + $0xa8] sm:$0xff] }
  0x1f   :  { %392 = vmatpush.msrb.mxu1 %v2560_v4  ;;  %379 = vmatpush.msra.mxu0 %v2606_v18 }
  0x20   :  { %271 = vmatpush.msrb.mxu3 %v2661_v54  ;;  %256 = vmatpush.msra.mxu2 %v2696_v0 }
  0x21   :  { %393 = vmatpush.msrb.mxu1 %v2566_v6  ;;  %508 = vmatpush.msrb.mxu0 %v2659_v53 }
  0x22   :  { %272 = vmatpush.msrb.mxu3 %v2668_v56  ;;  %257 = vmatpush.msra.mxu2 %v2706_v11 }
  0x23   :  { %394 = vmatpush.msrb.mxu1 %v2570_v8  ;;  %509 = vmatpush.msrb.mxu0 %v2663_v55 }
  0x24   :  { %273 = vmatpush.msrb.mxu3 %v2672_v58 }
  0x25   :  { %395 = vmatpush.msrb.mxu1 %v2577_v10  ;;  %510 = vmatpush.msrb.mxu0 %v2670_v57 }
  0x26   :  { %274 = vmatpush.msrb.mxu3 %v2680_v60 }
  0x27   :  { %396 = vmatpush.msrb.mxu1 %v2587_v13  ;;  %511 = vmatpush.msrb.mxu0 %v2678_v59 }
  0x28   :  { %275 = vmatpush.msrb.mxu3 %v2688_v62 }
  0x29   :  { %397 = vmatpush.msrb.mxu1 %v2594_v15  ;;  %512 = vmatpush.msrb.mxu0 %v2686_v61 }
  0x2a   :  { %276 = vmatpush.msrb.mxu3 %v2698_v1 }
  0x2b   :  { %398 = vmatpush.msrb.mxu1 %v2601_v17  ;;  %513 = vmatpush.msrb.mxu0 %v2696_v0 }
  0x2d   :  { %399 = vmatpush.msrb.mxu1 %v2608_v19  ;;  %514 = vmatpush.msrb.mxu0 %v2706_v11 }
  0x2f   :  { %528 = vmatpush.msra.mxu1 %v2661_v54 }
  0x31   :  { %529 = vmatpush.msra.mxu1 %v2668_v56 }
  0x33   :  { %530 = vmatpush.msra.mxu1 %v2672_v58 }
  0x35   :  { %531 = vmatpush.msra.mxu1 %v2680_v60 }
  0x37   :  { %532 = vmatpush.msra.mxu1 %v2688_v62 }
  0x39   :  { %533 = vmatpush.msra.mxu1 %v2698_v1 }
  0x84   :  { %v70_v22 = vpop.permute.xlu0 %69 }
  0x85   :  { %v82_v24 = vmul.f32 %v78_v21, %v70_v22  ;;  %v83_v33 = vmul.f32 %v79_v30, %v70_v22  ;;  %v2708_v22 = vld [vmem:[#allocation7 + $0x98] sm:$0xff] }
  0x86   :  { %277 = vmatpush.msrb.mxu3 %v2708_v22  ;;  %534 = vmatpush.msra.mxu1 %v2708_v22 }
  0x87   :  { %v2641_v26 = vadd.f32 %v87_v25, %v82_v24  ;;  %v2650_v35 = vadd.f32 %v88_v34, %v83_v33  ;;  %v2714_v24 = vld [vmem:[#allocation7 + $0x80] sm:$0xff]  ;;  %v2732_v33 = vld [vmem:[#allocation7 + $0x68] sm:$0xff] }
  0x88   :  { %258 = vmatpush.msra.mxu2 %v2714_v24  ;;  %515 = vmatpush.msrb.mxu0 %v2714_v24 }
  0x9b   :  { %v153_v36 = vpop.f32.mrf.mxu1 }
  0x9c   :  { %v157_v39 = vadd.f32 %v153_v36, %v2650_v35 }
  0x9e   :  { %v2196_v50 = vmul.f32 -1.442695, %v157_v39 }
  0xa1   :  { %v133_v27 = vpop.f32.mrf.mxu3 }
  0xa2   :  { %v156_v28 = vadd.f32 %v133_v27, %v2641_v26  ;;  %v2716_v27 = vld [vmem:[#allocation7 + $0x88] sm:$0xff] }
  0xa3   :  { %278 = vmatpush.msrb.mxu3 %v2716_v27  ;;  %535 = vmatpush.msra.mxu1 %v2716_v27 }
  0xa4   :  { %v2195_v29 = vmul.f32 -1.442695, %v156_v28 }
  0xa6   :  { %2253 = vpow2.f32 %v2195_v29  ;;  %v2722_v29 = vld [vmem:[#allocation7 + $0x70] sm:$0xff] }
  0xa7   :  { %259 = vmatpush.msra.mxu2 %v2722_v29  ;;  %516 = vmatpush.msrb.mxu0 %v2722_v29 }
  0xac   :  { %v2254_v31 = vpop.eup %2253 }
  0xad   :  { %v164_v32 = vadd.f32 1.0, %v2254_v31  ;;  %v2724_v31 = vld [vmem:[#allocation7 + $0x78] sm:$0xff] }
  0xae   :  { %279 = vmatpush.msrb.mxu3 %v2724_v31  ;;  %536 = vmatpush.msra.mxu1 %v2724_v31 }
  0xaf   :  { %2255 = vrcp.f32 %v164_v32  ;;  %v177_v41 = vand.u32 2147483648, %v164_v32  ;;  %v175_v43 = vand.u32 2147483647, %v164_v32  ;;  %vm171_vm1 = vweird.f32 %v164_v32 }
  0xb0   :  { %2257 = vtanh.f32 %v157_v39  ;;  %280 = vmatpush.msrb.mxu3 %v2732_v33  ;;  %537 = vmatpush.msra.mxu1 %v2732_v33 }
  0xb1   :  { %v178_v45 = vor.u32 1.1754944e-38, %v177_v41  ;;  %vm176_vm3 = vcmp.eq.f32.partialorder %v175_v43, 8.507059e+37  ;;  %2259 = vpow2.f32 %v2196_v50  ;;  %v2748_v41 = vld [vmem:[#allocation7 + $0x40] sm:$0xff] }
  0xb5   :  { %v2256_v37 = vpop.eup %2255 }
  0xb6   :  { %v167_v38 = vmul.f32 %v2256_v37, %v164_v32  ;;  %vm172_vm0 = vweird.f32 %v2256_v37  ;;  %v2258_v47 = vpop.eup %2257  ;;  %v2730_v32 = vld [vmem:[#allocation7 + $0x60] sm:$0xff] }
  0xb7   :  { %vm173_vm2 = vmor %vm171_vm1, %vm172_vm0  ;;  %v2260_v51 = vpop.eup %2259  ;;  %260 = vmatpush.msra.mxu2 %v2730_v32  ;;  %517 = vmatpush.msrb.mxu0 %v2730_v32 }
  0xb8   :  { %v168_v40 = vsub.f32 1.0, %v167_v38  ;;  %v2657_v52 = vadd.f32 1.0, %v2260_v51  ;;  %v2741_v38 = vld [vmem:[#allocation7 + $0x58] sm:$0xff] }
  0xb9   :  { %281 = vmatpush.msrb.mxu3 %v2741_v38  ;;  %538 = vmatpush.msra.mxu1 %v2741_v38 }
  0xba   :  { %v169_v42 = vmul.f32 %v2256_v37, %v168_v40  ;;  %2261 = vrcp.f32 %v2657_v52  ;;  %vm186_vm4 = vweird.f32 %v2657_v52 }
  0xbc   :  { %v170_v44 = vadd.f32 %v2256_v37, %v169_v42  ;;  %v2750_v42 = vld [vmem:[#allocation7 + $0x48] sm:$0xff] }
  0xbd   :  { %282 = vmatpush.msrb.mxu3 %v2750_v42  ;;  %539 = vmatpush.msra.mxu1 %v2750_v42 }
  0xbe   :  { %v174_v46 = vsel %vm173_vm2, %v2256_v37, %v170_v44  ;;  %v2739_v37 = vld [vmem:[#allocation7 + $0x50] sm:$0xff] }
  0xbf   :  { %v2653_v48 = vsel %vm176_vm3, %v178_v45, %v174_v46  ;;  %261 = vmatpush.msra.mxu2 %v2739_v37  ;;  %518 = vmatpush.msrb.mxu0 %v2739_v37  ;;  %v192_v45 = vand.u32 2147483648, %v2657_v52  ;;  %v190_v46 = vand.u32 2147483647, %v2657_v52 }
  0xc0   :  { %v198_v49 = vmul.f32 %v2258_v47, %v2653_v48  ;;  %v2692_v63 = vpop.eup %2261  ;;  %v197_v39 = vmul.f32 0.0, %v2653_v48 }
  0xc1   :  { %v182_v2 = vmul.f32 %v2692_v63, %v2657_v52  ;;  %vm187_vm5 = vweird.f32 %v2692_v63  ;;  %262 = vmatpush.msra.mxu2 %v2748_v41  ;;  %519 = vmatpush.msrb.mxu0 %v2748_v41  ;;  %v193_v48 = vor.u32 1.1754944e-38, %v192_v45  ;;  %vm191_vm7 = vcmp.eq.f32.partialorder %v190_v46, 8.507059e+37  ;;  %v2778_v52 = vld [vmem:[#allocation7 + $0x20] sm:$0xff] }
  0xc2   :  { %200 = vrot.lane.b32.xlu0 %v198_v49, %s2503_s1  ;;  %vm188_vm6 = vmor %vm186_vm4, %vm187_vm5 }
  0xc3   :  { %v183_v28 = vsub.f32 1.0, %v182_v2  ;;  %v2772_v2 = vld [vmem:[#allocation7 + $0x30] sm:$0xff] }
  0xc4   :  { %263 = vmatpush.msra.mxu2 %v2772_v2  ;;  %520 = vmatpush.msrb.mxu0 %v2772_v2 }
  0xc5   :  { %v184_v36 = vmul.f32 %v2692_v63, %v183_v28  ;;  %v2774_v28 = vld [vmem:[#allocation7 + $0x38] sm:$0xff] }
  0xc6   :  { %283 = vmatpush.msrb.mxu3 %v2774_v28  ;;  %540 = vmatpush.msra.mxu1 %v2774_v28 }
  0xc7   :  { %v185_v44 = vadd.f32 %v2692_v63, %v184_v36  ;;  %v2780_v36 = vld [vmem:[#allocation7 + $0x28] sm:$0xff]  ;;  %264 = vmatpush.msra.mxu2 %v2778_v52  ;;  %521 = vmatpush.msrb.mxu0 %v2778_v52 }
  0xc8   :  { %284 = vmatpush.msrb.mxu3 %v2780_v36  ;;  %541 = vmatpush.msra.mxu1 %v2780_v36 }
  0xc9   :  { %v189_v47 = vsel %vm188_vm6, %v2692_v63, %v185_v44  ;;  %v2786_v63 = vld [vmem:[#allocation7 + $0x10] sm:$0xff]  ;;  %v214_v44 = vld [vmem:[#allocation7 + $0x8] sm:$0xff] }
  0xca   :  { %v194_v50 = vsel %vm191_vm7, %v193_v48, %v189_v47  ;;  %265 = vmatpush.msra.mxu2 %v2786_v63  ;;  %522 = vmatpush.msrb.mxu0 %v2786_v63 }
 0x134   :  { %v201_v40 = vpop.permute.xlu0 %200 }
 0x135   :  { %v2754_v43 = vadd.f32 %v201_v40, %v197_v39  ;;  %v2788_v39 = vld [vmem:[#allocation7 + $0x18] sm:$0xff]  ;;  %v213_v40 = vld [vmem:[#allocation7] sm:$0xff] }
 0x136   :  { %285 = vmatpush.msrb.mxu3 %v2788_v39  ;;  %542 = vmatpush.msra.mxu1 %v2788_v39 }
 0x137   :  { %2263 = vtanh.f32 %v2754_v43  ;;  %266 = vmatpush.msra.mxu2 %v213_v40  ;;  %523 = vmatpush.msrb.mxu0 %v213_v40 }
 0x138   :  { %286 = vmatpush.msrb.mxu3 %v214_v44  ;;  %543 = vmatpush.msra.mxu1 %v214_v44 }
 0x139   :  { %631 = vmatpush.msrb.mxu2 %v2558_v3 }
 0x13a   :  { %651 = vmatpush.msra.mxu3 %v2560_v4 }
 0x13b   :  { %632 = vmatpush.msrb.mxu2 %v2562_v5 }
 0x13c   :  { %652 = vmatpush.msra.mxu3 %v2566_v6 }
 0x13d   :  { %v2264_v49 = vpop.eup %2263  ;;  %633 = vmatpush.msrb.mxu2 %v2568_v7 }
 0x13e   :  { %v205_v51 = vmul.f32 %v2264_v49, %v194_v50  ;;  %653 = vmatpush.msra.mxu3 %v2570_v8 }
 0x13f   :  { %634 = vmatpush.msrb.mxu2 %v2575_v9 }
 0x140   :  { %207 = vrot.lane.b32.xlu1 %v205_v51, %s2503_s1  ;;  %654 = vmatpush.msra.mxu3 %v2577_v10 }
 0x141   :  { %635 = vmatpush.msrb.mxu2 %v2585_v12 }
 0x142   :  { %655 = vmatpush.msra.mxu3 %v2587_v13 }
 0x143   :  { %636 = vmatpush.msrb.mxu2 %v2592_v14 }
 0x144   :  { %656 = vmatpush.msra.mxu3 %v2594_v15 }
 0x145   :  { %637 = vmatpush.msrb.mxu2 %v2599_v16 }
 0x146   :  { %657 = vmatpush.msra.mxu3 %v2601_v17 }
 0x147   :  { %638 = vmatpush.msrb.mxu2 %v2606_v18 }
 0x148   :  { %658 = vmatpush.msra.mxu3 %v2608_v19 }
 0x1b2   :  { %v208_v3 = vpop.permute.xlu1 %207 }
 0x1b3   :  { %211 = vst.msk [vmem:[#allocation2] sm:$0x3] %vm210_vm8, %v208_v3  ;;  %2199 = vmatmul.msk.f32.vlgmr.msra.gmra.mxu0 %vm112_vm9, %v208_v3  ;;  %2200 = vmatmul.msk.f32.vlgmr.msrb.gmra.mxu1 %vm112_vm9, %v208_v3 }
 0x1ba   :  { %v212_v4 = vld [vmem:[#allocation2] sm:$0x3] }
 0x1bb   :  { %267 = vmatmul.f32.vlgmr.msra.gmra.mxu2 %v212_v4  ;;  %287 = vmatmul.f32.vlgmr.msrb.gmra.mxu3 %v212_v4 }
 0x1bc   :  { %767 = vmatpush.msra.mxu2 %v2659_v53  ;;  %787 = vmatpush.msrb.mxu3 %v2661_v54 }
 0x1be   :  { %768 = vmatpush.msra.mxu2 %v2663_v55  ;;  %788 = vmatpush.msrb.mxu3 %v2668_v56  ;;  %v452_v56 = vrot.slane %v2754_v43, 6 }
 0x1c0   :  { %769 = vmatpush.msra.mxu2 %v2670_v57  ;;  %789 = vmatpush.msrb.mxu3 %v2672_v58 }
 0x1c2   :  { %770 = vmatpush.msra.mxu2 %v2678_v59  ;;  %790 = vmatpush.msrb.mxu3 %v2680_v60 }
 0x1c4   :  { %771 = vmatpush.msra.mxu2 %v2686_v61  ;;  %791 = vmatpush.msrb.mxu3 %v2688_v62  ;;  %v245_v62 = vld [vmem:[%s3406_s5] sm:$0x3] }
 0x1c5   :  { %v248_v51 = vperm.slane %v245_v62, 1 }
 0x1c6   :  { %772 = vmatpush.msra.mxu2 %v2696_v0  ;;  %792 = vmatpush.msrb.mxu3 %v2698_v1  ;;  %v247_v1 = vperm.slane %v245_v62, 0 }
 0x1c8   :  { %773 = vmatpush.msra.mxu2 %v2706_v11  ;;  %793 = vmatpush.msrb.mxu3 %v2708_v22 }
 0x1ca   :  { %774 = vmatpush.msra.mxu2 %v2714_v24  ;;  %794 = vmatpush.msrb.mxu3 %v2716_v27 }
 0x1cc   :  { %775 = vmatpush.msra.mxu2 %v2722_v29  ;;  %795 = vmatpush.msrb.mxu3 %v2724_v31 }
 0x1ce   :  { %776 = vmatpush.msra.mxu2 %v2730_v32  ;;  %796 = vmatpush.msrb.mxu3 %v2732_v33 }
 0x1d0   :  { %777 = vmatpush.msra.mxu2 %v2739_v37  ;;  %797 = vmatpush.msrb.mxu3 %v2741_v38 }
 0x1d2   :  { %778 = vmatpush.msra.mxu2 %v2748_v41  ;;  %798 = vmatpush.msrb.mxu3 %v2750_v42 }
 0x1d4   :  { %779 = vmatpush.msra.mxu2 %v2772_v2  ;;  %799 = vmatpush.msrb.mxu3 %v2774_v28 }
 0x1d6   :  { %780 = vmatpush.msra.mxu2 %v2778_v52  ;;  %800 = vmatpush.msrb.mxu3 %v2780_v36 }
 0x1d8   :  { %781 = vmatpush.msra.mxu2 %v2786_v63  ;;  %801 = vmatpush.msrb.mxu3 %v2788_v39 }
 0x1da   :  { %782 = vmatpush.msra.mxu2 %v213_v40  ;;  %802 = vmatpush.msrb.mxu3 %v214_v44 }
 0x230   :  { %v381_v5 = vpop.f32.mrf.mxu0  ;;  %v401_v12 = vpop.f32.mrf.mxu1 }
 0x231   :  { %v406_v6 = vrot.slane %v381_v5, 6  ;;  %v407_v13 = vrot.slane %v401_v12, 6 }
 0x233   :  { %v410_v7 = vadd.f32 %v406_v6, %v2641_v26  ;;  %v411_v15 = vadd.f32 %v407_v13, %v2650_v35 }
 0x235   :  { %v2201_v8 = vmul.f32 -1.442695, %v410_v7  ;;  %v2202_v0 = vmul.f32 -1.442695, %v411_v15 }
 0x237   :  { %2265 = vpow2.f32 %v2201_v8 }
 0x23d   :  { %v2266_v9 = vpop.eup %2265 }
 0x23e   :  { %v418_v10 = vadd.f32 1.0, %v2266_v9  ;;  %v268_v11 = vpop.f32.mrf.mxu2  ;;  %v288_v2 = vpop.f32.mrf.mxu3 }
 0x23f   :  { %v269_v22 = vadd.f32 %v268_v11, %v247_v1  ;;  %v289_v39 = vadd.f32 %v288_v2, %v248_v51 }
 0x240   :  { %2267 = vrcp.f32 %v418_v10  ;;  %v431_v18 = vand.u32 2147483648, %v418_v10  ;;  %v429_v53 = vand.u32 2147483647, %v418_v10  ;;  %vm425_vm11 = vweird.f32 %v418_v10 }
 0x241   :  { %2269 = vtanh.f32 %v411_v15  ;;  %v2197_v24 = vmul.f32 -1.442695, %v269_v22  ;;  %v2198_v13 = vmul.f32 -1.442695, %v289_v39 }
 0x242   :  { %v432_v55 = vor.u32 1.1754944e-38, %v431_v18  ;;  %vm430_vm13 = vcmp.eq.f32.partialorder %v429_v53, 8.507059e+37  ;;  %2271 = vpow2.f32 %v2202_v0 }
 0x243   :  { %2273 = vpow2.f32 %v2197_v24 }
 0x246   :  { %v2268_v14 = vpop.eup %2267 }
 0x247   :  { %v421_v16 = vmul.f32 %v2268_v14, %v418_v10  ;;  %vm426_vm10 = vweird.f32 %v2268_v14  ;;  %v2270_v58 = vpop.eup %2269 }
 0x248   :  { %vm427_vm12 = vmor %vm425_vm11, %vm426_vm10  ;;  %v2272_v27 = vpop.eup %2271 }
 0x249   :  { %v422_v17 = vsub.f32 1.0, %v421_v16  ;;  %v419_v29 = vadd.f32 1.0, %v2272_v27  ;;  %v2274_v31 = vpop.eup %2273 }
 0x24a   :  { %v297_v32 = vadd.f32 1.0, %v2274_v31 }
 0x24b   :  { %v423_v19 = vmul.f32 %v2268_v14, %v422_v17  ;;  %2275 = vrcp.f32 %v419_v29  ;;  %v446_v49 = vand.u32 2147483648, %v419_v29  ;;  %vm440_vm15 = vweird.f32 %v419_v29 }
 0x24c   :  { %2277 = vrcp.f32 %v297_v32  ;;  %v444_v50 = vand.u32 2147483647, %v419_v29  ;;  %v310_v4 = vand.u32 2147483648, %v297_v32  ;;  %vm304_vm3 = vweird.f32 %v297_v32 }
 0x24d   :  { %v424_v54 = vadd.f32 %v2268_v14, %v423_v19  ;;  %v447_v36 = vor.u32 1.1754944e-38, %v446_v49  ;;  %v308_v6 = vand.u32 2147483647, %v297_v32 }
 0x24e   :  { %vm445_vm1 = vcmp.eq.f32.partialorder %v444_v50, 8.507059e+37  ;;  %v311_v8 = vor.u32 1.1754944e-38, %v310_v4 }
 0x24f   :  { %v428_v57 = vsel %vm427_vm12, %v2268_v14, %v424_v54  ;;  %vm309_vm5 = vcmp.eq.f32.partialorder %v308_v6, 8.507059e+37  ;;  %vm339_vm12 = vcmask 1041920  }
 0x250   :  { %v433_v59 = vsel %vm430_vm13, %v432_v55, %v428_v57  ;;  %vm467_vm13 = vcmask 519170  }
 0x251   :  { %v455_v60 = vmul.f32 %v2270_v58, %v433_v59  ;;  %v454_v61 = vmul.f32 %v452_v56, %v433_v59  ;;  %v2276_v33 = vpop.eup %2275 }
 0x252   :  { %v436_v37 = vmul.f32 %v2276_v33, %v419_v29  ;;  %v2278_v41 = vpop.eup %2277  ;;  %vm441_vm14 = vweird.f32 %v2276_v33 }
 0x253   :  { %457 = vrot.lane.b32.xlu1 %v455_v60, %s2503_s1  ;;  %v300_v42 = vmul.f32 %v2278_v41, %v297_v32  ;;  %vm442_vm0 = vmor %vm440_vm15, %vm441_vm14  ;;  %vm305_vm2 = vweird.f32 %v2278_v41 }
 0x254   :  { %v437_v38 = vsub.f32 1.0, %v436_v37  ;;  %vm306_vm4 = vmor %vm304_vm3, %vm305_vm2 }
 0x255   :  { %v301_v48 = vsub.f32 1.0, %v300_v42 }
 0x256   :  { %v438_v43 = vmul.f32 %v2276_v33, %v437_v38 }
 0x257   :  { %v302_v52 = vmul.f32 %v2278_v41, %v301_v48 }
 0x258   :  { %v439_v47 = vadd.f32 %v2276_v33, %v438_v43 }
 0x259   :  { %v303_v3 = vadd.f32 %v2278_v41, %v302_v52 }
 0x25a   :  { %v443_v28 = vsel %vm442_vm0, %v2276_v33, %v439_v47 }
 0x25b   :  { %v448_v40 = vsel %vm445_vm1, %v447_v36, %v443_v28  ;;  %v307_v7 = vsel %vm306_vm4, %v2278_v41, %v303_v3  ;;  %v502_v41 = vld [vmem:[%s3406_s5] sm:$0x3] }
 0x25c   :  { %v312_v9 = vsel %vm309_vm5, %v311_v8, %v307_v7  ;;  %v504_v42 = vperm.slane %v502_v41, 0  ;;  %v505_v8 = vperm.slane %v502_v41, 1  ;;  %v2893_v41 = vld [vmem:[#allocation5 + $0x68] sm:$0xff] }
 0x25d   :  { %v330_v54 = vmul.f32 0.0, %v312_v9 }
 0x2c5   :  { %v458_v45 = vpop.permute.xlu1 %457 }
 0x2c6   :  { %v2852_v46 = vadd.f32 %v458_v45, %v454_v61 }
 0x2c8   :  { %2279 = vtanh.f32 %v2852_v46 }
 0x2c9   :  { %2281 = vtanh.f32 %v289_v39  ;;  %v711_v39 = vrot.slane %v2852_v46, 6 }
 0x2ca   :  { %2283 = vpow2.f32 %v2198_v13 }
 0x2ce   :  { %v2280_v63 = vpop.eup %2279 }
 0x2cf   :  { %v462_v44 = vmul.f32 %v2280_v63, %v448_v40  ;;  %v2282_v10 = vpop.eup %2281 }
 0x2d0   :  { %v331_v12 = vmul.f32 %v2282_v10, %v312_v9  ;;  %v2284_v14 = vpop.eup %2283 }
 0x2d1   :  { %464 = vrot.lane.b32.xlu0 %v462_v44, %s2503_s1  ;;  %v618_v5 = vrot.slane %v462_v44, 2  ;;  %v298_v15 = vadd.f32 1.0, %v2284_v14 }
 0x2d3   :  { %619 = vrot.lane.b32.xlu2 %v618_v5, %s2503_s1  ;;  %2285 = vrcp.f32 %v298_v15  ;;  %v325_v58 = vand.u32 2147483648, %v298_v15  ;;  %vm319_vm7 = vweird.f32 %v298_v15  ;;  %v323_v59 = vand.u32 2147483647, %v298_v15 }
 0x2d5   :  { %v326_v61 = vor.u32 1.1754944e-38, %v325_v58  ;;  %vm324_vm11 = vcmp.eq.f32.partialorder %v323_v59, 8.507059e+37 }
 0x2d9   :  { %v2286_v16 = vpop.eup %2285 }
 0x2da   :  { %v315_v17 = vmul.f32 %v2286_v16, %v298_v15  ;;  %vm320_vm6 = vweird.f32 %v2286_v16 }
 0x2db   :  { %333 = vrot.lane.b32.xlu2 %v331_v12, %s2503_s1  ;;  %vm321_vm10 = vmor %vm319_vm7, %vm320_vm6 }
 0x2dc   :  { %v316_v19 = vsub.f32 1.0, %v315_v17 }
 0x2de   :  { %v317_v53 = vmul.f32 %v2286_v16, %v316_v19 }
 0x2e0   :  { %v318_v57 = vadd.f32 %v2286_v16, %v317_v53 }
 0x2e2   :  { %v322_v60 = vsel %vm321_vm10, %v2286_v16, %v318_v57 }
 0x2e3   :  { %v327_v0 = vsel %vm324_vm11, %v326_v61, %v322_v60 }
 0x32d   :  { %v620_v18 = vpop.permute.xlu2 %619 }
 0x32e   :  { %2205 = vmatmul.msk.f32.vlgmr.msrb.gmra.mxu2 %vm112_vm9, %v620_v18  ;;  %2206 = vmatmul.msk.f32.vlgmr.msra.gmra.mxu3 %vm112_vm9, %v620_v18 }
 0x335   :  { %v334_v55 = vpop.permute.xlu2 %333 }
 0x336   :  { %v2860_v56 = vadd.f32 %v334_v55, %v330_v54 }
 0x338   :  { %2287 = vtanh.f32 %v2860_v56 }
 0x33e   :  { %v2288_v62 = vpop.eup %2287 }
 0x33f   :  { %v2863_v1 = vmul.f32 %v2288_v62, %v327_v0 }
 0x341   :  { %340 = vst.msk [vmem:[#allocation2] sm:$0x3] %vm339_vm12, %v2863_v1 }
 0x343   :  { %v465_v11 = vpop.permute.xlu0 %464 }
 0x344   :  { %468 = vst.msk [vmem:[#allocation2 - $0x2] sm:$0xc] %vm467_vm13, %v465_v11 }
 0x34b   :  { %v469_v22 = vld [vmem:[#allocation2] sm:$0x3] }
 0x34c   :  { %524 = vmatmul.f32.vlgmr.msrb.gmra.mxu0 %v469_v22  ;;  %544 = vmatmul.f32.vlgmr.msra.gmra.mxu1 %v469_v22 }
 0x3b1   :  { %v640_v24 = vpop.f32.mrf.mxu2  ;;  %v660_v37 = vpop.f32.mrf.mxu3 }
 0x3b2   :  { %v665_v27 = vrot.slane %v640_v24, 4  ;;  %v666_v38 = vrot.slane %v660_v37, 4  ;;  %v2888_v37 = vld [vmem:[#allocation5 + $0x60] sm:$0xff] }
 0x3b4   :  { %v669_v29 = vadd.f32 %v665_v27, %v2641_v26  ;;  %v670_v45 = vadd.f32 %v666_v38, %v2650_v35 }
 0x3b6   :  { %v2207_v31 = vmul.f32 -1.442695, %v669_v29  ;;  %v2208_v57 = vmul.f32 -1.442695, %v670_v45 }
 0x3b8   :  { %2289 = vpow2.f32 %v2207_v31 }
 0x3be   :  { %v2290_v32 = vpop.eup %2289 }
 0x3bf   :  { %v677_v33 = vadd.f32 1.0, %v2290_v32  ;;  %v2884_v32 = vld [vmem:[#allocation5 + $0x70] sm:$0xff] }
 0x3c0   :  { %890 = vmatpush.msra.mxu0 %v2884_v32  ;;  %1149 = vmatpush.msrb.mxu2 %v2884_v32 }
 0x3c1   :  { %2291 = vrcp.f32 %v677_v33  ;;  %v690_v51 = vand.u32 2147483648, %v677_v33  ;;  %v688_v52 = vand.u32 2147483647, %v677_v33  ;;  %vm684_vm15 = vweird.f32 %v677_v33 }
 0x3c2   :  { %2293 = vtanh.f32 %v670_v45  ;;  %v2897_v45 = vld [vmem:[#allocation5 + $0x58] sm:$0xff]  ;;  %891 = vmatpush.msra.mxu0 %v2888_v37  ;;  %1150 = vmatpush.msrb.mxu2 %v2888_v37 }
 0x3c3   :  { %v691_v63 = vor.u32 1.1754944e-38, %v690_v51  ;;  %vm689_vm1 = vcmp.eq.f32.partialorder %v688_v52, 8.507059e+37  ;;  %v2920_v52 = vld [vmem:[#allocation5 + $0x38] sm:$0xff] }
 0x3c7   :  { %v2292_v43 = vpop.eup %2291 }
 0x3c8   :  { %v680_v47 = vmul.f32 %v2292_v43, %v677_v33  ;;  %vm685_vm14 = vweird.f32 %v2292_v43  ;;  %v2294_v44 = vpop.eup %2293  ;;  %v2886_v33 = vld [vmem:[#allocation5 + $0x78] sm:$0xff] }
 0x3c9   :  { %v525_v48 = vpop.f32.mrf.mxu0  ;;  %vm686_vm0 = vmor %vm684_vm15, %vm685_vm14  ;;  %v545_v9 = vpop.f32.mrf.mxu1  ;;  %910 = vmatpush.msrb.mxu1 %v2886_v33  ;;  %1169 = vmatpush.msra.mxu3 %v2886_v33 }
 0x3ca   :  { %v526_v49 = vadd.f32 %v525_v48, %v504_v42  ;;  %v681_v50 = vsub.f32 1.0, %v680_v47  ;;  %v546_v12 = vadd.f32 %v545_v9, %v505_v8  ;;  %v2946_v8 = vld [vmem:[#allocation5 + $0x8] sm:$0xff] }
 0x3cb   :  { %911 = vmatpush.msrb.mxu1 %v2893_v41  ;;  %1170 = vmatpush.msra.mxu3 %v2893_v41 }
 0x3cc   :  { %v2203_v2 = vmul.f32 -1.442695, %v526_v49  ;;  %v682_v28 = vmul.f32 %v2292_v43, %v681_v50  ;;  %v2204_v60 = vmul.f32 -1.442695, %v546_v12  ;;  %v2910_v49 = vld [vmem:[#allocation5 + $0x40] sm:$0xff]  ;;  %v2912_v50 = vld [vmem:[#allocation5 + $0x48] sm:$0xff] }
 0x3cd   :  { %912 = vmatpush.msrb.mxu1 %v2897_v45  ;;  %1171 = vmatpush.msra.mxu3 %v2897_v45 }
 0x3ce   :  { %2295 = vpow2.f32 %v2203_v2  ;;  %v683_v36 = vadd.f32 %v2292_v43, %v682_v28  ;;  %v2918_v28 = vld [vmem:[#allocation5 + $0x30] sm:$0xff] }
 0x3cf   :  { %913 = vmatpush.msrb.mxu1 %v2912_v50  ;;  %1172 = vmatpush.msra.mxu3 %v2912_v50 }
 0x3d0   :  { %v687_v40 = vsel %vm686_vm0, %v2292_v43, %v683_v36  ;;  %v2895_v43 = vld [vmem:[#allocation5 + $0x50] sm:$0xff] }
 0x3d1   :  { %v692_v3 = vsel %vm689_vm1, %v691_v63, %v687_v40  ;;  %892 = vmatpush.msra.mxu0 %v2895_v43  ;;  %1151 = vmatpush.msrb.mxu2 %v2895_v43  ;;  %v2926_v40 = vld [vmem:[#allocation5 + $0x20] sm:$0xff] }
 0x3d2   :  { %v714_v4 = vmul.f32 %v2294_v44, %v692_v3  ;;  %v713_v5 = vmul.f32 %v711_v39, %v692_v3  ;;  %v2928_v44 = vld [vmem:[#allocation5 + $0x28] sm:$0xff]  ;;  %914 = vmatpush.msrb.mxu1 %v2920_v52  ;;  %1173 = vmatpush.msra.mxu3 %v2920_v52 }
 0x3d3   :  { %893 = vmatpush.msra.mxu0 %v2910_v49  ;;  %1152 = vmatpush.msrb.mxu2 %v2910_v49 }
 0x3d4   :  { %v2296_v6 = vpop.eup %2295  ;;  %716 = vrot.lane.b32.xlu1 %v714_v4, %s2503_s1  ;;  %915 = vmatpush.msrb.mxu1 %v2928_v44 }
 0x3d5   :  { %v554_v7 = vadd.f32 1.0, %v2296_v6  ;;  %894 = vmatpush.msra.mxu0 %v2918_v28  ;;  %v2938_v6 = vld [vmem:[#allocation5 + $0x18] sm:$0xff]  ;;  %1153 = vmatpush.msrb.mxu2 %v2918_v28 }
 0x3d6   :  { %916 = vmatpush.msrb.mxu1 %v2938_v6  ;;  %1174 = vmatpush.msra.mxu3 %v2928_v44 }
 0x3d7   :  { %2297 = vrcp.f32 %v554_v7  ;;  %v567_v15 = vand.u32 2147483648, %v554_v7  ;;  %v565_v16 = vand.u32 2147483647, %v554_v7  ;;  %vm561_vm3 = vweird.f32 %v554_v7  ;;  %895 = vmatpush.msra.mxu0 %v2926_v40  ;;  %1154 = vmatpush.msrb.mxu2 %v2926_v40 }
 0x3d8   :  { %2299 = vtanh.f32 %v546_v12  ;;  %917 = vmatpush.msrb.mxu1 %v2946_v8  ;;  %1175 = vmatpush.msra.mxu3 %v2938_v6 }
 0x3d9   :  { %v568_v18 = vor.u32 1.1754944e-38, %v567_v15  ;;  %vm566_vm5 = vcmp.eq.f32.partialorder %v565_v16, 8.507059e+37  ;;  %2301 = vpow2.f32 %v2208_v57 }
 0x3da   :  { %1176 = vmatpush.msra.mxu3 %v2946_v8 }
 0x3dd   :  { %v2298_v10 = vpop.eup %2297 }
 0x3de   :  { %v557_v13 = vmul.f32 %v2298_v10, %v554_v7  ;;  %vm562_vm2 = vweird.f32 %v2298_v10  ;;  %v2300_v53 = vpop.eup %2299  ;;  %v2944_v7 = vld [vmem:[#allocation5] sm:$0xff] }
 0x3df   :  { %vm563_vm4 = vmor %vm561_vm3, %vm562_vm2  ;;  %v2302_v58 = vpop.eup %2301  ;;  %vm726_vm2 = vcmask 521220  }
 0x3e0   :  { %v558_v14 = vsub.f32 1.0, %v557_v13  ;;  %v678_v59 = vadd.f32 1.0, %v2302_v58 }
 0x3e2   :  { %v559_v46 = vmul.f32 %v2298_v10, %v558_v14  ;;  %2303 = vrcp.f32 %v678_v59  ;;  %v705_v38 = vand.u32 2147483648, %v678_v59  ;;  %vm699_vm7 = vweird.f32 %v678_v59 }
 0x3e3   :  { %2305 = vpow2.f32 %v2204_v60  ;;  %v703_v42 = vand.u32 2147483647, %v678_v59 }
 0x3e4   :  { %v560_v17 = vadd.f32 %v2298_v10, %v559_v46  ;;  %v706_v51 = vor.u32 1.1754944e-38, %v705_v38 }
 0x3e5   :  { %vm704_vm11 = vcmp.eq.f32.partialorder %v703_v42, 8.507059e+37 }
 0x3e6   :  { %v564_v19 = vsel %vm563_vm4, %v2298_v10, %v560_v17 }
 0x3e7   :  { %v2875_v54 = vsel %vm566_vm5, %v568_v18, %v564_v19 }
 0x3e8   :  { %v588_v55 = vmul.f32 %v2300_v53, %v2875_v54  ;;  %v2304_v61 = vpop.eup %2303  ;;  %v587_v12 = vmul.f32 %v2875_v54, %v2860_v56 }
 0x3e9   :  { %v695_v62 = vmul.f32 %v2304_v61, %v678_v59  ;;  %v2306_v11 = vpop.eup %2305  ;;  %vm700_vm6 = vweird.f32 %v2304_v61 }
 0x3ea   :  { %590 = vrot.lane.b32.xlu0 %v588_v55, %s2503_s1  ;;  %v2879_v22 = vadd.f32 1.0, %v2306_v11  ;;  %vm2902_vm10 = vmor %vm699_vm7, %vm700_vm6 }
 0x3eb   :  { %v696_v0 = vsub.f32 1.0, %v695_v62 }
 0x3ec   :  { %2307 = vrcp.f32 %v2879_v22  ;;  %v582_v46 = vand.u32 2147483648, %v2879_v22  ;;  %vm576_vm15 = vweird.f32 %v2879_v22  ;;  %v580_v16 = vand.u32 2147483647, %v2879_v22 }
 0x3ed   :  { %v697_v24 = vmul.f32 %v2304_v61, %v696_v0 }
 0x3ee   :  { %v583_v18 = vor.u32 1.1754944e-38, %v582_v46  ;;  %vm581_vm1 = vcmp.eq.f32.partialorder %v580_v16, 8.507059e+37 }
 0x3ef   :  { %v698_v31 = vadd.f32 %v2304_v61, %v697_v24 }
 0x3f1   :  { %v702_v48 = vsel %vm2902_vm10, %v2304_v61, %v698_v31 }
 0x3f2   :  { %v2308_v2 = vpop.eup %2307  ;;  %v707_v63 = vsel %vm704_vm11, %v706_v51, %v702_v48 }
 0x3f3   :  { %v572_v3 = vmul.f32 %v2308_v2, %v2879_v22  ;;  %vm577_vm14 = vweird.f32 %v2308_v2 }
 0x3f4   :  { %vm578_vm0 = vmor %vm576_vm15, %vm577_vm14 }
 0x3f5   :  { %v573_v9 = vsub.f32 1.0, %v572_v3 }
 0x3f7   :  { %v574_v10 = vmul.f32 %v2308_v2, %v573_v9 }
 0x3f9   :  { %v575_v15 = vadd.f32 %v2308_v2, %v574_v10 }
 0x3fb   :  { %v579_v17 = vsel %vm578_vm0, %v2308_v2, %v575_v15  ;;  %v761_v2 = vld [vmem:[%s3406_s5] sm:$0x3] }
 0x3fc   :  { %v584_v53 = vsel %vm581_vm1, %v583_v18, %v579_v17  ;;  %v764_v16 = vperm.slane %v761_v2, 1 }
 0x446   :  { %v717_v27 = vpop.permute.xlu1 %716 }
 0x447   :  { %v2881_v29 = vadd.f32 %v717_v27, %v713_v5  ;;  %v2936_v5 = vld [vmem:[#allocation5 + $0x10] sm:$0xff] }
 0x448   :  { %896 = vmatpush.msra.mxu0 %v2936_v5  ;;  %1155 = vmatpush.msrb.mxu2 %v2936_v5 }
 0x449   :  { %2309 = vtanh.f32 %v2881_v29 }
 0x44a   :  { %897 = vmatpush.msra.mxu0 %v2944_v7  ;;  %1156 = vmatpush.msrb.mxu2 %v2944_v7 }
 0x44f   :  { %v2310_v36 = vpop.eup %2309 }
 0x450   :  { %v721_v39 = vmul.f32 %v2310_v36, %v707_v63  ;;  %v970_v36 = vrot.slane %v2881_v29, 6 }
 0x452   :  { %723 = vrot.lane.b32.xlu1 %v721_v39, %s2503_s1  ;;  %v877_v4 = vrot.slane %v721_v39, 4 }
 0x454   :  { %878 = vrot.lane.b32.xlu2 %v877_v4, %s2503_s1  ;;  %v763_v4 = vperm.slane %v761_v2, 0 }
 0x45c   :  { %v591_v13 = vpop.permute.xlu0 %590 }
 0x45d   :  { %v2961_v14 = vadd.f32 %v591_v13, %v587_v12 }
 0x45f   :  { %2311 = vtanh.f32 %v2961_v14 }
 0x465   :  { %v2312_v19 = vpop.eup %2311 }
 0x466   :  { %v2967_v56 = vmul.f32 %v2312_v19, %v584_v53 }
 0x468   :  { %596 = vst.msk [vmem:[#allocation2] sm:$0x3] %vm339_vm12, %v2967_v56 }
 0x4ae   :  { %v879_v54 = vpop.permute.xlu2 %878 }
 0x4af   :  { %2211 = vmatmul.msk.f32.vlgmr.msra.gmra.mxu0 %vm112_vm9, %v879_v54  ;;  %2212 = vmatmul.msk.f32.vlgmr.msrb.gmra.mxu1 %vm112_vm9, %v879_v54 }
 0x4c4   :  { %v724_v55 = vpop.permute.xlu1 %723 }
 0x4c5   :  { %727 = vst.msk [vmem:[#allocation2 - $0x4] sm:$0x30] %vm726_vm2, %v724_v55 }
 0x4cc   :  { %v728_v57 = vld [vmem:[#allocation2] sm:$0x3] }
 0x4cd   :  { %783 = vmatmul.f32.vlgmr.msra.gmra.mxu2 %v728_v57  ;;  %803 = vmatmul.f32.vlgmr.msrb.gmra.mxu3 %v728_v57 }
 0x52c   :  { %v899_v58 = vpop.f32.mrf.mxu0  ;;  %v919_v11 = vpop.f32.mrf.mxu1 }
 0x52d   :  { %v924_v59 = vrot.slane %v899_v58, 2  ;;  %v925_v22 = vrot.slane %v919_v11, 2 }
 0x52f   :  { %v928_v60 = vadd.f32 %v924_v59, %v2641_v26  ;;  %v929_v27 = vadd.f32 %v925_v22, %v2650_v35 }
 0x531   :  { %v2213_v61 = vmul.f32 -1.442695, %v928_v60  ;;  %v2214_v11 = vmul.f32 -1.442695, %v929_v27 }
 0x533   :  { %2313 = vpow2.f32 %v2213_v61 }
 0x539   :  { %v2314_v62 = vpop.eup %2313 }
 0x53a   :  { %v936_v0 = vadd.f32 1.0, %v2314_v62 }
 0x53c   :  { %2315 = vrcp.f32 %v936_v0  ;;  %v949_v42 = vand.u32 2147483648, %v936_v0  ;;  %v947_v48 = vand.u32 2147483647, %v936_v0  ;;  %vm943_vm4 = vweird.f32 %v936_v0 }
 0x53d   :  { %2317 = vtanh.f32 %v929_v27 }
 0x53e   :  { %v950_v26 = vor.u32 1.1754944e-38, %v949_v42  ;;  %vm948_vm6 = vcmp.eq.f32.partialorder %v947_v48, 8.507059e+37 }
 0x542   :  { %v2316_v24 = vpop.eup %2315 }
 0x543   :  { %v939_v31 = vmul.f32 %v2316_v24, %v936_v0  ;;  %vm944_vm3 = vweird.f32 %v2316_v24  ;;  %v2318_v35 = vpop.eup %2317 }
 0x544   :  { %vm945_vm5 = vmor %vm943_vm4, %vm944_vm3 }
 0x545   :  { %v940_v38 = vsub.f32 1.0, %v939_v31 }
 0x547   :  { %v941_v47 = vmul.f32 %v2316_v24, %v940_v38 }
 0x549   :  { %v942_v51 = vadd.f32 %v2316_v24, %v941_v47 }
 0x54b   :  { %v946_v63 = vsel %vm945_vm5, %v2316_v24, %v942_v51 }
 0x54c   :  { %v951_v39 = vsel %vm948_vm6, %v950_v26, %v946_v63 }
 0x54d   :  { %v973_v3 = vmul.f32 %v2318_v35, %v951_v39  ;;  %v972_v9 = vmul.f32 %v970_v36, %v951_v39 }
 0x54f   :  { %975 = vrot.lane.b32.xlu2 %v973_v3, %s2503_s1 }
 0x550   :  { %v784_v10 = vpop.f32.mrf.mxu2  ;;  %v804_v17 = vpop.f32.mrf.mxu3 }
 0x551   :  { %v785_v12 = vadd.f32 %v784_v10, %v763_v4  ;;  %v805_v29 = vadd.f32 %v804_v17, %v764_v16  ;;  %v3001_v16 = vld [vmem:[#allocation7 + $0xe8] sm:$0xff]  ;;  %v3003_v17 = vld [vmem:[#allocation7 + $0xd0] sm:$0xff] }
 0x553   :  { %v2209_v13 = vmul.f32 -1.442695, %v785_v12  ;;  %v2210_v10 = vmul.f32 -1.442695, %v805_v29 }
 0x555   :  { %2319 = vpow2.f32 %v2209_v13  ;;  %v2992_v13 = vld [vmem:[#allocation7 + $0xf0] sm:$0xff] }
 0x556   :  { %1026 = vmatpush.msrb.mxu0 %v2992_v13  ;;  %1278 = vmatpush.msra.mxu2 %v2992_v13 }
 0x55b   :  { %v2320_v15 = vpop.eup %2319 }
 0x55c   :  { %v813_v46 = vadd.f32 1.0, %v2320_v15  ;;  %v2994_v15 = vld [vmem:[#allocation7 + $0xf8] sm:$0xff] }
 0x55d   :  { %1046 = vmatpush.msra.mxu1 %v2994_v15  ;;  %1298 = vmatpush.msrb.mxu3 %v2994_v15 }
 0x55e   :  { %2321 = vrcp.f32 %v813_v46  ;;  %v826_v54 = vand.u32 2147483648, %v813_v46  ;;  %v824_v57 = vand.u32 2147483647, %v813_v46  ;;  %vm820_vm10 = vweird.f32 %v813_v46 }
 0x55f   :  { %2323 = vtanh.f32 %v805_v29  ;;  %1047 = vmatpush.msra.mxu1 %v3001_v16  ;;  %v3011_v29 = vld [vmem:[#allocation7 + $0xc0] sm:$0xff]  ;;  %1299 = vmatpush.msrb.mxu3 %v3001_v16 }
 0x560   :  { %v827_v59 = vor.u32 1.1754944e-38, %v826_v54  ;;  %vm825_vm14 = vcmp.eq.f32.partialorder %v824_v57, 8.507059e+37  ;;  %2325 = vpow2.f32 %v2214_v11  ;;  %v3021_v54 = vld [vmem:[#allocation7 + $0xb8] sm:$0xff]  ;;  %v3027_v57 = vld [vmem:[#allocation7 + $0xa0] sm:$0xff]  ;;  %v3046_v11 = vld [vmem:[#allocation7 + $0x88] sm:$0xff] }
 0x564   :  { %v2322_v18 = vpop.eup %2321 }
 0x565   :  { %v816_v19 = vmul.f32 %v2322_v18, %v813_v46  ;;  %vm821_vm7 = vweird.f32 %v2322_v18  ;;  %v2324_v61 = vpop.eup %2323  ;;  %v2996_v46 = vld [vmem:[#allocation7 + $0xe0] sm:$0xff] }
 0x566   :  { %vm822_vm11 = vmor %vm820_vm10, %vm821_vm7  ;;  %v2326_v22 = vpop.eup %2325  ;;  %1027 = vmatpush.msrb.mxu0 %v2996_v46  ;;  %1279 = vmatpush.msra.mxu2 %v2996_v46  ;;  %vm985_vm10 = vcmask 523270  }
 0x567   :  { %v817_v53 = vsub.f32 1.0, %v816_v19  ;;  %v937_v24 = vadd.f32 1.0, %v2326_v22  ;;  %v3013_v19 = vld [vmem:[#allocation7 + $0xc8] sm:$0xff] }
 0x568   :  { %1028 = vmatpush.msrb.mxu0 %v3003_v17  ;;  %1280 = vmatpush.msra.mxu2 %v3003_v17 }
 0x569   :  { %v818_v55 = vmul.f32 %v2322_v18, %v817_v53  ;;  %2327 = vrcp.f32 %v937_v24  ;;  %v964_v2 = vand.u32 2147483648, %v937_v24  ;;  %vm958_vm0 = vweird.f32 %v937_v24  ;;  %v3019_v53 = vld [vmem:[#allocation7 + $0xb0] sm:$0xff] }
 0x56a   :  { %v962_v36 = vand.u32 2147483647, %v937_v24  ;;  %1029 = vmatpush.msrb.mxu0 %v3011_v29  ;;  %1281 = vmatpush.msra.mxu2 %v3011_v29 }
 0x56b   :  { %v819_v58 = vadd.f32 %v2322_v18, %v818_v55  ;;  %v965_v63 = vor.u32 1.1754944e-38, %v964_v2 }
 0x56c   :  { %vm963_vm3 = vcmp.eq.f32.partialorder %v962_v36, 8.507059e+37  ;;  %1030 = vmatpush.msrb.mxu0 %v3019_v53  ;;  %1282 = vmatpush.msra.mxu2 %v3019_v53 }
 0x56d   :  { %v823_v60 = vsel %vm822_vm11, %v2322_v18, %v819_v58  ;;  %v3005_v18 = vld [vmem:[#allocation7 + $0xd8] sm:$0xff]  ;;  %v3029_v58 = vld [vmem:[#allocation7 + $0xa8] sm:$0xff] }
 0x56e   :  { %v2981_v62 = vsel %vm825_vm14, %v827_v59, %v823_v60  ;;  %1048 = vmatpush.msra.mxu1 %v3005_v18  ;;  %1300 = vmatpush.msrb.mxu3 %v3005_v18  ;;  %v3036_v60 = vld [vmem:[#allocation7 + $0x90] sm:$0xff] }
 0x56f   :  { %v847_v0 = vmul.f32 %v2324_v61, %v2981_v62  ;;  %v2328_v31 = vpop.eup %2327  ;;  %v3038_v61 = vld [vmem:[#allocation7 + $0x98] sm:$0xff]  ;;  %1031 = vmatpush.msrb.mxu0 %v3027_v57  ;;  %1283 = vmatpush.msra.mxu2 %v3027_v57 }
 0x570   :  { %v954_v38 = vmul.f32 %v2328_v31, %v937_v24  ;;  %vm959_vm15 = vweird.f32 %v2328_v31  ;;  %1049 = vmatpush.msra.mxu1 %v3013_v19  ;;  %1301 = vmatpush.msrb.mxu3 %v3013_v19 }
 0x571   :  { %849 = vrot.lane.b32.xlu1 %v847_v0, %s2503_s1  ;;  %vm960_vm1 = vmor %vm958_vm0, %vm959_vm15  ;;  %v3044_v0 = vld [vmem:[#allocation7 + $0x80] sm:$0xff]  ;;  %1032 = vmatpush.msrb.mxu0 %v3036_v60 }
 0x572   :  { %v955_v42 = vsub.f32 1.0, %v954_v38  ;;  %1050 = vmatpush.msra.mxu1 %v3021_v54  ;;  %1302 = vmatpush.msrb.mxu3 %v3021_v54 }
 0x573   :  { %1284 = vmatpush.msra.mxu2 %v3036_v60  ;;  %1033 = vmatpush.msrb.mxu0 %v3044_v0 }
 0x574   :  { %v956_v47 = vmul.f32 %v2328_v31, %v955_v42  ;;  %1051 = vmatpush.msra.mxu1 %v3029_v58  ;;  %1303 = vmatpush.msrb.mxu3 %v3029_v58 }
 0x575   :  { %1285 = vmatpush.msra.mxu2 %v3044_v0 }
 0x576   :  { %v957_v26 = vadd.f32 %v2328_v31, %v956_v47  ;;  %1052 = vmatpush.msra.mxu1 %v3038_v61  ;;  %1304 = vmatpush.msrb.mxu3 %v3038_v61 }
 0x578   :  { %v961_v27 = vsel %vm960_vm1, %v2328_v31, %v957_v26  ;;  %1053 = vmatpush.msra.mxu1 %v3046_v11  ;;  %1305 = vmatpush.msrb.mxu3 %v3046_v11  ;;  %v846_v31 = vmul.f32 %v2981_v62, %v2961_v14  ;;  %v3070_v62 = vld [vmem:[#allocation7 + $0x70] sm:$0xff] }
 0x579   :  { %v966_v39 = vsel %vm963_vm3, %v965_v63, %v961_v27  ;;  %1034 = vmatpush.msrb.mxu0 %v3070_v62  ;;  %1286 = vmatpush.msra.mxu2 %v3070_v62 }
 0x5a9   :  { %v976_v48 = vpop.permute.xlu2 %975 }
 0x5aa   :  { %v2985_v51 = vadd.f32 %v976_v48, %v972_v9 }
 0x5ac   :  { %2329 = vtanh.f32 %v2985_v51 }
 0x5ad   :  { %2331 = vpow2.f32 %v2210_v10  ;;  %v3082_v10 = vld [vmem:[#allocation7 + $0x58] sm:$0xff] }
 0x5b2   :  { %v2330_v35 = vpop.eup %2329 }
 0x5b3   :  { %v980_v3 = vmul.f32 %v2330_v35, %v966_v39  ;;  %v2332_v9 = vpop.eup %2331  ;;  %v3072_v35 = vld [vmem:[#allocation7 + $0x78] sm:$0xff]  ;;  %v3074_v39 = vld [vmem:[#allocation7 + $0x60] sm:$0xff] }
 0x5b4   :  { %v2990_v12 = vadd.f32 1.0, %v2332_v9  ;;  %1054 = vmatpush.msra.mxu1 %v3072_v35  ;;  %1306 = vmatpush.msrb.mxu3 %v3072_v35  ;;  %v3088_v9 = vld [vmem:[#allocation7 + $0x40] sm:$0xff] }
 0x5b5   :  { %v1136_v4 = vrot.slane %v980_v3, 6  ;;  %1035 = vmatpush.msrb.mxu0 %v3074_v39  ;;  %1287 = vmatpush.msra.mxu2 %v3074_v39 }
 0x5b6   :  { %2333 = vrcp.f32 %v2990_v12  ;;  %v841_v48 = vand.u32 2147483648, %v2990_v12  ;;  %vm835_vm5 = vweird.f32 %v2990_v12  ;;  %v839_v26 = vand.u32 2147483647, %v2990_v12 }
 0x5b7   :  { %1137 = vrot.lane.b32.xlu0 %v1136_v4, %s2503_s1  ;;  %v3080_v4 = vld [vmem:[#allocation7 + $0x50] sm:$0xff] }
 0x5b8   :  { %v842_v36 = vor.u32 1.1754944e-38, %v841_v48  ;;  %vm840_vm7 = vcmp.eq.f32.partialorder %v839_v26, 8.507059e+37  ;;  %1036 = vmatpush.msrb.mxu0 %v3080_v4  ;;  %1288 = vmatpush.msra.mxu2 %v3080_v4  ;;  %v3122_v48 = vld [vmem:[#allocation7 + $0x8] sm:$0xff]  ;;  %v65_v26 = vld [vmem:[%s3401_s0 + $0x8] sm:$0xff] }
 0x5b9   :  { %74 = vperm.xlu2 %2251, %v65_v26  }
 0x5ba   :  { %1037 = vmatpush.msrb.mxu0 %v3088_v9  ;;  %1289 = vmatpush.msra.mxu2 %v3088_v9 }
 0x5bc   :  { %v2334_v55 = vpop.eup %2333 }
 0x5bd   :  { %v831_v59 = vmul.f32 %v2334_v55, %v2990_v12  ;;  %vm836_vm4 = vweird.f32 %v2334_v55  ;;  %v3090_v12 = vld [vmem:[#allocation7 + $0x48] sm:$0xff] }
 0x5be   :  { %vm837_vm6 = vmor %vm835_vm5, %vm836_vm4 }
 0x5bf   :  { %982 = vrot.lane.b32.xlu0 %v980_v3, %s2503_s1  ;;  %v832_v22 = vsub.f32 1.0, %v831_v59  ;;  %v3078_v3 = vld [vmem:[#allocation7 + $0x68] sm:$0xff]  ;;  %v3102_v59 = vld [vmem:[#allocation7 + $0x38] sm:$0xff] }
 0x5c0   :  { %1055 = vmatpush.msra.mxu1 %v3078_v3  ;;  %1307 = vmatpush.msrb.mxu3 %v3078_v3 }
 0x5c1   :  { %v833_v24 = vmul.f32 %v2334_v55, %v832_v22  ;;  %v3104_v22 = vld [vmem:[#allocation7 + $0x20] sm:$0xff] }
 0x5c2   :  { %1056 = vmatpush.msra.mxu1 %v3082_v10  ;;  %1308 = vmatpush.msrb.mxu3 %v3082_v10 }
 0x5c3   :  { %v834_v47 = vadd.f32 %v2334_v55, %v833_v24  ;;  %v3110_v24 = vld [vmem:[#allocation7 + $0x28] sm:$0xff] }
 0x5c4   :  { %1057 = vmatpush.msra.mxu1 %v3090_v12  ;;  %1309 = vmatpush.msrb.mxu3 %v3090_v12 }
 0x5c5   :  { %v838_v2 = vsel %vm837_vm6, %v2334_v55, %v834_v47  ;;  %v3100_v55 = vld [vmem:[#allocation7 + $0x30] sm:$0xff]  ;;  %v3120_v47 = vld [vmem:[#allocation7] sm:$0xff] }
 0x5c6   :  { %v843_v63 = vsel %vm840_vm7, %v842_v36, %v838_v2  ;;  %1038 = vmatpush.msrb.mxu0 %v3100_v55  ;;  %1058 = vmatpush.msra.mxu1 %v3102_v59 }
 0x5c7   :  { %1290 = vmatpush.msra.mxu2 %v3100_v55  ;;  %1310 = vmatpush.msrb.mxu3 %v3102_v59 }
 0x5c8   :  { %1039 = vmatpush.msrb.mxu0 %v3104_v22  ;;  %1059 = vmatpush.msra.mxu1 %v3110_v24 }
 0x5c9   :  { %1291 = vmatpush.msra.mxu2 %v3104_v22  ;;  %1311 = vmatpush.msrb.mxu3 %v3110_v24 }
 0x5e3   :  { %v850_v38 = vpop.permute.xlu1 %849 }
 0x5e4   :  { %v3060_v42 = vadd.f32 %v850_v38, %v846_v31  ;;  %v3112_v31 = vld [vmem:[#allocation7 + $0x10] sm:$0xff]  ;;  %v3114_v38 = vld [vmem:[#allocation7 + $0x18] sm:$0xff] }
 0x5e5   :  { %1040 = vmatpush.msrb.mxu0 %v3112_v31  ;;  %1060 = vmatpush.msra.mxu1 %v3114_v38 }
 0x5e6   :  { %2335 = vtanh.f32 %v3060_v42  ;;  %1292 = vmatpush.msra.mxu2 %v3112_v31  ;;  %1312 = vmatpush.msrb.mxu3 %v3114_v38 }
 0x5e7   :  { %1041 = vmatpush.msrb.mxu0 %v3120_v47  ;;  %1061 = vmatpush.msra.mxu1 %v3122_v48 }
 0x5e8   :  { %1293 = vmatpush.msra.mxu2 %v3120_v47  ;;  %1313 = vmatpush.msrb.mxu3 %v3122_v48 }
 0x5e9   :  { %1398 = vmatpush.msra.mxu0 %v2884_v32  ;;  %1418 = vmatpush.msrb.mxu1 %v2886_v33 }
 0x5eb   :  { %1399 = vmatpush.msra.mxu0 %v2888_v37  ;;  %1419 = vmatpush.msrb.mxu1 %v2893_v41 }
 0x5ec   :  { %v2336_v27 = vpop.eup %2335 }
 0x5ed   :  { %v3066_v14 = vmul.f32 %v2336_v27, %v843_v63  ;;  %1400 = vmatpush.msra.mxu0 %v2895_v43  ;;  %1420 = vmatpush.msrb.mxu1 %v2897_v45 }
 0x5ef   :  { %855 = vst.msk [vmem:[#allocation2] sm:$0x3] %vm339_vm12, %v3066_v14  ;;  %1401 = vmatpush.msra.mxu0 %v2910_v49  ;;  %1421 = vmatpush.msrb.mxu1 %v2912_v50 }
 0x5f1   :  { %1402 = vmatpush.msra.mxu0 %v2918_v28  ;;  %1422 = vmatpush.msrb.mxu1 %v2920_v52  ;;  %v1020_v52 = vld [vmem:[%s3406_s5] sm:$0x3] }
 0x5f3   :  { %1403 = vmatpush.msra.mxu0 %v2926_v40  ;;  %1423 = vmatpush.msrb.mxu1 %v2928_v44  ;;  %v1022_v40 = vperm.slane %v1020_v52, 0 }
 0x5f5   :  { %1404 = vmatpush.msra.mxu0 %v2936_v5  ;;  %1424 = vmatpush.msrb.mxu1 %v2938_v6 }
 0x5f7   :  { %1405 = vmatpush.msra.mxu0 %v2944_v7  ;;  %1425 = vmatpush.msrb.mxu1 %v2946_v8 }
 0x613   :  { %v75_v41 = vpop.permute.xlu2 %74 }
 0x614   :  { %v84_v43 = vmul.f32 %v78_v21, %v75_v41  ;;  %v85_v21 = vmul.f32 %v79_v30, %v75_v41 }
 0x616   :  { %v3192_v45 = vadd.f32 %v87_v25, %v84_v43  ;;  %v3202_v25 = vadd.f32 %v88_v34, %v85_v21 }
 0x629   :  { %v1138_v32 = vpop.permute.xlu0 %1137 }
 0x62a   :  { %2217 = vmatmul.msk.f32.vlgmr.msrb.gmra.mxu2 %vm112_vm9, %v1138_v32  ;;  %2218 = vmatmul.msk.f32.vlgmr.msra.gmra.mxu3 %vm112_vm9, %v1138_v32 }
 0x631   :  { %v983_v33 = vpop.permute.xlu0 %982 }
 0x632   :  { %986 = vst.msk [vmem:[#allocation2 - $0x6] sm:$0xc0] %vm985_vm10, %v983_v33 }
 0x639   :  { %v987_v37 = vld [vmem:[#allocation2] sm:$0x3] }
 0x63a   :  { %1042 = vmatmul.f32.vlgmr.msrb.gmra.mxu0 %v987_v37  ;;  %1062 = vmatmul.f32.vlgmr.msra.gmra.mxu1 %v987_v37 }
 0x63b   :  { %1533 = vmatpush.msrb.mxu0 %v2992_v13  ;;  %1553 = vmatpush.msra.mxu1 %v2994_v15 }
 0x63d   :  { %1534 = vmatpush.msrb.mxu0 %v2996_v46  ;;  %1554 = vmatpush.msra.mxu1 %v3001_v16 }
 0x63f   :  { %1535 = vmatpush.msrb.mxu0 %v3003_v17  ;;  %1555 = vmatpush.msra.mxu1 %v3005_v18 }
 0x641   :  { %1536 = vmatpush.msrb.mxu0 %v3011_v29  ;;  %1556 = vmatpush.msra.mxu1 %v3013_v19 }
 0x643   :  { %1537 = vmatpush.msrb.mxu0 %v3019_v53  ;;  %1557 = vmatpush.msra.mxu1 %v3021_v54  ;;  %v1023_v53 = vperm.slane %v1020_v52, 1 }
 0x645   :  { %1538 = vmatpush.msrb.mxu0 %v3027_v57  ;;  %1558 = vmatpush.msra.mxu1 %v3029_v58  ;;  %v1223_v57 = vrot.slane %v2985_v51, 6 }
 0x647   :  { %1539 = vmatpush.msrb.mxu0 %v3036_v60  ;;  %1559 = vmatpush.msra.mxu1 %v3038_v61 }
 0x649   :  { %1540 = vmatpush.msrb.mxu0 %v3044_v0  ;;  %1560 = vmatpush.msra.mxu1 %v3046_v11 }
 0x64b   :  { %1541 = vmatpush.msrb.mxu0 %v3070_v62  ;;  %1561 = vmatpush.msra.mxu1 %v3072_v35 }
 0x64d   :  { %1542 = vmatpush.msrb.mxu0 %v3074_v39  ;;  %1562 = vmatpush.msra.mxu1 %v3078_v3 }
 0x64f   :  { %1543 = vmatpush.msrb.mxu0 %v3080_v4  ;;  %1563 = vmatpush.msra.mxu1 %v3082_v10 }
 0x651   :  { %1544 = vmatpush.msrb.mxu0 %v3088_v9  ;;  %1564 = vmatpush.msra.mxu1 %v3090_v12 }
 0x653   :  { %1545 = vmatpush.msrb.mxu0 %v3100_v55  ;;  %1565 = vmatpush.msra.mxu1 %v3102_v59 }
 0x655   :  { %1546 = vmatpush.msrb.mxu0 %v3104_v22  ;;  %1566 = vmatpush.msra.mxu1 %v3110_v24 }
 0x657   :  { %1547 = vmatpush.msrb.mxu0 %v3112_v31  ;;  %1567 = vmatpush.msra.mxu1 %v3114_v38 }
 0x659   :  { %1548 = vmatpush.msrb.mxu0 %v3120_v47  ;;  %1568 = vmatpush.msra.mxu1 %v3122_v48 }
 0x6ad   :  { %v1158_v49 = vpop.f32.mrf.mxu2  ;;  %v1178_v13 = vpop.f32.mrf.mxu3 }
 0x6ae   :  { %v1181_v50 = vadd.f32 %v1158_v49, %v3192_v45  ;;  %v1182_v46 = vadd.f32 %v1178_v13, %v3202_v25 }
 0x6b0   :  { %v2219_v28 = vmul.f32 -1.442695, %v1181_v50  ;;  %v2220_v55 = vmul.f32 -1.442695, %v1182_v46 }
 0x6b2   :  { %2337 = vpow2.f32 %v2219_v28 }
 0x6b7   :  { %v1043_v44 = vpop.f32.mrf.mxu0  ;;  %v1063_v23 = vpop.f32.mrf.mxu1 }
 0x6b8   :  { %v2338_v5 = vpop.eup %2337  ;;  %v1044_v6 = vadd.f32 %v1043_v44, %v1022_v40  ;;  %v1064_v11 = vadd.f32 %v1063_v23, %v1023_v53 }
 0x6b9   :  { %v1189_v7 = vadd.f32 1.0, %v2338_v5 }
 0x6ba   :  { %v2215_v8 = vmul.f32 -1.442695, %v1044_v6  ;;  %v2216_v22 = vmul.f32 -1.442695, %v1064_v11 }
 0x6bb   :  { %2339 = vrcp.f32 %v1189_v7  ;;  %v1202_v19 = vand.u32 2147483648, %v1189_v7  ;;  %v1200_v30 = vand.u32 2147483647, %v1189_v7  ;;  %vm1196_vm14 = vweird.f32 %v1189_v7 }
 0x6bc   :  { %2341 = vpow2.f32 %v2215_v8 }
 0x6bd   :  { %2343 = vtanh.f32 %v1182_v46  ;;  %v1203_v34 = vor.u32 1.1754944e-38, %v1202_v19  ;;  %vm1201_vm0 = vcmp.eq.f32.partialorder %v1200_v30, 8.507059e+37 }
 0x6c1   :  { %v2340_v15 = vpop.eup %2339 }
 0x6c2   :  { %v1192_v16 = vmul.f32 %v2340_v15, %v1189_v7  ;;  %v2342_v17 = vpop.eup %2341  ;;  %vm1197_vm11 = vweird.f32 %v2340_v15 }
 0x6c3   :  { %v1072_v18 = vadd.f32 1.0, %v2342_v17  ;;  %vm1198_vm15 = vmor %vm1196_vm14, %vm1197_vm11  ;;  %v2344_v60 = vpop.eup %2343 }
 0x6c4   :  { %v1193_v29 = vsub.f32 1.0, %v1192_v16 }
 0x6c5   :  { %2345 = vrcp.f32 %v1072_v18  ;;  %v1085_v62 = vand.u32 2147483648, %v1072_v18  ;;  %v1083_v39 = vand.u32 2147483647, %v1072_v18  ;;  %vm1079_vm3 = vweird.f32 %v1072_v18 }
 0x6c6   :  { %v1194_v20 = vmul.f32 %v2340_v15, %v1193_v29  ;;  %2347 = vtanh.f32 %v1064_v11 }
 0x6c7   :  { %v1086_v51 = vor.u32 1.1754944e-38, %v1085_v62  ;;  %vm1084_vm5 = vcmp.eq.f32.partialorder %v1083_v39, 8.507059e+37  ;;  %2349 = vpow2.f32 %v2220_v55 }
 0x6c8   :  { %v1195_v54 = vadd.f32 %v2340_v15, %v1194_v20  ;;  %2351 = vpow2.f32 %v2216_v22 }
 0x6ca   :  { %v1199_v58 = vsel %vm1198_vm15, %v2340_v15, %v1195_v54 }
 0x6cb   :  { %v1204_v61 = vsel %vm1201_vm0, %v1203_v34, %v1199_v58  ;;  %v2346_v0 = vpop.eup %2345  ;;  %v1272_v58 = vld [vmem:[%s3406_s5] sm:$0x3] }
 0x6cc   :  { %v1226_v2 = vmul.f32 %v2344_v60, %v1204_v61  ;;  %v1225_v36 = vmul.f32 %v1223_v57, %v1204_v61  ;;  %v1075_v27 = vmul.f32 %v2346_v0, %v1072_v18  ;;  %vm1080_vm1 = vweird.f32 %v2346_v0  ;;  %v2348_v10 = vpop.eup %2347 }
 0x6cd   :  { %vm1081_vm4 = vmor %vm1079_vm3, %vm1080_vm1  ;;  %v2350_v59 = vpop.eup %2349  ;;  %v1274_v60 = vperm.slane %v1272_v58, 0 }
 0x6ce   :  { %1228 = vrot.lane.b32.xlu1 %v1226_v2, %s2503_s1  ;;  %v1076_v63 = vsub.f32 1.0, %v1075_v27  ;;  %v1190_v24 = vadd.f32 1.0, %v2350_v59  ;;  %v2352_v31 = vpop.eup %2351  ;;  %v1275_v59 = vperm.slane %v1272_v58, 1  ;;  %v1636_v58 = vld [vmem:[#allocation5 + $0x48] sm:$0xff] }
 0x6cf   :  { %v1073_v47 = vadd.f32 1.0, %v2352_v31 }
 0x6d0   :  { %v1077_v35 = vmul.f32 %v2346_v0, %v1076_v63  ;;  %2353 = vrcp.f32 %v1190_v24  ;;  %v1217_v50 = vand.u32 2147483648, %v1190_v24  ;;  %vm1211_vm7 = vweird.f32 %v1190_v24 }
 0x6d1   :  { %2355 = vrcp.f32 %v1073_v47  ;;  %v1215_v28 = vand.u32 2147483647, %v1190_v24  ;;  %v1100_v16 = vand.u32 2147483648, %v1073_v47  ;;  %vm1094_vm0 = vweird.f32 %v1073_v47 }
 0x6d2   :  { %v1078_v3 = vadd.f32 %v2346_v0, %v1077_v35  ;;  %v1218_v44 = vor.u32 1.1754944e-38, %v1217_v50  ;;  %v1098_v17 = vand.u32 2147483647, %v1073_v47 }
 0x6d3   :  { %vm1216_vm14 = vcmp.eq.f32.partialorder %v1215_v28, 8.507059e+37  ;;  %v1101_v29 = vor.u32 1.1754944e-38, %v1100_v16 }
 0x6d4   :  { %v1082_v4 = vsel %vm1081_vm4, %v2346_v0, %v1078_v3  ;;  %vm1099_vm3 = vcmp.eq.f32.partialorder %v1098_v17, 8.507059e+37 }
 0x6d5   :  { %v1087_v9 = vsel %vm1084_vm5, %v1086_v51, %v1082_v4 }
 0x6d6   :  { %v1106_v12 = vmul.f32 %v2348_v10, %v1087_v9  ;;  %v2354_v38 = vpop.eup %2353  ;;  %v1105_v7 = vmul.f32 %v1087_v9, %v3060_v42 }
 0x6d7   :  { %v1207_v48 = vmul.f32 %v2354_v38, %v1190_v24  ;;  %v2356_v32 = vpop.eup %2355  ;;  %vm1212_vm6 = vweird.f32 %v2354_v38 }
 0x6d8   :  { %1108 = vrot.lane.b32.xlu0 %v1106_v12, %s2503_s1  ;;  %v1090_v41 = vmul.f32 %v2356_v32, %v1073_v47  ;;  %vm1213_vm11 = vmor %vm1211_vm7, %vm1212_vm6  ;;  %vm1095_vm15 = vweird.f32 %v2356_v32 }
 0x6d9   :  { %v1208_v26 = vsub.f32 1.0, %v1207_v48  ;;  %vm1096_vm1 = vmor %vm1094_vm0, %vm1095_vm15 }
 0x6da   :  { %v1091_v52 = vsub.f32 1.0, %v1090_v41 }
 0x6db   :  { %v1209_v33 = vmul.f32 %v2354_v38, %v1208_v26 }
 0x6dc   :  { %v1092_v6 = vmul.f32 %v2356_v32, %v1091_v52 }
 0x6dd   :  { %v1210_v49 = vadd.f32 %v2354_v38, %v1209_v33 }
 0x6de   :  { %v1093_v46 = vadd.f32 %v2356_v32, %v1092_v6 }
 0x6df   :  { %v1214_v40 = vsel %vm1213_vm11, %v2354_v38, %v1210_v49 }
 0x6e0   :  { %v1219_v21 = vsel %vm1216_vm14, %v1218_v44, %v1214_v40  ;;  %v1097_v18 = vsel %vm1096_vm1, %v2356_v32, %v1093_v46 }
 0x6e1   :  { %v1102_v20 = vsel %vm1099_vm3, %v1101_v29, %v1097_v18 }
 0x740   :  { %v1229_v37 = vpop.permute.xlu1 %1228 }
 0x741   :  { %v3208_v43 = vadd.f32 %v1229_v37, %v1225_v36 }
 0x743   :  { %2357 = vtanh.f32 %v3208_v43  ;;  %v1478_v24 = vrot.slane %v3208_v43, 6 }
 0x749   :  { %v2358_v5 = vpop.eup %2357 }
 0x74a   :  { %v1233_v8 = vmul.f32 %v2358_v5, %v1219_v21  ;;  %v1109_v13 = vpop.permute.xlu0 %1108 }
 0x74b   :  { %v3212_v15 = vadd.f32 %v1109_v13, %v1105_v7 }
 0x74c   :  { %1235 = vrot.lane.b32.xlu2 %v1233_v8, %s2503_s1 }
 0x74d   :  { %2359 = vtanh.f32 %v3212_v15 }
 0x753   :  { %v2360_v19 = vpop.eup %2359 }
 0x754   :  { %v3216_v42 = vmul.f32 %v2360_v19, %v1102_v20  ;;  %v1641_v19 = vld [vmem:[#allocation5 + $0x70] sm:$0xff]  ;;  %v1642_v20 = vld [vmem:[#allocation5 + $0x78] sm:$0xff] }
 0x755   :  { %1656 = vmatpush.msrb.mxu2 %v1641_v19  ;;  %1676 = vmatpush.msra.mxu3 %v1642_v20 }
 0x756   :  { %1114 = vst.msk [vmem:[#allocation2] sm:$0x3] %vm339_vm12, %v3216_v42 }
 0x7a6   :  { %v1236_v30 = vpop.permute.xlu2 %1235 }
 0x7a7   :  { %1238 = vst.msk [vmem:[#allocation2] sm:$0x3] %vm210_vm8, %v1236_v30  ;;  %2223 = vmatmul.msk.f32.vlgmr.msra.gmra.mxu0 %vm112_vm9, %v1236_v30  ;;  %2224 = vmatmul.msk.f32.vlgmr.msrb.gmra.mxu1 %vm112_vm9, %v1236_v30  ;;  %v1639_v30 = vld [vmem:[#allocation5 + $0x60] sm:$0xff] }
 0x7a8   :  { %1914 = vmatpush.msra.mxu0 %v1641_v19  ;;  %1934 = vmatpush.msrb.mxu1 %v1642_v20 }
 0x7a9   :  { %1657 = vmatpush.msrb.mxu2 %v1639_v30 }
 0x7aa   :  { %1915 = vmatpush.msra.mxu0 %v1639_v30 }
 0x7ae   :  { %v1239_v53 = vld [vmem:[#allocation2] sm:$0x3] }
 0x7af   :  { %1294 = vmatmul.f32.vlgmr.msra.gmra.mxu2 %v1239_v53  ;;  %1314 = vmatmul.f32.vlgmr.msrb.gmra.mxu3 %v1239_v53  ;;  %v1640_v53 = vld [vmem:[#allocation5 + $0x68] sm:$0xff] }
 0x7b0   :  { %1677 = vmatpush.msra.mxu3 %v1640_v53  ;;  %1935 = vmatpush.msrb.mxu1 %v1640_v53 }
 0x824   :  { %v1407_v54 = vpop.f32.mrf.mxu0  ;;  %v1427_v2 = vpop.f32.mrf.mxu1 }
 0x825   :  { %v1432_v23 = vrot.slane %v1407_v54, 6  ;;  %v1433_v63 = vrot.slane %v1427_v2, 6 }
 0x827   :  { %v1436_v34 = vadd.f32 %v1432_v23, %v3192_v45  ;;  %v1437_v35 = vadd.f32 %v1433_v63, %v3202_v25  ;;  %v1637_v23 = vld [vmem:[#allocation5 + $0x50] sm:$0xff] }
 0x828   :  { %1658 = vmatpush.msrb.mxu2 %v1637_v23  ;;  %1916 = vmatpush.msra.mxu0 %v1637_v23 }
 0x829   :  { %v2225_v57 = vmul.f32 -1.442695, %v1436_v34  ;;  %v2226_v7 = vmul.f32 -1.442695, %v1437_v35  ;;  %v1638_v34 = vld [vmem:[#allocation5 + $0x58] sm:$0xff] }
 0x82a   :  { %1678 = vmatpush.msra.mxu3 %v1638_v34  ;;  %1936 = vmatpush.msrb.mxu1 %v1638_v34 }
 0x82b   :  { %2361 = vpow2.f32 %v2225_v57  ;;  %v1635_v57 = vld [vmem:[#allocation5 + $0x40] sm:$0xff] }
 0x82c   :  { %1659 = vmatpush.msrb.mxu2 %v1635_v57  ;;  %1679 = vmatpush.msra.mxu3 %v1636_v58 }
 0x82d   :  { %1917 = vmatpush.msra.mxu0 %v1635_v57  ;;  %1937 = vmatpush.msrb.mxu1 %v1636_v58 }
 0x831   :  { %v2362_v61 = vpop.eup %2361 }
 0x832   :  { %v1444_v0 = vadd.f32 1.0, %v2362_v61  ;;  %v1295_v11 = vpop.f32.mrf.mxu2  ;;  %v1315_v31 = vpop.f32.mrf.mxu3  ;;  %v1633_v61 = vld [vmem:[#allocation5 + $0x30] sm:$0xff] }
 0x833   :  { %v1296_v36 = vadd.f32 %v1295_v11, %v1274_v60  ;;  %v1316_v37 = vadd.f32 %v1315_v31, %v1275_v59  ;;  %1660 = vmatpush.msrb.mxu2 %v1633_v61  ;;  %1918 = vmatpush.msra.mxu0 %v1633_v61 }
 0x834   :  { %2363 = vrcp.f32 %v1444_v0  ;;  %v1457_v10 = vand.u32 2147483648, %v1444_v0  ;;  %v1455_v12 = vand.u32 2147483647, %v1444_v0  ;;  %vm1451_vm5 = vweird.f32 %v1444_v0 }
 0x835   :  { %v2221_v27 = vmul.f32 -1.442695, %v1296_v36  ;;  %v2222_v13 = vmul.f32 -1.442695, %v1316_v37  ;;  %v1631_v36 = vld [vmem:[#allocation5 + $0x20] sm:$0xff] }
 0x836   :  { %v1458_v22 = vor.u32 1.1754944e-38, %v1457_v10  ;;  %vm1456_vm7 = vcmp.eq.f32.partialorder %v1455_v12, 8.507059e+37  ;;  %1661 = vmatpush.msrb.mxu2 %v1631_v36  ;;  %v1627_v10 = vld [vmem:[#allocation5] sm:$0xff]  ;;  %1919 = vmatpush.msra.mxu0 %v1631_v36 }
 0x837   :  { %2365 = vpow2.f32 %v2221_v27  ;;  %v1632_v27 = vld [vmem:[#allocation5 + $0x28] sm:$0xff] }
 0x838   :  { %2367 = vtanh.f32 %v1437_v35 }
 0x83a   :  { %v2364_v62 = vpop.eup %2363 }
 0x83b   :  { %v1447_v39 = vmul.f32 %v2364_v62, %v1444_v0  ;;  %vm1452_vm4 = vweird.f32 %v2364_v62  ;;  %v1634_v0 = vld [vmem:[#allocation5 + $0x38] sm:$0xff] }
 0x83c   :  { %vm1453_vm6 = vmor %vm1451_vm5, %vm1452_vm4  ;;  %1680 = vmatpush.msra.mxu3 %v1634_v0  ;;  %1938 = vmatpush.msrb.mxu1 %v1634_v0 }
 0x83d   :  { %v2366_v3 = vpop.eup %2365  ;;  %v1448_v51 = vsub.f32 1.0, %v1447_v39  ;;  %v1629_v39 = vld [vmem:[#allocation5 + $0x10] sm:$0xff] }
 0x83e   :  { %v1324_v4 = vadd.f32 1.0, %v2366_v3  ;;  %v2368_v47 = vpop.eup %2367  ;;  %v1630_v3 = vld [vmem:[#allocation5 + $0x18] sm:$0xff]  ;;  %1681 = vmatpush.msra.mxu3 %v1632_v27  ;;  %1939 = vmatpush.msrb.mxu1 %v1632_v27 }
 0x83f   :  { %v1449_v9 = vmul.f32 %v2364_v62, %v1448_v51  ;;  %1662 = vmatpush.msrb.mxu2 %v1629_v39  ;;  %1920 = vmatpush.msra.mxu0 %v1629_v39 }
 0x840   :  { %2369 = vrcp.f32 %v1324_v4  ;;  %v1337_v50 = vand.u32 2147483648, %v1324_v4  ;;  %v1335_v52 = vand.u32 2147483647, %v1324_v4  ;;  %vm1331_vm14 = vweird.f32 %v1324_v4  ;;  %1682 = vmatpush.msra.mxu3 %v1630_v3  ;;  %1940 = vmatpush.msrb.mxu1 %v1630_v3 }
 0x841   :  { %v1450_v55 = vadd.f32 %v2364_v62, %v1449_v9  ;;  %2371 = vtanh.f32 %v1316_v37  ;;  %v1628_v9 = vld [vmem:[#allocation5 + $0x8] sm:$0xff]  ;;  %1663 = vmatpush.msrb.mxu2 %v1627_v10  ;;  %1921 = vmatpush.msra.mxu0 %v1627_v10 }
 0x842   :  { %v1338_v40 = vor.u32 1.1754944e-38, %v1337_v50  ;;  %vm1336_vm0 = vcmp.eq.f32.partialorder %v1335_v52, 8.507059e+37  ;;  %2373 = vpow2.f32 %v2226_v7  ;;  %1683 = vmatpush.msra.mxu3 %v1628_v9  ;;  %1941 = vmatpush.msrb.mxu1 %v1628_v9 }
 0x843   :  { %v1454_v38 = vsel %vm1453_vm6, %v2364_v62, %v1450_v55  ;;  %2375 = vpow2.f32 %v2222_v13 }
 0x844   :  { %v1459_v48 = vsel %vm1456_vm7, %v1458_v22, %v1454_v38 }
 0x845   :  { %v1481_v26 = vmul.f32 %v2368_v47, %v1459_v48  ;;  %v3229_v32 = vmul.f32 %v1478_v24, %v1459_v48 }
 0x846   :  { %v2370_v33 = vpop.eup %2369 }
 0x847   :  { %v1327_v41 = vmul.f32 %v2370_v33, %v1324_v4  ;;  %1483 = vrot.lane.b32.xlu1 %v1481_v26, %s2503_s1  ;;  %vm1332_vm11 = vweird.f32 %v2370_v33  ;;  %v2372_v5 = vpop.eup %2371 }
 0x848   :  { %vm1333_vm15 = vmor %vm1331_vm14, %vm1332_vm11  ;;  %v2374_v8 = vpop.eup %2373 }
 0x849   :  { %v1328_v49 = vsub.f32 1.0, %v1327_v41  ;;  %v3236_v46 = vadd.f32 1.0, %v2374_v8  ;;  %v2376_v16 = vpop.eup %2375 }
 0x84a   :  { %v3241_v18 = vadd.f32 1.0, %v2376_v16 }
 0x84b   :  { %v1329_v28 = vmul.f32 %v2370_v33, %v1328_v49  ;;  %2377 = vrcp.f32 %v3236_v46  ;;  %v1472_v51 = vand.u32 2147483648, %v3236_v46  ;;  %vm1466_vm3 = vweird.f32 %v3236_v46 }
 0x84c   :  { %2379 = vrcp.f32 %v3241_v18  ;;  %v1470_v4 = vand.u32 2147483647, %v3236_v46  ;;  %v1352_v37 = vand.u32 2147483648, %v3241_v18  ;;  %vm1346_vm7 = vweird.f32 %v3241_v18 }
 0x84d   :  { %v1330_v43 = vadd.f32 %v2370_v33, %v1329_v28  ;;  %v1473_v59 = vor.u32 1.1754944e-38, %v1472_v51 }
 0x84e   :  { %vm1471_vm5 = vcmp.eq.f32.partialorder %v1470_v4, 8.507059e+37  ;;  %v1353_v49 = vor.u32 1.1754944e-38, %v1352_v37 }
 0x84f   :  { %v1334_v44 = vsel %vm1333_vm15, %v2370_v33, %v1330_v43 }
 0x850   :  { %v3232_v6 = vsel %vm1336_vm0, %v1338_v40, %v1334_v44 }
 0x851   :  { %v1358_v21 = vmul.f32 %v2372_v5, %v3232_v6  ;;  %v3239_v17 = vpop.eup %2377  ;;  %v1357_v47 = vmul.f32 %v3232_v6, %v3212_v15  ;;  %v1350_v15 = vand.u32 2147483647, %v3241_v18 }
 0x852   :  { %v1462_v29 = vmul.f32 %v3239_v17, %v3236_v46  ;;  %v3247_v11 = vpop.eup %2379  ;;  %vm1467_vm1 = vweird.f32 %v3239_v17 }
 0x853   :  { %1360 = vrot.lane.b32.xlu0 %v1358_v21, %s2503_s1  ;;  %v1342_v62 = vmul.f32 %v3247_v11, %v3241_v18  ;;  %vm1468_vm4 = vmor %vm1466_vm3, %vm1467_vm1  ;;  %vm1347_vm6 = vweird.f32 %v3247_v11  ;;  %vm1351_vm14 = vcmp.eq.f32.partialorder %v1350_v15, 8.507059e+37 }
 0x854   :  { %v1463_v54 = vsub.f32 1.0, %v1462_v29  ;;  %vm1348_vm11 = vmor %vm1346_vm7, %vm1347_vm6 }
 0x855   :  { %v1343_v12 = vsub.f32 1.0, %v1342_v62 }
 0x856   :  { %v1464_v60 = vmul.f32 %v3239_v17, %v1463_v54 }
 0x857   :  { %v1344_v38 = vmul.f32 %v3247_v11, %v1343_v12 }
 0x858   :  { %v1465_v35 = vadd.f32 %v3239_v17, %v1464_v60 }
 0x859   :  { %v1345_v33 = vadd.f32 %v3247_v11, %v1344_v38 }
 0x85a   :  { %v1469_v55 = vsel %vm1468_vm4, %v3239_v17, %v1465_v35  ;;  %v1527_v17 = vld [vmem:[%s3406_s5] sm:$0x3] }
 0x85b   :  { %v1474_v24 = vsel %vm1471_vm5, %v1473_v59, %v1469_v55  ;;  %v1349_v41 = vsel %vm1348_vm11, %v3247_v11, %v1345_v33  ;;  %v1529_v18 = vperm.slane %v1527_v17, 0  ;;  %v1530_v3 = vperm.slane %v1527_v17, 1 }
 0x85c   :  { %v1354_v28 = vsel %vm1351_vm14, %v1353_v49, %v1349_v41 }
 0x8b9   :  { %v1484_v2 = vpop.permute.xlu1 %1483 }
 0x8ba   :  { %v3250_v63 = vadd.f32 %v1484_v2, %v3229_v32 }
 0x8bc   :  { %2381 = vtanh.f32 %v3250_v63  ;;  %v1736_v0 = vrot.slane %v3250_v63, 6 }
 0x8c2   :  { %v2382_v22 = vpop.eup %2381 }
 0x8c3   :  { %v1488_v31 = vmul.f32 %v2382_v22, %v1474_v24 }
 0x8c5   :  { %1490 = vrot.lane.b32.xlu1 %v1488_v31, %s2503_s1  ;;  %v1361_v48 = vpop.permute.xlu0 %1360  ;;  %v1643_v26 = vrot.slane %v1488_v31, 2 }
 0x8c6   :  { %v3267_v32 = vadd.f32 %v1361_v48, %v1357_v47 }
 0x8c7   :  { %1644 = vrot.lane.b32.xlu2 %v1643_v26, %s2503_s1 }
 0x8c8   :  { %2383 = vtanh.f32 %v3267_v32 }
 0x8ce   :  { %v2384_v50 = vpop.eup %2383 }
 0x8cf   :  { %v3277_v52 = vmul.f32 %v2384_v50, %v1354_v28 }
 0x8d1   :  { %1366 = vst.msk [vmem:[#allocation2] sm:$0x3] %vm339_vm12, %v3277_v52 }
 0x921   :  { %v1645_v43 = vpop.permute.xlu2 %1644 }
 0x922   :  { %2229 = vmatmul.msk.f32.vlgmr.msrb.gmra.mxu2 %vm112_vm9, %v1645_v43  ;;  %2230 = vmatmul.msk.f32.vlgmr.msra.gmra.mxu3 %vm112_vm9, %v1645_v43 }
 0x937   :  { %v1491_v40 = vpop.permute.xlu1 %1490 }
 0x938   :  { %1493 = vst.msk [vmem:[#allocation2 - $0x2] sm:$0xc] %vm467_vm13, %v1491_v40 }
 0x93f   :  { %v1494_v44 = vld [vmem:[#allocation2] sm:$0x3] }
 0x940   :  { %1549 = vmatmul.f32.vlgmr.msrb.gmra.mxu0 %v1494_v44  ;;  %1569 = vmatmul.f32.vlgmr.msra.gmra.mxu1 %v1494_v44 }
 0x9a5   :  { %v1665_v5 = vpop.f32.mrf.mxu2  ;;  %v1685_v46 = vpop.f32.mrf.mxu3 }
 0x9a6   :  { %v1690_v6 = vrot.slane %v1665_v5, 4  ;;  %v1691_v16 = vrot.slane %v1685_v46, 4 }
 0x9a8   :  { %v1694_v21 = vadd.f32 %v1690_v6, %v3192_v45  ;;  %v1695_v19 = vadd.f32 %v1691_v16, %v3202_v25 }
 0x9aa   :  { %v2231_v7 = vmul.f32 -1.442695, %v1694_v21  ;;  %v2232_v26 = vmul.f32 -1.442695, %v1695_v19 }
 0x9ac   :  { %2385 = vpow2.f32 %v2231_v7 }
 0x9b2   :  { %v2386_v8 = vpop.eup %2385 }
 0x9b3   :  { %v1702_v13 = vadd.f32 1.0, %v2386_v8 }
 0x9b5   :  { %2387 = vrcp.f32 %v1702_v13  ;;  %v1715_v23 = vand.u32 2147483648, %v1702_v13  ;;  %v1713_v58 = vand.u32 2147483647, %v1702_v13  ;;  %vm1709_vm15 = vweird.f32 %v1702_v13 }
 0x9b6   :  { %2389 = vtanh.f32 %v1695_v19  ;;  %v1784_v19 = vld [vmem:[#allocation7 + $0xf8] sm:$0xff] }
 0x9b7   :  { %v1716_v61 = vor.u32 1.1754944e-38, %v1715_v23  ;;  %vm1714_vm1 = vcmp.eq.f32.partialorder %v1713_v58, 8.507059e+37  ;;  %1811 = vmatpush.msrb.mxu3 %v1784_v19  ;;  %2069 = vmatpush.msra.mxu1 %v1784_v19  ;;  %v1777_v23 = vld [vmem:[#allocation7 + $0xc0] sm:$0xff]  ;;  %v1776_v58 = vld [vmem:[#allocation7 + $0xb8] sm:$0xff] }
 0x9bb   :  { %v2388_v29 = vpop.eup %2387 }
 0x9bc   :  { %v1705_v20 = vmul.f32 %v2388_v29, %v1702_v13  ;;  %vm1710_vm13 = vweird.f32 %v2388_v29  ;;  %v2390_v2 = vpop.eup %2389 }
 0x9bd   :  { %v1550_v30 = vpop.f32.mrf.mxu0  ;;  %vm1711_vm0 = vmor %vm1709_vm15, %vm1710_vm13  ;;  %v1570_v51 = vpop.f32.mrf.mxu1 }
 0x9be   :  { %v1551_v53 = vadd.f32 %v1550_v30, %v1529_v18  ;;  %v1706_v54 = vsub.f32 1.0, %v1705_v20  ;;  %v1571_v10 = vadd.f32 %v1570_v51, %v1530_v3  ;;  %v1781_v20 = vld [vmem:[#allocation7 + $0xe0] sm:$0xff]  ;;  %v1782_v30 = vld [vmem:[#allocation7 + $0xe8] sm:$0xff]  ;;  %v1768_v3 = vld [vmem:[#allocation7 + $0x78] sm:$0xff] }
 0x9bf   :  { %1812 = vmatpush.msrb.mxu3 %v1782_v30  ;;  %2070 = vmatpush.msra.mxu1 %v1782_v30  ;;  %v1765_v51 = vld [vmem:[#allocation7 + $0x60] sm:$0xff] }
 0x9c0   :  { %v2227_v34 = vmul.f32 -1.442695, %v1551_v53  ;;  %v1707_v57 = vmul.f32 %v2388_v29, %v1706_v54  ;;  %v2228_v13 = vmul.f32 -1.442695, %v1571_v10  ;;  %v1779_v53 = vld [vmem:[#allocation7 + $0xd0] sm:$0xff]  ;;  %v1780_v54 = vld [vmem:[#allocation7 + $0xd8] sm:$0xff] }
 0x9c1   :  { %1813 = vmatpush.msrb.mxu3 %v1780_v54  ;;  %2071 = vmatpush.msra.mxu1 %v1780_v54 }
 0x9c2   :  { %2391 = vpow2.f32 %v2227_v34  ;;  %v1708_v60 = vadd.f32 %v2388_v29, %v1707_v57  ;;  %v1778_v34 = vld [vmem:[#allocation7 + $0xc8] sm:$0xff]  ;;  %v1775_v57 = vld [vmem:[#allocation7 + $0xb0] sm:$0xff] }
 0x9c3   :  { %1814 = vmatpush.msrb.mxu3 %v1778_v34  ;;  %2072 = vmatpush.msra.mxu1 %v1778_v34 }
 0x9c4   :  { %v1712_v11 = vsel %vm1711_vm0, %v2388_v29, %v1708_v60  ;;  %v1783_v29 = vld [vmem:[#allocation7 + $0xf0] sm:$0xff] }
 0x9c5   :  { %v1717_v36 = vsel %vm1714_vm1, %v1716_v61, %v1712_v11  ;;  %1791 = vmatpush.msra.mxu2 %v1783_v29  ;;  %2049 = vmatpush.msrb.mxu0 %v1783_v29  ;;  %v1773_v61 = vld [vmem:[#allocation7 + $0xa0] sm:$0xff] }
 0x9c6   :  { %v1739_v27 = vmul.f32 %v2390_v2, %v1717_v36  ;;  %v1738_v62 = vmul.f32 %v1736_v0, %v1717_v36  ;;  %v1774_v0 = vld [vmem:[#allocation7 + $0xa8] sm:$0xff]  ;;  %1815 = vmatpush.msrb.mxu3 %v1776_v58  ;;  %v1771_v2 = vld [vmem:[#allocation7 + $0x90] sm:$0xff]  ;;  %v1772_v36 = vld [vmem:[#allocation7 + $0x98] sm:$0xff]  ;;  %2073 = vmatpush.msra.mxu1 %v1776_v58 }
 0x9c7   :  { %1792 = vmatpush.msra.mxu2 %v1781_v20  ;;  %2050 = vmatpush.msrb.mxu0 %v1781_v20 }
 0x9c8   :  { %v2392_v35 = vpop.eup %2391  ;;  %1741 = vrot.lane.b32.xlu2 %v1739_v27, %s2503_s1  ;;  %1816 = vmatpush.msrb.mxu3 %v1774_v0  ;;  %v1769_v27 = vld [vmem:[#allocation7 + $0x80] sm:$0xff] }
 0x9c9   :  { %v1579_v39 = vadd.f32 1.0, %v2392_v35  ;;  %1793 = vmatpush.msra.mxu2 %v1779_v53  ;;  %2051 = vmatpush.msrb.mxu0 %v1779_v53 }
 0x9ca   :  { %2074 = vmatpush.msra.mxu1 %v1774_v0  ;;  %1817 = vmatpush.msrb.mxu3 %v1772_v36 }
 0x9cb   :  { %2393 = vrcp.f32 %v1579_v39  ;;  %v1592_v55 = vand.u32 2147483648, %v1579_v39  ;;  %v1590_v59 = vand.u32 2147483647, %v1579_v39  ;;  %vm1586_vm4 = vweird.f32 %v1579_v39  ;;  %1794 = vmatpush.msra.mxu2 %v1777_v23  ;;  %2052 = vmatpush.msrb.mxu0 %v1777_v23 }
 0x9cc   :  { %2395 = vtanh.f32 %v1571_v10  ;;  %2075 = vmatpush.msra.mxu1 %v1772_v36 }
 0x9cd   :  { %v1593_v24 = vor.u32 1.1754944e-38, %v1592_v55  ;;  %vm1591_vm6 = vcmp.eq.f32.partialorder %v1590_v59, 8.507059e+37  ;;  %2397 = vpow2.f32 %v2232_v26  ;;  %1795 = vmatpush.msra.mxu2 %v1775_v57  ;;  %2053 = vmatpush.msrb.mxu0 %v1775_v57  ;;  %v1761_v59 = vld [vmem:[#allocation7 + $0x40] sm:$0xff] }
 0x9cf   :  { %1796 = vmatpush.msra.mxu2 %v1773_v61  ;;  %2054 = vmatpush.msrb.mxu0 %v1773_v61 }
 0x9d1   :  { %v2394_v4 = vpop.eup %2393  ;;  %1797 = vmatpush.msra.mxu2 %v1771_v2  ;;  %2055 = vmatpush.msrb.mxu0 %v1771_v2 }
 0x9d2   :  { %v1582_v9 = vmul.f32 %v2394_v4, %v1579_v39  ;;  %vm1587_vm3 = vweird.f32 %v2394_v4  ;;  %v2396_v38 = vpop.eup %2395  ;;  %v1767_v39 = vld [vmem:[#allocation7 + $0x70] sm:$0xff] }
 0x9d3   :  { %vm1588_vm5 = vmor %vm1586_vm4, %vm1587_vm3  ;;  %v2398_v33 = vpop.eup %2397  ;;  %1798 = vmatpush.msra.mxu2 %v1769_v27  ;;  %2056 = vmatpush.msrb.mxu0 %v1769_v27 }
 0x9d4   :  { %v1583_v12 = vsub.f32 1.0, %v1582_v9  ;;  %v1703_v37 = vadd.f32 1.0, %v2398_v33  ;;  %v1763_v9 = vld [vmem:[#allocation7 + $0x50] sm:$0xff] }
 0x9d5   :  { %1799 = vmatpush.msra.mxu2 %v1767_v39  ;;  %2057 = vmatpush.msrb.mxu0 %v1767_v39 }
 0x9d6   :  { %v1584_v63 = vmul.f32 %v2394_v4, %v1583_v12  ;;  %2399 = vrcp.f32 %v1703_v37  ;;  %v1730_v44 = vand.u32 2147483648, %v1703_v37  ;;  %vm1724_vm11 = vweird.f32 %v1703_v37  ;;  %v1764_v12 = vld [vmem:[#allocation7 + $0x58] sm:$0xff] }
 0x9d7   :  { %v1728_v5 = vand.u32 2147483647, %v1703_v37  ;;  %1800 = vmatpush.msra.mxu2 %v1765_v51  ;;  %2058 = vmatpush.msrb.mxu0 %v1765_v51 }
 0x9d8   :  { %v1585_v22 = vadd.f32 %v2394_v4, %v1584_v63  ;;  %v1731_v21 = vor.u32 1.1754944e-38, %v1730_v44  ;;  %v1753_v44 = vld [vmem:[#allocation7] sm:$0xff] }
 0x9d9   :  { %vm1729_vm13 = vcmp.eq.f32.partialorder %v1728_v5, 8.507059e+37  ;;  %1801 = vmatpush.msra.mxu2 %v1763_v9  ;;  %2059 = vmatpush.msrb.mxu0 %v1763_v9  ;;  %v1754_v5 = vld [vmem:[#allocation7 + $0x8] sm:$0xff] }
 0x9da   :  { %v1589_v31 = vsel %vm1588_vm5, %v2394_v4, %v1585_v22  ;;  %v1766_v4 = vld [vmem:[#allocation7 + $0x68] sm:$0xff] }
 0x9db   :  { %v3291_v47 = vsel %vm1591_vm6, %v1593_v24, %v1589_v31  ;;  %v1762_v22 = vld [vmem:[#allocation7 + $0x48] sm:$0xff]  ;;  %1802 = vmatpush.msra.mxu2 %v1761_v59  ;;  %2060 = vmatpush.msrb.mxu0 %v1761_v59 }
 0x9dc   :  { %v1613_v48 = vmul.f32 %v2396_v38, %v3291_v47  ;;  %v2400_v15 = vpop.eup %2399  ;;  %v1612_v55 = vmul.f32 %v3291_v47, %v3267_v32 }
 0x9dd   :  { %v1720_v41 = vmul.f32 %v2400_v15, %v1703_v37  ;;  %vm1725_vm7 = vweird.f32 %v2400_v15 }
 0x9de   :  { %1615 = vrot.lane.b32.xlu1 %v1613_v48, %s2503_s1  ;;  %vm1726_vm14 = vmor %vm1724_vm11, %vm1725_vm7 }
 0x9df   :  { %v1721_v49 = vsub.f32 1.0, %v1720_v41  ;;  %v1760_v41 = vld [vmem:[#allocation7 + $0x38] sm:$0xff] }
 0x9e1   :  { %v1722_v50 = vmul.f32 %v2400_v15, %v1721_v49  ;;  %v1757_v49 = vld [vmem:[#allocation7 + $0x20] sm:$0xff] }
 0x9e3   :  { %v1723_v40 = vadd.f32 %v2400_v15, %v1722_v50  ;;  %v1758_v50 = vld [vmem:[#allocation7 + $0x28] sm:$0xff] }
 0x9e5   :  { %v1727_v6 = vsel %vm1726_vm14, %v2400_v15, %v1723_v40  ;;  %v1759_v15 = vld [vmem:[#allocation7 + $0x30] sm:$0xff]  ;;  %v1756_v40 = vld [vmem:[#allocation7 + $0x18] sm:$0xff] }
 0x9e6   :  { %v1732_v8 = vsel %vm1729_vm13, %v1731_v21, %v1727_v6  ;;  %1803 = vmatpush.msra.mxu2 %v1759_v15  ;;  %2061 = vmatpush.msrb.mxu0 %v1759_v15 }
 0x9e8   :  { %1804 = vmatpush.msra.mxu2 %v1757_v49  ;;  %2062 = vmatpush.msrb.mxu0 %v1757_v49 }
 0xa22   :  { %v1742_v28 = vpop.permute.xlu2 %1741 }
 0xa23   :  { %v3295_v43 = vadd.f32 %v1742_v28, %v1738_v62  ;;  %v1770_v62 = vld [vmem:[#allocation7 + $0x88] sm:$0xff]  ;;  %v1755_v28 = vld [vmem:[#allocation7 + $0x10] sm:$0xff] }
 0xa24   :  { %1818 = vmatpush.msrb.mxu3 %v1770_v62  ;;  %2076 = vmatpush.msra.mxu1 %v1770_v62 }
 0xa25   :  { %2401 = vtanh.f32 %v3295_v43  ;;  %1805 = vmatpush.msra.mxu2 %v1755_v28  ;;  %2063 = vmatpush.msrb.mxu0 %v1755_v28 }
 0xa26   :  { %2403 = vpow2.f32 %v2228_v13  ;;  %1819 = vmatpush.msrb.mxu3 %v1768_v3  ;;  %2077 = vmatpush.msra.mxu1 %v1768_v3 }
 0xa27   :  { %1806 = vmatpush.msra.mxu2 %v1753_v44  ;;  %2064 = vmatpush.msrb.mxu0 %v1753_v44 }
 0xa28   :  { %1820 = vmatpush.msrb.mxu3 %v1766_v4  ;;  %2078 = vmatpush.msra.mxu1 %v1766_v4 }
 0xa2a   :  { %1821 = vmatpush.msrb.mxu3 %v1764_v12  ;;  %2079 = vmatpush.msra.mxu1 %v1764_v12 }
 0xa2b   :  { %v2402_v7 = vpop.eup %2401 }
 0xa2c   :  { %v1746_v46 = vmul.f32 %v2402_v7, %v1732_v8  ;;  %v2404_v17 = vpop.eup %2403  ;;  %1822 = vmatpush.msrb.mxu3 %v1762_v22  ;;  %2080 = vmatpush.msra.mxu1 %v1762_v22  ;;  %v1785_v8 = vld [vmem:[%s3406_s5] sm:$0x3] }
 0xa2d   :  { %v3300_v18 = vadd.f32 1.0, %v2404_v17  ;;  %v1787_v13 = vperm.slane %v1785_v8, 0  ;;  %v1788_v53 = vperm.slane %v1785_v8, 1 }
 0xa2e   :  { %1748 = vrot.lane.b32.xlu2 %v1746_v46, %s2503_s1  ;;  %v1901_v16 = vrot.slane %v1746_v46, 4  ;;  %1823 = vmatpush.msrb.mxu3 %v1760_v41 }
 0xa2f   :  { %2405 = vrcp.f32 %v3300_v18  ;;  %v1607_v38 = vand.u32 2147483648, %v3300_v18  ;;  %vm1601_vm0 = vweird.f32 %v3300_v18  ;;  %v1605_v32 = vand.u32 2147483647, %v3300_v18  ;;  %2081 = vmatpush.msra.mxu1 %v1760_v41 }
 0xa30   :  { %1902 = vrot.lane.b32.xlu0 %v1901_v16, %s2503_s1  ;;  %1824 = vmatpush.msrb.mxu3 %v1758_v50 }
 0xa31   :  { %v1608_v48 = vor.u32 1.1754944e-38, %v1607_v38  ;;  %vm1606_vm3 = vcmp.eq.f32.partialorder %v1605_v32, 8.507059e+37  ;;  %2082 = vmatpush.msra.mxu1 %v1758_v50  ;;  %v1994_v32 = vrot.slane %v3295_v43, 6 }
 0xa32   :  { %1825 = vmatpush.msrb.mxu3 %v1756_v40 }
 0xa33   :  { %2083 = vmatpush.msra.mxu1 %v1756_v40 }
 0xa34   :  { %1826 = vmatpush.msrb.mxu3 %v1754_v5 }
 0xa35   :  { %v3303_v60 = vpop.eup %2405  ;;  %2084 = vmatpush.msra.mxu1 %v1754_v5 }
 0xa36   :  { %v1597_v11 = vmul.f32 %v3303_v60, %v3300_v18  ;;  %vm1602_vm15 = vweird.f32 %v3303_v60 }
 0xa37   :  { %vm1603_vm1 = vmor %vm1601_vm0, %vm1602_vm15 }
 0xa38   :  { %v1598_v35 = vsub.f32 1.0, %v1597_v11 }
 0xa3a   :  { %v1599_v10 = vmul.f32 %v3303_v60, %v1598_v35 }
 0xa3c   :  { %v1600_v31 = vadd.f32 %v3303_v60, %v1599_v10 }
 0xa3e   :  { %v1604_v47 = vsel %vm1603_vm1, %v3303_v60, %v1600_v31 }
 0xa3f   :  { %v1609_v33 = vsel %vm1606_vm3, %v1608_v48, %v1604_v47 }
 0xa50   :  { %v1616_v63 = vpop.permute.xlu1 %1615 }
 0xa51   :  { %v3310_v24 = vadd.f32 %v1616_v63, %v1612_v55 }
 0xa53   :  { %2407 = vtanh.f32 %v3310_v24 }
 0xa59   :  { %v2408_v26 = vpop.eup %2407 }
 0xa5a   :  { %v3319_v37 = vmul.f32 %v2408_v26, %v1609_v33 }
 0xa5c   :  { %1621 = vst.msk [vmem:[#allocation2] sm:$0x3] %vm339_vm12, %v3319_v37 }
 0xa88   :  { %v1749_v6 = vpop.permute.xlu2 %1748 }
 0xa89   :  { %1751 = vst.msk [vmem:[#allocation2 - $0x4] sm:$0x30] %vm726_vm2, %v1749_v6 }
 0xa90   :  { %v1752_v21 = vld [vmem:[#allocation2] sm:$0x3] }
 0xa91   :  { %1807 = vmatmul.f32.vlgmr.msra.gmra.mxu2 %v1752_v21  ;;  %1827 = vmatmul.f32.vlgmr.msrb.gmra.mxu3 %v1752_v21 }
 0xaa2   :  { %v1903_v7 = vpop.permute.xlu0 %1902 }
 0xaa3   :  { %2235 = vmatmul.msk.f32.vlgmr.msra.gmra.mxu0 %vm112_vm9, %v1903_v7  ;;  %2236 = vmatmul.msk.f32.vlgmr.msrb.gmra.mxu1 %vm112_vm9, %v1903_v7 }
 0xb14   :  { %v1808_v46 = vpop.f32.mrf.mxu2  ;;  %v1828_v54 = vpop.f32.mrf.mxu3 }
 0xb15   :  { %v1809_v16 = vadd.f32 %v1808_v46, %v1787_v13  ;;  %v1829_v57 = vadd.f32 %v1828_v54, %v1788_v53 }
 0xb17   :  { %v2233_v17 = vmul.f32 -1.442695, %v1809_v16  ;;  %v2234_v15 = vmul.f32 -1.442695, %v1829_v57 }
 0xb19   :  { %2409 = vpow2.f32 %v2233_v17 }
 0xb1f   :  { %v2410_v18 = vpop.eup %2409 }
 0xb20   :  { %v1837_v29 = vadd.f32 1.0, %v2410_v18  ;;  %v1923_v19 = vpop.f32.mrf.mxu0  ;;  %v1943_v27 = vpop.f32.mrf.mxu1 }
 0xb21   :  { %v1948_v20 = vrot.slane %v1923_v19, 2  ;;  %v1949_v3 = vrot.slane %v1943_v27, 2 }
 0xb22   :  { %2411 = vrcp.f32 %v1837_v29  ;;  %v1850_v61 = vand.u32 2147483648, %v1837_v29  ;;  %v1848_v2 = vand.u32 2147483647, %v1837_v29  ;;  %vm1844_vm4 = vweird.f32 %v1837_v29 }
 0xb23   :  { %v1952_v30 = vadd.f32 %v1948_v20, %v3192_v45  ;;  %v1953_v9 = vadd.f32 %v1949_v3, %v3202_v25 }
 0xb24   :  { %v1851_v45 = vor.u32 1.1754944e-38, %v1850_v61  ;;  %vm1849_vm6 = vcmp.eq.f32.partialorder %v1848_v2, 8.507059e+37 }
 0xb25   :  { %v2237_v23 = vmul.f32 -1.442695, %v1952_v30  ;;  %v2238_v49 = vmul.f32 -1.442695, %v1953_v9 }
 0xb27   :  { %2413 = vpow2.f32 %v2237_v23 }
 0xb28   :  { %v2412_v34 = vpop.eup %2411  ;;  %2415 = vtanh.f32 %v1829_v57 }
 0xb29   :  { %v1840_v58 = vmul.f32 %v2412_v34, %v1837_v29  ;;  %vm1845_vm2 = vweird.f32 %v2412_v34 }
 0xb2a   :  { %vm1846_vm5 = vmor %vm1844_vm4, %vm1845_vm2 }
 0xb2b   :  { %v1841_v60 = vsub.f32 1.0, %v1840_v58 }
 0xb2d   :  { %v2414_v0 = vpop.eup %2413  ;;  %v1842_v11 = vmul.f32 %v2412_v34, %v1841_v60 }
 0xb2e   :  { %v1960_v36 = vadd.f32 1.0, %v2414_v0  ;;  %v2416_v39 = vpop.eup %2415 }
 0xb2f   :  { %v1843_v62 = vadd.f32 %v2412_v34, %v1842_v11 }
 0xb30   :  { %2417 = vrcp.f32 %v1960_v36  ;;  %v1973_v63 = vand.u32 2147483648, %v1960_v36  ;;  %v1971_v22 = vand.u32 2147483647, %v1960_v36  ;;  %vm1967_vm11 = vweird.f32 %v1960_v36 }
 0xb31   :  { %v1847_v35 = vsel %vm1846_vm5, %v2412_v34, %v1843_v62  ;;  %2419 = vtanh.f32 %v1953_v9 }
 0xb32   :  { %v1852_v51 = vsel %vm1849_vm6, %v1851_v45, %v1847_v35  ;;  %v1974_v38 = vor.u32 1.1754944e-38, %v1973_v63  ;;  %vm1972_vm13 = vcmp.eq.f32.partialorder %v1971_v22, 8.507059e+37  ;;  %2421 = vpow2.f32 %v2234_v15 }
 0xb33   :  { %v1871_v4 = vmul.f32 %v2416_v39, %v1852_v51  ;;  %v1870_v6 = vmul.f32 %v1852_v51, %v3310_v24 }
 0xb35   :  { %1873 = vrot.lane.b32.xlu1 %v1871_v4, %s2503_s1 }
 0xb36   :  { %v2418_v10 = vpop.eup %2417 }
 0xb37   :  { %v1963_v12 = vmul.f32 %v2418_v10, %v1960_v36  ;;  %vm1968_vm7 = vweird.f32 %v2418_v10  ;;  %v2420_v48 = vpop.eup %2419 }
 0xb38   :  { %vm1969_vm14 = vmor %vm1967_vm11, %vm1968_vm7 }
 0xb39   :  { %v1964_v55 = vsub.f32 1.0, %v1963_v12 }
 0xb3b   :  { %v1965_v59 = vmul.f32 %v2418_v10, %v1964_v55 }
 0xb3d   :  { %342 = vrot.lane.b32.xlu1 %v2863_v1, %s2503_s1  ;;  %v1966_v31 = vadd.f32 %v2418_v10, %v1965_v59  ;;  %v2422_v1 = vpop.eup %2421 }
 0xb3e   :  { %v1838_v41 = vadd.f32 1.0, %v2422_v1 }
 0xb3f   :  { %v1970_v47 = vsel %vm1969_vm14, %v2418_v10, %v1966_v31 }
 0xb40   :  { %v1975_v25 = vsel %vm1972_vm13, %v1974_v38, %v1970_v47  ;;  %2423 = vrcp.f32 %v1838_v41  ;;  %v1865_v13 = vand.u32 2147483648, %v1838_v41  ;;  %vm1859_vm0 = vweird.f32 %v1838_v41 }
 0xb41   :  { %v1997_v26 = vmul.f32 %v2420_v48, %v1975_v25  ;;  %v1996_v33 = vmul.f32 %v1994_v32, %v1975_v25  ;;  %2425 = vpow2.f32 %v2238_v49  ;;  %v1863_v46 = vand.u32 2147483647, %v1838_v41  ;;  %v2152_v49 = vld [vmem:[%s3407_s6 + $0x38] sm:$0xff] }
 0xb42   :  { %v1866_v18 = vor.u32 1.1754944e-38, %v1865_v13  ;;  %2171 = vmatpush.msrb.mxu2 %v2152_v49 }
 0xb43   :  { %1999 = vrot.lane.b32.xlu0 %v1997_v26, %s2503_s1  ;;  %vm1864_vm3 = vcmp.eq.f32.partialorder %v1863_v46, 8.507059e+37 }
 0xb45   :  { %1116 = vrot.lane.b32.xlu1 %v3216_v42, %s2503_s1 }
 0xb46   :  { %v2424_v50 = vpop.eup %2423 }
 0xb47   :  { %v2426_v43 = vpop.eup %2425  ;;  %v1855_v28 = vmul.f32 %v2424_v50, %v1838_v41  ;;  %vm1860_vm15 = vweird.f32 %v2424_v50 }
 0xb48   :  { %v1961_v40 = vadd.f32 1.0, %v2426_v43  ;;  %vm1861_vm1 = vmor %vm1859_vm0, %vm1860_vm15  ;;  %v2150_v43 = vld [vmem:[%s3407_s6 + $0x28] sm:$0xff] }
 0xb49   :  { %v1856_v44 = vsub.f32 1.0, %v1855_v28 }
 0xb4a   :  { %2427 = vrcp.f32 %v1961_v40  ;;  %v1988_v58 = vand.u32 2147483648, %v1961_v40  ;;  %vm1982_vm4 = vweird.f32 %v1961_v40  ;;  %v1986_v60 = vand.u32 2147483647, %v1961_v40 }
 0xb4b   :  { %v1857_v5 = vmul.f32 %v2424_v50, %v1856_v44  ;;  %v2147_v44 = vld [vmem:[%s3407_s6 + $0x10] sm:$0xff] }
 0xb4c   :  { %v1989_v0 = vor.u32 1.1754944e-38, %v1988_v58  ;;  %vm1987_vm6 = vcmp.eq.f32.partialorder %v1986_v60, 8.507059e+37  ;;  %v2252_v60 = vld [vmem:[#allocation4] ss:$0 sm:$0xff] }
 0xb4d   :  { %v1858_v42 = vadd.f32 %v2424_v50, %v1857_v5  ;;  %v2146_v5 = vld [vmem:[%s3407_s6 + $0x8] sm:$0xff] }
 0xb4f   :  { %v1862_v17 = vsel %vm1861_vm1, %v2424_v50, %v1858_v42  ;;  %v2151_v50 = vld [vmem:[%s3407_s6 + $0x30] sm:$0xff] }
 0xb50   :  { %v2428_v7 = vpop.eup %2427  ;;  %v1867_v24 = vsel %vm1864_vm3, %v1866_v18, %v1862_v17  ;;  %2172 = vmatpush.msrb.mxu2 %v2151_v50  ;;  %vm2186_vm3 = vcmask 7168  }
 0xb51   :  { %v1978_v16 = vmul.f32 %v2428_v7, %v1961_v40  ;;  %vm1983_vm2 = vweird.f32 %v2428_v7  ;;  %v2148_v40 = vld [vmem:[%s3407_s6 + $0x18] sm:$0xff] }
 0xb52   :  { %vm1984_vm5 = vmor %vm1982_vm4, %vm1983_vm2  ;;  %2173 = vmatpush.msrb.mxu2 %v2150_v43 }
 0xb53   :  { %v1979_v19 = vsub.f32 1.0, %v1978_v16 }
 0xb55   :  { %v1980_v53 = vmul.f32 %v2428_v7, %v1979_v19 }
 0xb57   :  { %v1981_v57 = vadd.f32 %v2428_v7, %v1980_v53 }
 0xb59   :  { %v1985_v61 = vsel %vm1984_vm5, %v2428_v7, %v1981_v57 }
 0xb5a   :  { %v1990_v2 = vsel %vm1987_vm6, %v1989_v0, %v1985_v61 }
 0xba7   :  { %v1874_v21 = vpop.permute.xlu1 %1873 }
 0xba8   :  { %v3339_v8 = vadd.f32 %v1874_v21, %v1870_v6  ;;  %v2145_v6 = vld [vmem:[%s3407_s6] sm:$0xff] }
 0xbaa   :  { %2429 = vtanh.f32 %v3339_v8 }
 0xbaf   :  { %v343_v29 = vpop.permute.xlu1 %342 }
 0xbb0   :  { %v2430_v20 = vpop.eup %2429  ;;  %345 = vst.msk [vmem:[#allocation3] sm:$0x3] %vm210_vm8, %v343_v29 }
 0xbb1   :  { %v1878_v30 = vmul.f32 %v2430_v20, %v1867_v24 }
 0xbb3   :  { %1881 = vrot.lane.b32.xlu1 %v1878_v30, %s2503_s1  ;;  %1879 = vst.msk [vmem:[#allocation2] sm:$0x3] %vm339_vm12, %v1878_v30 }
 0xbb5   :  { %v2000_v54 = vpop.permute.xlu0 %1999 }
 0xbb6   :  { %v2002_v23 = vadd.f32 %v2000_v54, %v1996_v33 }
 0xbb7   :  { %v1117_v34 = vpop.permute.xlu1 %1116 }
 0xbb8   :  { %2431 = vtanh.f32 %v2002_v23  ;;  %1119 = vst.msk [vmem:[#allocation3 + $0x6] sm:$0x3] %vm210_vm8, %v1117_v34 }
 0xbbe   :  { %v2432_v11 = vpop.eup %2431 }
 0xbbf   :  { %v2004_v36 = vmul.f32 %v2432_v11, %v1990_v2 }
 0xbc1   :  { %2006 = vrot.lane.b32.xlu2 %v2004_v36, %s2503_s1 }
 0xbc9   :  { %598 = vrot.lane.b32.xlu2 %v2967_v56, %s2503_s1  ;;  %v2043_v56 = vld [vmem:[%s3406_s5] sm:$0x3] }
 0xbca   :  { %v2046_v12 = vperm.slane %v2043_v56, 1 }
 0xbd1   :  { %1368 = vrot.lane.b32.xlu2 %v3277_v52, %s2503_s1  ;;  %v2045_v52 = vperm.slane %v2043_v56, 0 }
 0xc1b   :  { %v2007_v27 = vpop.permute.xlu2 %2006 }
 0xc1c   :  { %2009 = vst.msk [vmem:[#allocation2 - $0x6] sm:$0xc0] %vm985_vm10, %v2007_v27 }
 0xc23   :  { %v599_v62 = vpop.permute.xlu2 %598  ;;  %v2010_v45 = vld [vmem:[#allocation2] sm:$0x3] }
 0xc24   :  { %601 = vst.msk [vmem:[#allocation3 + $0x2] sm:$0x3] %vm210_vm8, %v599_v62  ;;  %2065 = vmatmul.f32.vlgmr.msrb.gmra.mxu0 %v2010_v45  ;;  %2085 = vmatmul.f32.vlgmr.msra.gmra.mxu1 %v2010_v45 }
 0xc25   :  { %v1882_v35 = vpop.permute.xlu1 %1881 }
 0xc26   :  { %1884 = vst.msk [vmem:[#allocation3 + $0xc] sm:$0x3] %vm210_vm8, %v1882_v35 }
 0xc2b   :  { %v1369_v39 = vpop.permute.xlu2 %1368 }
 0xc2c   :  { %1371 = vst.msk [vmem:[#allocation3 + $0x8] sm:$0x3] %vm210_vm8, %v1369_v39 }
 0xca1   :  { %v2066_v3 = vpop.f32.mrf.mxu0  ;;  %v2086_v55 = vpop.f32.mrf.mxu1 }
 0xca2   :  { %v2067_v51 = vadd.f32 %v2066_v3, %v2045_v52  ;;  %v2087_v59 = vadd.f32 %v2086_v55, %v2046_v12 }
 0xca4   :  { %v2239_v4 = vmul.f32 -1.442695, %v2067_v51  ;;  %v2240_v41 = vmul.f32 -1.442695, %v2087_v59 }
 0xca6   :  { %2433 = vpow2.f32 %v2239_v4 }
 0xcac   :  { %v2434_v10 = vpop.eup %2433 }
 0xcad   :  { %v2095_v9 = vadd.f32 1.0, %v2434_v10 }
 0xcaf   :  { %2435 = vrcp.f32 %v2095_v9  ;;  %v2108_v38 = vand.u32 2147483648, %v2095_v9  ;;  %v2106_v47 = vand.u32 2147483647, %v2095_v9  ;;  %vm2102_vm7 = vweird.f32 %v2095_v9 }
 0xcb0   :  { %2437 = vtanh.f32 %v2087_v59 }
 0xcb1   :  { %v2109_v25 = vor.u32 1.1754944e-38, %v2108_v38  ;;  %vm2107_vm14 = vcmp.eq.f32.partialorder %v2106_v47, 8.507059e+37  ;;  %2439 = vpow2.f32 %v2240_v41 }
 0xcb5   :  { %v2436_v63 = vpop.eup %2435 }
 0xcb6   :  { %v2098_v22 = vmul.f32 %v2436_v63, %v2095_v9  ;;  %vm2103_vm10 = vweird.f32 %v2436_v63  ;;  %v2438_v33 = vpop.eup %2437 }
 0xcb7   :  { %vm2104_vm11 = vmor %vm2102_vm7, %vm2103_vm10  ;;  %v2440_v28 = vpop.eup %2439 }
 0xcb8   :  { %v2099_v31 = vsub.f32 1.0, %v2098_v22 }
 0xcba   :  { %v2100_v32 = vmul.f32 %v2436_v63, %v2099_v31 }
 0xcbc   :  { %v2101_v48 = vadd.f32 %v2436_v63, %v2100_v32 }
 0xcbe   :  { %v2105_v26 = vsel %vm2104_vm11, %v2436_v63, %v2101_v48 }
 0xcbf   :  { %v2110_v15 = vsel %vm2107_vm14, %v2109_v25, %v2105_v26 }
 0xcc0   :  { %v2129_v1 = vmul.f32 %v2438_v33, %v2110_v15  ;;  %v2128_v46 = vmul.f32 %v2110_v15, %v3339_v8 }
 0xcc2   :  { %2131 = vrot.lane.b32.xlu0 %v2129_v1, %s2503_s1 }
 0xcca   :  { %857 = vrot.lane.b32.xlu0 %v3066_v14, %s2503_s1  ;;  %v2149_v14 = vld [vmem:[%s3407_s6 + $0x20] sm:$0xff] }
 0xccb   :  { %2174 = vmatpush.msrb.mxu2 %v2149_v14 }
 0xccd   :  { %2175 = vmatpush.msrb.mxu2 %v2148_v40 }
 0xccf   :  { %2176 = vmatpush.msrb.mxu2 %v2147_v44 }
 0xcd1   :  { %2177 = vmatpush.msrb.mxu2 %v2146_v5 }
 0xcd2   :  { %1623 = vrot.lane.b32.xlu0 %v3319_v37, %s2503_s1  ;;  %v2096_v37 = vadd.f32 1.0, %v2440_v28 }
 0xcd3   :  { %2178 = vmatpush.msrb.mxu2 %v2145_v6 }
 0xcd4   :  { %2441 = vrcp.f32 %v2096_v37  ;;  %v2123_v29 = vand.u32 2147483648, %v2096_v37  ;;  %vm2117_vm15 = vweird.f32 %v2096_v37  ;;  %v2121_v19 = vand.u32 2147483647, %v2096_v37 }
 0xcd6   :  { %v2124_v24 = vor.u32 1.1754944e-38, %v2123_v29  ;;  %vm2122_vm1 = vcmp.eq.f32.partialorder %v2121_v19, 8.507059e+37 }
 0xcda   :  { %v2442_v21 = vpop.eup %2441 }
 0xcdb   :  { %v2113_v7 = vmul.f32 %v2442_v21, %v2096_v37  ;;  %vm2118_vm13 = vweird.f32 %v2442_v21 }
 0xcdc   :  { %vm2119_vm0 = vmor %vm2117_vm15, %vm2118_vm13 }
 0xcdd   :  { %v2114_v42 = vsub.f32 1.0, %v2113_v7 }
 0xcdf   :  { %v2115_v13 = vmul.f32 %v2442_v21, %v2114_v42 }
 0xce1   :  { %v2116_v18 = vadd.f32 %v2442_v21, %v2115_v13 }
 0xce3   :  { %v2120_v20 = vsel %vm2119_vm0, %v2442_v21, %v2116_v18 }
 0xce4   :  { %v2125_v54 = vsel %vm2122_vm1, %v2124_v24, %v2120_v20 }
 0xd34   :  { %v2132_v16 = vpop.permute.xlu0 %2131 }
 0xd35   :  { %v2134_v17 = vadd.f32 %v2132_v16, %v2128_v46 }
 0xd37   :  { %2443 = vtanh.f32 %v2134_v17 }
 0xd3c   :  { %v858_v30 = vpop.permute.xlu0 %857 }
 0xd3d   :  { %v2444_v53 = vpop.eup %2443  ;;  %860 = vst.msk [vmem:[#allocation3 + $0x4] sm:$0x3] %vm210_vm8, %v858_v30 }
 0xd3e   :  { %v2136_v23 = vmul.f32 %v2444_v53, %v2125_v54 }
 0xd40   :  { %2139 = vrot.lane.b32.xlu2 %v2136_v23, %s2503_s1  ;;  %2137 = vst.msk [vmem:[#allocation2] sm:$0x3] %vm339_vm12, %v2136_v23 }
 0xd44   :  { %v1624_v8 = vpop.permute.xlu0 %1623  ;;  %v2143_v34 = vld [vmem:[#allocation3] sm:$0xff] }
 0xd45   :  { %1626 = vst.msk [vmem:[#allocation3 + $0xa] sm:$0x3] %vm210_vm8, %v1624_v8  ;;  %2241 = vmatmul.msk.f32.vlgmr.msrb.gmra.mxu2 %vm112_vm9, %v2143_v34 }
 0xd9a   :  { %v2140_v57 = vpop.permute.xlu2 %2139 }
 0xd9b   :  { %2142 = vst.msk [vmem:[#allocation3 + $0xe] sm:$0x3] %vm210_vm8, %v2140_v57 }
 0xda2   :  { %v2144_v58 = vld [vmem:[#allocation3 + $0x8] sm:$0xff] }
 0xda3   :  { %2242 = vmatmul.msk.f32.gmra.mxu2 %vm112_vm9, %v2144_v58 }
 0xdc8   :  { %v2180_v61 = vpop.f32.mrf.mxu2 }
 0xdc9   :  { %v2181_v0 = vadd.f32 %v2252_v60, %v2180_v61 }
 0xdcb   :  { %2187 = vst.msk [vmem:[%s3409_s8] sm:$0xff] %vm2186_vm3, %v2181_v0 }
 0xe26   :  { %v2183_v11 = vpop.f32.mrf.mxu2 }
 0xe27   :  { %v2184_v2 = vadd.f32 %v2252_v60, %v2183_v11 }
 0xe29   :  { %2188 = vst.msk [vmem:[%s3409_s8 + $0x8] sm:$0xff] %vm2186_vm3, %v2184_v2 }
 0xe2a   :  { %2193 = vsyncpa [#allocation6], 1 }
 0xe2b   :  { %2194 = vsyncpa [#allocation8], 1 }

</bundles_post_ra>
